<compile_context>
chip_gen: v7x
topology: tpu7x:2x2x1
jax: 0.10.0
libtpu: 0.0.40
codegen_flags: <defaults>
</compile_context>

<pallas_src>
import functools

import numpy as np
import jax
import jax.numpy as jnp
from jax.experimental import pallas as pl
from jax.experimental.pallas import tpu as pltpu

BN_EPS = 1e-5
_BLOCK_CFG = (6, 12, 24, 16)   # densenet121
_GROWTH = 32
_BN_SIZE = 4


# ---------------------------------------------------------------------------
# Pallas head kernel: classifier MLP + seg conv stack (1x1 spatial features).
# ---------------------------------------------------------------------------
def _head_kernel(f_ref, wf_ref, w2_ref, cw2_ref, cw3_ref, cw4_ref, cw5_ref,
                 bias_ref, out_ref):
    f32 = jnp.float32
    f = f_ref[...]                                               # (bn, 1024) bf16

    # Fused big layer: classifier Linear(1024,512) and seg conv1 center-tap share
    # the same LHS -> one 1024-wide MXU pass, one add+relu epilogue.
    hy = jnp.dot(f, wf_ref[...], preferred_element_type=f32) + bias_ref[0:1, :]
    hy = jnp.maximum(hy, 0.0).astype(jnp.bfloat16)
    h = hy[:, :512]                                              # classifier hidden
    y = hy[:, 512:]                                              # seg branch

    # Seg layers 2..4: conv3x3(pad=1) on a 1x1 map == center-tap matmul; conv bias
    # and eval-BN scale pre-folded -> epilogue is one add + relu.  (cw4 output and
    # the bias row are zero-padded to 128 lanes, so y stays lane-dense; Dropout is
    # identity in eval mode.)
    for w_ref, row, width in ((cw2_ref, 2, 256), (cw3_ref, 3, 128), (cw4_ref, 4, 128)):
        y = jnp.dot(y, w_ref[...], preferred_element_type=f32)
        y = jnp.maximum(y + bias_ref[row:row + 1, :width], 0.0).astype(jnp.bfloat16)

    # Merged lane-dense output: logits at lanes [0, num_classes), seg at lane 64.
    out_ref[...] = (jnp.dot(h, w2_ref[...], preferred_element_type=f32)
                    + jnp.dot(y, cw5_ref[...], preferred_element_type=f32)
                    + bias_ref[1:2, :128])


def head_forward(f, hp, num_classes):
    n = f.shape[0]
    f = f.astype(jnp.bfloat16)                      # halves activation DMA bytes

    def _r8(v):
        return (v + 7) // 8 * 8

    if n <= 8:
        bn = _r8(n)                                 # single block, sublane-padded
        n_pad = bn
    else:
        # >= 2 grid steps so v7x's two TensorCores both engage on the "parallel"
        # N axis; cap at 512 rows to amortize per-step overhead on v6e.
        bn = min(512, _r8(pl.cdiv(n, 2)))
        n_pad = pl.cdiv(n, bn) * bn
    if n_pad != n:
        f = jnp.pad(f, ((0, n_pad - n), (0, 0)))
    grid = (n_pad // bn,)

    w_args = (hp['wf'], hp['w2'], hp['cw2'], hp['cw3'], hp['cw4'], hp['cw5'],
              hp['bias'])
    in_specs = ([pl.BlockSpec((bn, 1024), lambda i: (i, 0))]
                + [pl.BlockSpec(a.shape, lambda i: (0, 0)) for a in w_args])
    out_shape = jax.ShapeDtypeStruct((n_pad, 128), jnp.float32)
    out_specs = pl.BlockSpec((bn, 128), lambda i: (i, 0))

    out = pl.pallas_call(
        _head_kernel,
        grid=grid,
        in_specs=in_specs,
        out_specs=out_specs,
        out_shape=out_shape,
        compiler_params=pltpu.CompilerParams(
            dimension_semantics=("parallel",)),
    )(f, *w_args)
    return out[:n, :num_classes], out[:n, 64:65]


# ---------------------------------------------------------------------------
# densenet121 feature extractor (plain-JAX glue, bf16, deterministic init).
# ---------------------------------------------------------------------------
def _conv2d(x, w, stride=1, pad=0):
    return jax.lax.conv_general_dilated(
        x, w, window_strides=(stride, stride),
        padding=[(pad, pad), (pad, pad)],
        dimension_numbers=('NHWC', 'HWIO', 'NHWC'))


def _bn_eval(x, scale, beta):
    # Eval-mode BatchNorm with fresh running stats; gamma/sqrt(var+eps) is
    # pre-folded into `scale` at parameter-build time.
    return x * scale + beta


def _max_pool_3x3_s2_p1(x):
    return jax.lax.reduce_window(
        x, jnp.array(-jnp.inf, x.dtype), jax.lax.max,
        window_dimensions=(1, 3, 3, 1), window_strides=(1, 2, 2, 1),
        padding=[(0, 0), (1, 1), (1, 1), (0, 0)])


def _avg_pool_2x2(x):
    s = jax.lax.reduce_window(
        x, jnp.array(0.0, x.dtype), jax.lax.add,
        window_dimensions=(1, 2, 2, 1), window_strides=(1, 2, 2, 1),
        padding='VALID')
    return s * 0.25


def densenet_features(x, dn):
    x = x.astype(jnp.bfloat16)
    x = _conv2d(x, dn['conv0'], stride=2, pad=3)
    x = jnp.maximum(_bn_eval(x, dn['norm0_g'], dn['norm0_b']), 0.0)
    x = _max_pool_3x3_s2_p1(x)
    for bi, nl in enumerate(_BLOCK_CFG):
        for li in range(nl):
            pre = f'b{bi}l{li}'
            y = jnp.maximum(_bn_eval(x, dn[pre + '_n1g'], dn[pre + '_n1b']), 0.0)
            y = _conv2d(y, dn[pre + '_c1'], stride=1, pad=0)
            y = jnp.maximum(_bn_eval(y, dn[pre + '_n2g'], dn[pre + '_n2b']), 0.0)
            y = _conv2d(y, dn[pre + '_c2'], stride=1, pad=1)
            x = jnp.concatenate([x, y], axis=-1)
        if bi != len(_BLOCK_CFG) - 1:
            pre = f't{bi}'
            x = jnp.maximum(_bn_eval(x, dn[pre + '_ng'], dn[pre + '_nb']), 0.0)
            x = _conv2d(x, dn[pre + '_c'], stride=1, pad=0)
            x = _avg_pool_2x2(x)
    # torchvision .features ends with norm5 (no final ReLU, no pooling).
    x = _bn_eval(x, dn['norm5_g'], dn['norm5_b'])
    return x


# ---------------------------------------------------------------------------
# Deterministic parameter construction.
# ---------------------------------------------------------------------------
def make_params(key, num_classes=2):
    assert num_classes <= 64       # logits + seg column share one 128-lane output
    keys = iter(jax.random.split(key, 1024))
    bn_fold = float(1.0 / np.sqrt(1.0 + BN_EPS))   # gamma=1, running_var=1, eval

    def conv_w(kh, kw, cin, cout):
        std = (2.0 / (kh * kw * cin)) ** 0.5
        return jax.random.normal(next(keys), (kh, kw, cin, cout), jnp.float32) * std

    def bias(fan_in, cout):
        bound = 1.0 / (fan_in ** 0.5)
        return jax.random.uniform(next(keys), (1, cout), jnp.float32, -bound, bound)

    def lin_w(cin, cout):
        bound = 1.0 / (cin ** 0.5)
        return jax.random.uniform(next(keys), (cin, cout), jnp.float32, -bound, bound)

    def bn_pair(c):
        return (jnp.full((c,), bn_fold, jnp.bfloat16), jnp.zeros((c,), jnp.bfloat16))

    # ---- backbone (bf16) ----
    dn = {'conv0': conv_w(7, 7, 3, 64).astype(jnp.bfloat16)}
    dn['norm0_g'], dn['norm0_b'] = bn_pair(64)
    c = 64
    for bi, nl in enumerate(_BLOCK_CFG):
        for li in range(nl):
            pre = f'b{bi}l{li}'
            dn[pre + '_n1g'], dn[pre + '_n1b'] = bn_pair(c)
            dn[pre + '_c1'] = conv_w(1, 1, c, _BN_SIZE * _GROWTH).astype(jnp.bfloat16)
            dn[pre + '_n2g'], dn[pre + '_n2b'] = bn_pair(_BN_SIZE * _GROWTH)
            dn[pre + '_c2'] = conv_w(3, 3, _BN_SIZE * _GROWTH, _GROWTH).astype(jnp.bfloat16)
            c += _GROWTH
        if bi != len(_BLOCK_CFG) - 1:
            pre = f't{bi}'
            dn[pre + '_ng'], dn[pre + '_nb'] = bn_pair(c)
            dn[pre + '_c'] = conv_w(1, 1, c, c // 2).astype(jnp.bfloat16)
            c //= 2
    dn['norm5_g'], dn['norm5_b'] = bn_pair(c)
    assert c == 1024

    # ---- head (Pallas): bf16 matmul weights, one packed f32 bias/shift slab ----
    w1 = lin_w(1024, 512)
    b1 = bias(1024, 512)
    w2 = lin_w(512, num_classes)
    b2 = bias(512, num_classes)

    seg_w, seg_shift = [], []
    for cin, cout in [(1024, 512), (512, 256), (256, 128), (128, 64)]:
        w_full = conv_w(3, 3, cin, cout)                 # full 3x3 HWIO weight
        b_conv = bias(cin * 9, cout)
        # center tap (exact on 1x1 maps) with eval-BN scale folded into the weight
        seg_w.append(w_full[1, 1] * bn_fold)
        seg_shift.append(b_conv * bn_fold)               # (bias - mean)*scale + beta
    w5 = conv_w(1, 1, 64, 1)
    cb5 = bias(64, 1)

    hp = {}
    # fused big layer: [classifier w1 | seg cw1] -> one (1024, 1024) MXU pass
    hp['wf'] = jnp.concatenate([w1, seg_w[0]], axis=1).astype(jnp.bfloat16)
    hp['w2'] = (jnp.zeros((512, 128), jnp.float32)                  # lane-dense pad
                .at[:, :num_classes].set(w2).astype(jnp.bfloat16))
    hp['cw2'] = seg_w[1].astype(jnp.bfloat16)                       # (512, 256)
    hp['cw3'] = seg_w[2].astype(jnp.bfloat16)                       # (256, 128)
    hp['cw4'] = (jnp.zeros((128, 128), jnp.float32)                 # pad out lanes
                 .at[:, :64].set(seg_w[3]).astype(jnp.bfloat16))
    hp['cw5'] = (jnp.zeros((128, 128), jnp.float32)                 # K-pad; seg @ lane 64
                 .at[:64, 64].set(w5[0, 0, :, 0]).astype(jnp.bfloat16))

    # pack every bias/shift into a single (8, 1024) f32 slab:
    # row0 = [b1 | seg shift1] (fused layer), row1 = output bias (b2 + cb5@lane64),
    # rows 2..4 = seg shifts 2..4 (row 4 zero-padded to 128).
    slab = jnp.zeros((8, 1024), jnp.float32)
    slab = slab.at[0, :512].set(b1[0])
    slab = slab.at[0, 512:].set(seg_shift[0][0])
    slab = slab.at[1, :num_classes].set(b2[0])
    slab = slab.at[1, 64].set(cb5[0, 0])
    slab = slab.at[2, :256].set(seg_shift[1][0])
    slab = slab.at[3, :128].set(seg_shift[2][0])
    slab = slab.at[4, :64].set(seg_shift[3][0])
    hp['bias'] = slab
    return dn, hp


# ---------------------------------------------------------------------------
# Full forward (matches XRayNet.forward).
# ---------------------------------------------------------------------------
def xraynet_forward(x_nchw, dn, hp, num_classes=2):
    x = jnp.transpose(x_nchw, (0, 2, 3, 1))              # NCHW -> NHWC
    feats = densenet_features(x, dn)                     # (N, 1, 1, 1024) bf16
    n = feats.shape[0]
    f = feats.reshape(n, -1)                             # == torch.flatten(features, 1)
    assert f.shape[1] == 1024, f.shape
    logits, seg_flat = head_forward(f, hp, num_classes)  # Pallas kernel
    seg = seg_flat.reshape(n, 1, 1, 1)                   # (N, 1, 1, 1), NCHW
    return logits, seg


if __name__ == "__main__":
    key = jax.random.PRNGKey(0)
    kx, kp = jax.random.split(key)
    # 32x32 input -> densenet121 features are (N, 1024, 1, 1), as the
    # classifier Linear(1024, 512) requires.
    x = jax.random.normal(kx, (2, 3, 32, 32), jnp.float32)   # NCHW, PyTorch-style
    dn, hp = make_params(kp, num_classes=2)
    fwd = jax.jit(functools.partial(xraynet_forward, dn=dn, hp=hp, num_classes=2))
    logits, seg = fwd(x)
    jax.block_until_ready((logits, seg))
    assert logits.shape == (2, 2) and logits.dtype == jnp.float32
    assert seg.shape == (2, 1, 1, 1) and seg.dtype == jnp.float32
    print("KERNEL_OK")
</pallas_src>

<mosaic_0001>
module attributes {stable_mosaic.version = 11 : i64} {
  func.func @_head_kernel(%arg0: i32, %arg1: memref<8x1024xbf16, #tpu.memory_space<vmem>>, %arg2: memref<1024x1024xbf16, #tpu.memory_space<vmem>>, %arg3: memref<512x128xbf16, #tpu.memory_space<vmem>>, %arg4: memref<512x256xbf16, #tpu.memory_space<vmem>>, %arg5: memref<256x128xbf16, #tpu.memory_space<vmem>>, %arg6: memref<128x128xbf16, #tpu.memory_space<vmem>>, %arg7: memref<128x128xbf16, #tpu.memory_space<vmem>>, %arg8: memref<8x1024xf32, #tpu.memory_space<vmem>>, %arg9: memref<8x128xf32, #tpu.memory_space<vmem>>) attributes {dimension_semantics = [#tpu.dimension_semantics<parallel>], iteration_bounds = array<i64: 1>, scalar_prefetch = 0 : i64, scratch_operands = 0 : i64, tpu.core_type = #tpu.core_type<tc>, window_params = [{transform_indices = @transform_0, window_bounds = array<i64: 8, 1024>}, {pipeline_mode = #tpu.pipeline_mode<synchronous>, transform_indices = @transform_1, window_bounds = array<i64: 1024, 1024>}, {pipeline_mode = #tpu.pipeline_mode<synchronous>, transform_indices = @transform_2, window_bounds = array<i64: 512, 128>}, {pipeline_mode = #tpu.pipeline_mode<synchronous>, transform_indices = @transform_3, window_bounds = array<i64: 512, 256>}, {pipeline_mode = #tpu.pipeline_mode<synchronous>, transform_indices = @transform_4, window_bounds = array<i64: 256, 128>}, {pipeline_mode = #tpu.pipeline_mode<synchronous>, transform_indices = @transform_5, window_bounds = array<i64: 128, 128>}, {pipeline_mode = #tpu.pipeline_mode<synchronous>, transform_indices = @transform_6, window_bounds = array<i64: 128, 128>}, {pipeline_mode = #tpu.pipeline_mode<synchronous>, transform_indices = @transform_7, window_bounds = array<i64: 8, 1024>}, {transform_indices = @transform_8, window_bounds = array<i64: 8, 128>}]} {
    %c0 = arith.constant 0 : index
    %c0_0 = arith.constant 0 : index
    %0 = vector.load %arg1[%c0, %c0_0] : memref<8x1024xbf16, #tpu.memory_space<vmem>>, vector<8x1024xbf16>
    %c0_1 = arith.constant 0 : index
    %c0_2 = arith.constant 0 : index
    %1 = vector.load %arg2[%c0_1, %c0_2] : memref<1024x1024xbf16, #tpu.memory_space<vmem>>, vector<1024x1024xbf16>
    %cst = arith.constant dense<0.000000e+00> : vector<8x1024xf32>
    %2 = tpu.matmul %0, %1, %cst {dimension_numbers = #tpu.dot_dimension_numbers<[1], [0], [0], [1], [0, 0, 1, 1], [], []>} : vector<8x1024xbf16>, vector<1024x1024xbf16>, vector<8x1024xf32> -> vector<8x1024xf32>
    %c0_3 = arith.constant 0 : index
    %c0_4 = arith.constant 0 : index
    %3 = vector.load %arg8[%c0_3, %c0_4] : memref<8x1024xf32, #tpu.memory_space<vmem>>, vector<1x1024xf32>
    %4 = vector.broadcast %3 : vector<1x1024xf32> to vector<8x1024xf32>
    %5 = arith.addf %2, %4 : vector<8x1024xf32>
    %cst_5 = arith.constant 0.000000e+00 : f32
    %6 = vector.broadcast %cst_5 : f32 to vector<8x1024xf32>
    %7 = arith.maximumf %5, %6 : vector<8x1024xf32>
    %8 = arith.truncf %7 : vector<8x1024xf32> to vector<8x1024xbf16>
    %9 = vector.extract_strided_slice %8 {offsets = [0, 0], sizes = [8, 512], strides = [1, 1]} : vector<8x1024xbf16> to vector<8x512xbf16>
    %10 = vector.extract_strided_slice %8 {offsets = [0, 512], sizes = [8, 512], strides = [1, 1]} : vector<8x1024xbf16> to vector<8x512xbf16>
    %c0_6 = arith.constant 0 : index
    %c0_7 = arith.constant 0 : index
    %11 = vector.load %arg4[%c0_6, %c0_7] : memref<512x256xbf16, #tpu.memory_space<vmem>>, vector<512x256xbf16>
    %cst_8 = arith.constant dense<0.000000e+00> : vector<8x256xf32>
    %12 = tpu.matmul %10, %11, %cst_8 {dimension_numbers = #tpu.dot_dimension_numbers<[1], [0], [0], [1], [0, 0, 1, 1], [], []>} : vector<8x512xbf16>, vector<512x256xbf16>, vector<8x256xf32> -> vector<8x256xf32>
    %c2 = arith.constant 2 : index
    %c0_9 = arith.constant 0 : index
    %13 = vector.load %arg8[%c2, %c0_9] : memref<8x1024xf32, #tpu.memory_space<vmem>>, vector<1x256xf32>
    %14 = vector.broadcast %13 : vector<1x256xf32> to vector<8x256xf32>
    %15 = arith.addf %12, %14 : vector<8x256xf32>
    %cst_10 = arith.constant 0.000000e+00 : f32
    %16 = vector.broadcast %cst_10 : f32 to vector<8x256xf32>
    %17 = arith.maximumf %15, %16 : vector<8x256xf32>
    %18 = arith.truncf %17 : vector<8x256xf32> to vector<8x256xbf16>
    %c0_11 = arith.constant 0 : index
    %c0_12 = arith.constant 0 : index
    %19 = vector.load %arg5[%c0_11, %c0_12] : memref<256x128xbf16, #tpu.memory_space<vmem>>, vector<256x128xbf16>
    %cst_13 = arith.constant dense<0.000000e+00> : vector<8x128xf32>
    %20 = tpu.matmul %18, %19, %cst_13 {dimension_numbers = #tpu.dot_dimension_numbers<[1], [0], [0], [1], [0, 0, 1, 1], [], []>} : vector<8x256xbf16>, vector<256x128xbf16>, vector<8x128xf32> -> vector<8x128xf32>
    %c3 = arith.constant 3 : index
    %c0_14 = arith.constant 0 : index
    %21 = vector.load %arg8[%c3, %c0_14] : memref<8x1024xf32, #tpu.memory_space<vmem>>, vector<1x128xf32>
    %22 = vector.broadcast %21 : vector<1x128xf32> to vector<8x128xf32>
    %23 = arith.addf %20, %22 : vector<8x128xf32>
    %cst_15 = arith.constant 0.000000e+00 : f32
    %24 = vector.broadcast %cst_15 : f32 to vector<8x128xf32>
    %25 = arith.maximumf %23, %24 : vector<8x128xf32>
    %26 = arith.truncf %25 : vector<8x128xf32> to vector<8x128xbf16>
    %c0_16 = arith.constant 0 : index
    %c0_17 = arith.constant 0 : index
    %27 = vector.load %arg6[%c0_16, %c0_17] : memref<128x128xbf16, #tpu.memory_space<vmem>>, vector<128x128xbf16>
    %cst_18 = arith.constant dense<0.000000e+00> : vector<8x128xf32>
    %28 = tpu.matmul %26, %27, %cst_18 {dimension_numbers = #tpu.dot_dimension_numbers<[1], [0], [0], [1], [0, 0, 1, 1], [], []>} : vector<8x128xbf16>, vector<128x128xbf16>, vector<8x128xf32> -> vector<8x128xf32>
    %c4 = arith.constant 4 : index
    %c0_19 = arith.constant 0 : index
    %29 = vector.load %arg8[%c4, %c0_19] : memref<8x1024xf32, #tpu.memory_space<vmem>>, vector<1x128xf32>
    %30 = vector.broadcast %29 : vector<1x128xf32> to vector<8x128xf32>
    %31 = arith.addf %28, %30 : vector<8x128xf32>
    %cst_20 = arith.constant 0.000000e+00 : f32
    %32 = vector.broadcast %cst_20 : f32 to vector<8x128xf32>
    %33 = arith.maximumf %31, %32 : vector<8x128xf32>
    %34 = arith.truncf %33 : vector<8x128xf32> to vector<8x128xbf16>
    %c0_21 = arith.constant 0 : index
    %c0_22 = arith.constant 0 : index
    %35 = vector.load %arg3[%c0_21, %c0_22] : memref<512x128xbf16, #tpu.memory_space<vmem>>, vector<512x128xbf16>
    %cst_23 = arith.constant dense<0.000000e+00> : vector<8x128xf32>
    %36 = tpu.matmul %9, %35, %cst_23 {dimension_numbers = #tpu.dot_dimension_numbers<[1], [0], [0], [1], [0, 0, 1, 1], [], []>} : vector<8x512xbf16>, vector<512x128xbf16>, vector<8x128xf32> -> vector<8x128xf32>
    %c0_24 = arith.constant 0 : index
    %c0_25 = arith.constant 0 : index
    %37 = vector.load %arg7[%c0_24, %c0_25] : memref<128x128xbf16, #tpu.memory_space<vmem>>, vector<128x128xbf16>
    %cst_26 = arith.constant dense<0.000000e+00> : vector<8x128xf32>
    %38 = tpu.matmul %34, %37, %cst_26 {dimension_numbers = #tpu.dot_dimension_numbers<[1], [0], [0], [1], [0, 0, 1, 1], [], []>} : vector<8x128xbf16>, vector<128x128xbf16>, vector<8x128xf32> -> vector<8x128xf32>
    %39 = arith.addf %36, %38 : vector<8x128xf32>
    %c1 = arith.constant 1 : index
    %c0_27 = arith.constant 0 : index
    %40 = vector.load %arg8[%c1, %c0_27] : memref<8x1024xf32, #tpu.memory_space<vmem>>, vector<1x128xf32>
    %41 = vector.broadcast %40 : vector<1x128xf32> to vector<8x128xf32>
    %42 = arith.addf %39, %41 : vector<8x128xf32>
    %c0_28 = arith.constant 0 : index
    %c0_29 = arith.constant 0 : index
    %43 = vector.load %arg9[%c0_28, %c0_29] : memref<8x128xf32, #tpu.memory_space<vmem>>, vector<8x128xf32>
    tpu.vector_store %arg9[%c0_28, %c0_29], %42 {strides = array<i32>} : memref<8x128xf32, #tpu.memory_space<vmem>>, vector<8x128xf32>,
    return
  }
  func.func @transform_0(%arg0: i32) -> (i32, i32) {
    %c0_i32 = arith.constant 0 : i32
    %c0_i32_0 = arith.constant 0 : i32
    return %arg0, %c0_i32 : i32, i32
  }
  func.func @transform_1(%arg0: i32) -> (i32, i32) {
    %c0_i32 = arith.constant 0 : i32
    %c0_i32_0 = arith.constant 0 : i32
    %c0_i32_1 = arith.constant 0 : i32
    return %c0_i32, %c0_i32_0 : i32, i32
  }
  func.func @transform_2(%arg0: i32) -> (i32, i32) {
    %c0_i32 = arith.constant 0 : i32
    %c0_i32_0 = arith.constant 0 : i32
    %c0_i32_1 = arith.constant 0 : i32
    return %c0_i32, %c0_i32_0 : i32, i32
  }
  func.func @transform_3(%arg0: i32) -> (i32, i32) {
    %c0_i32 = arith.constant 0 : i32
    %c0_i32_0 = arith.constant 0 : i32
    %c0_i32_1 = arith.constant 0 : i32
    return %c0_i32, %c0_i32_0 : i32, i32
  }
  func.func @transform_4(%arg0: i32) -> (i32, i32) {
    %c0_i32 = arith.constant 0 : i32
    %c0_i32_0 = arith.constant 0 : i32
    %c0_i32_1 = arith.constant 0 : i32
    return %c0_i32, %c0_i32_0 : i32, i32
  }
  func.func @transform_5(%arg0: i32) -> (i32, i32) {
    %c0_i32 = arith.constant 0 : i32
    %c0_i32_0 = arith.constant 0 : i32
    %c0_i32_1 = arith.constant 0 : i32
    return %c0_i32, %c0_i32_0 : i32, i32
  }
  func.func @transform_6(%arg0: i32) -> (i32, i32) {
    %c0_i32 = arith.constant 0 : i32
    %c0_i32_0 = arith.constant 0 : i32
    %c0_i32_1 = arith.constant 0 : i32
    return %c0_i32, %c0_i32_0 : i32, i32
  }
  func.func @transform_7(%arg0: i32) -> (i32, i32) {
    %c0_i32 = arith.constant 0 : i32
    %c0_i32_0 = arith.constant 0 : i32
    %c0_i32_1 = arith.constant 0 : i32
    return %c0_i32, %c0_i32_0 : i32, i32
  }
  func.func @transform_8(%arg0: i32) -> (i32, i32) {
    %c0_i32 = arith.constant 0 : i32
    %c0_i32_0 = arith.constant 0 : i32
    return %arg0, %c0_i32 : i32, i32
  }
}

</mosaic_0001>

<bundles_post_ra>
// kernel: xraynet_forward.1
= control target key start
LH: loop header
LB: loop body
LE: loop exit
PB: predicated region body
PF: predicated region fallthrough
CT: control target
= control target key end

     0   :  { %vm6064_vm0 = vmmov 0   ;;  %s8201_s1 = inlined_call_operand.vmem [shape: bf16[1024,1024], index: 1, kind: input, shape index: {}]   ;;  %s8202_s0 = inlined_call_operand.vmem [shape: bf16[8,1024], index: 0, kind: input, shape index: {}]   ;;  %s8203_s3 = inlined_call_operand.vmem [shape: bf16[512,256], index: 3, kind: input, shape index: {}]   ;;  %s8204_s2 = inlined_call_operand.vmem [shape: bf16[512,128], index: 2, kind: input, shape index: {}]   ;;  %s8205_s4 = inlined_call_operand.vmem [shape: bf16[256,128], index: 4, kind: input, shape index: {}]   ;;  %s8206_s7 = inlined_call_operand.vmem [shape: f32[8,1024], index: 7, kind: input, shape index: {}]   ;;  %s8207_s5 = inlined_call_operand.vmem [shape: bf16[128,128], index: 5, kind: input, shape index: {}]   ;;  %s8208_s6 = inlined_call_operand.vmem [shape: bf16[128,128], index: 6, kind: input, shape index: {}]   ;;  %s8209_s8 = inlined_call_operand.vmem [shape: f32[8,128], index: 8, kind: output, shape index: {}]  }
   0x1   :  { %v34_v0 = vld [vmem:[%s8201_s1] sm:$0xff]  ;;  %v35_v2 = vld [vmem:[%s8201_s1 + $0x8] sm:$0xff] }
   0x2   :  { %v38_v1 = vld [vmem:[%s8201_s1 + $0x20] sm:$0xff]  ;;  %v39_v4 = vld [vmem:[%s8201_s1 + $0x28] sm:$0xff] }
   0x3   :  { %v5067_v3 = vcombine.high %v34_v0, %v38_v1  ;;  %v5066_v5 = vcombine.low %v34_v0, %v38_v1  ;;  %v42_v6 = vld [vmem:[%s8201_s1 + $0x40] sm:$0xff]  ;;  %v5069_v8 = vcombine.high %v35_v2, %v39_v4  ;;  %v5068_v9 = vcombine.low %v35_v2, %v39_v4  ;;  %v43_v11 = vld [vmem:[%s8201_s1 + $0x48] sm:$0xff] }
   0x4   :  { %v46_v7 = vld [vmem:[%s8201_s1 + $0x60] sm:$0xff]  ;;  %v47_v12 = vld [vmem:[%s8201_s1 + $0x68] sm:$0xff] }
   0x5   :  { %v5075_v10 = vcombine.high %v42_v6, %v46_v7  ;;  %v50_v13 = vld [vmem:[%s8201_s1 + $0x80] sm:$0xff]  ;;  %3178 = vmatprep.subr.bf16.mxu0 %v5067_v3  ;;  %v5077_v14 = vcombine.high %v43_v11, %v47_v12  ;;  %v51_v16 = vld [vmem:[%s8201_s1 + $0x88] sm:$0xff]  ;;  %3342 = vmatprep.subr.bf16.mxu1 %v5069_v8  ;;  %v5074_v18 = vcombine.low %v42_v6, %v46_v7 }
   0x6   :  { %v54_v15 = vld [vmem:[%s8201_s1 + $0xa0] sm:$0xff]  ;;  %v55_v17 = vld [vmem:[%s8201_s1 + $0xa8] sm:$0xff]  ;;  %3179 = vmatpush1.bf16.msra.mxu0 %v5066_v5  ;;  %3343 = vmatpush1.bf16.msra.mxu1 %v5068_v9  ;;  %v5076_v19 = vcombine.low %v43_v11, %v47_v12 }
   0x7   :  { %3180 = vmatprep.subr.bf16.mxu0 %v5075_v10  ;;  %v5083_v20 = vcombine.high %v50_v13, %v54_v15  ;;  %3344 = vmatprep.subr.bf16.mxu1 %v5077_v14  ;;  %v5085_v21 = vcombine.high %v51_v16, %v55_v17  ;;  %v58_v22 = vld [vmem:[%s8201_s1 + $0xc0] sm:$0xff]  ;;  %v59_v24 = vld [vmem:[%s8201_s1 + $0xc8] sm:$0xff]  ;;  %v5082_v26 = vcombine.low %v50_v13, %v54_v15 }
   0x8   :  { %v62_v23 = vld [vmem:[%s8201_s1 + $0xe0] sm:$0xff]  ;;  %v63_v25 = vld [vmem:[%s8201_s1 + $0xe8] sm:$0xff]  ;;  %v5084_v27 = vcombine.low %v51_v16, %v55_v17 }
   0x9   :  { %v5091_v28 = vcombine.high %v58_v22, %v62_v23  ;;  %v5093_v29 = vcombine.high %v59_v24, %v63_v25  ;;  %v66_v30 = vld [vmem:[%s8201_s1 + $0x100] sm:$0xff]  ;;  %v67_v32 = vld [vmem:[%s8201_s1 + $0x108] sm:$0xff]  ;;  %v5090_v34 = vcombine.low %v58_v22, %v62_v23  ;;  %v5092_v35 = vcombine.low %v59_v24, %v63_v25 }
   0xa   :  { %3181 = vmatpush1.bf16.msra.mxu0 %v5074_v18  ;;  %3345 = vmatpush1.bf16.msra.mxu1 %v5076_v19  ;;  %v70_v31 = vld [vmem:[%s8201_s1 + $0x120] sm:$0xff]  ;;  %v71_v33 = vld [vmem:[%s8201_s1 + $0x128] sm:$0xff] }
   0xb   :  { %3182 = vmatprep.subr.bf16.mxu0 %v5083_v20  ;;  %3346 = vmatprep.subr.bf16.mxu1 %v5085_v21  ;;  %v5099_v36 = vcombine.high %v66_v30, %v70_v31  ;;  %v5101_v37 = vcombine.high %v67_v32, %v71_v33  ;;  %v74_v38 = vld [vmem:[%s8201_s1 + $0x140] sm:$0xff]  ;;  %v75_v40 = vld [vmem:[%s8201_s1 + $0x148] sm:$0xff]  ;;  %v5098_v42 = vcombine.low %v66_v30, %v70_v31 }
   0xc   :  { %v78_v39 = vld [vmem:[%s8201_s1 + $0x160] sm:$0xff]  ;;  %v79_v41 = vld [vmem:[%s8201_s1 + $0x168] sm:$0xff]  ;;  %v5100_v43 = vcombine.low %v67_v32, %v71_v33 }
   0xd   :  { %v5107_v44 = vcombine.high %v74_v38, %v78_v39  ;;  %v5109_v45 = vcombine.high %v75_v40, %v79_v41  ;;  %v82_v46 = vld [vmem:[%s8201_s1 + $0x180] sm:$0xff]  ;;  %v83_v48 = vld [vmem:[%s8201_s1 + $0x188] sm:$0xff]  ;;  %v5106_v50 = vcombine.low %v74_v38, %v78_v39  ;;  %v5108_v51 = vcombine.low %v75_v40, %v79_v41 }
   0xe   :  { %3183 = vmatpush1.bf16.msra.mxu0 %v5082_v26  ;;  %3347 = vmatpush1.bf16.msra.mxu1 %v5084_v27  ;;  %v86_v47 = vld [vmem:[%s8201_s1 + $0x1a0] sm:$0xff]  ;;  %v87_v49 = vld [vmem:[%s8201_s1 + $0x1a8] sm:$0xff] }
   0xf   :  { %3184 = vmatprep.subr.bf16.mxu0 %v5091_v28  ;;  %3348 = vmatprep.subr.bf16.mxu1 %v5093_v29  ;;  %v5115_v52 = vcombine.high %v82_v46, %v86_v47  ;;  %v6197_v53 = vld [vmem:[%s8202_s0] sm:$0xff]  ;;  %v5117_v54 = vcombine.high %v83_v48, %v87_v49  ;;  %v91_v58 = vld [vmem:[%s8201_s1 + $0x1c8] sm:$0xff]  ;;  %v5114_v60 = vcombine.low %v82_v46, %v86_v47 }
  0x10   :  { %v90_v55 = vld [vmem:[%s8201_s1 + $0x1c0] sm:$0xff]  ;;  %v6207_v57 = vcombine.high %v6197_v53, %v6197_v53  ;;  %v95_v59 = vld [vmem:[%s8201_s1 + $0x1e8] sm:$0xff]  ;;  %v5116_v61 = vcombine.low %v83_v48, %v87_v49 }
  0x11   :  { %v94_v56 = vld [vmem:[%s8201_s1 + $0x1e0] sm:$0xff]  ;;  %v5125_v63 = vcombine.high %v91_v58, %v95_v59  ;;  %v99_v2 = vld [vmem:[%s8201_s1 + $0x208] sm:$0xff]  ;;  %v5124_v5 = vcombine.low %v91_v58, %v95_v59 }
  0x12   :  { %3185 = vmatpush1.bf16.msra.mxu0 %v5090_v34  ;;  %3349 = vmatpush1.bf16.msra.mxu1 %v5092_v35  ;;  %v5123_v62 = vcombine.high %v90_v55, %v94_v56  ;;  %v98_v0 = vld [vmem:[%s8201_s1 + $0x200] sm:$0xff]  ;;  %v103_v3 = vld [vmem:[%s8201_s1 + $0x228] sm:$0xff]  ;;  %v5122_v4 = vcombine.low %v90_v55, %v94_v56 }
  0x13   :  { %3186 = vmatprep.subr.bf16.mxu0 %v5099_v36  ;;  %3350 = vmatprep.subr.bf16.mxu1 %v5101_v37  ;;  %v102_v1 = vld [vmem:[%s8201_s1 + $0x220] sm:$0xff]  ;;  %v5133_v7 = vcombine.high %v99_v2, %v103_v3  ;;  %v107_v10 = vld [vmem:[%s8201_s1 + $0x248] sm:$0xff]  ;;  %v5132_v13 = vcombine.low %v99_v2, %v103_v3 }
  0x14   :  { %3210 = vmatprep.mubr.bf16.mxu0 %v6207_v57  ;;  %3374 = vmatprep.mubr.bf16.mxu1 %v6207_v57  ;;  %v5131_v6 = vcombine.high %v98_v0, %v102_v1  ;;  %v106_v8 = vld [vmem:[%s8201_s1 + $0x240] sm:$0xff]  ;;  %v111_v11 = vld [vmem:[%s8201_s1 + $0x268] sm:$0xff]  ;;  %v5130_v12 = vcombine.low %v98_v0, %v102_v1 }
  0x15   :  { %v110_v9 = vld [vmem:[%s8201_s1 + $0x260] sm:$0xff]  ;;  %v5141_v15 = vcombine.high %v107_v10, %v111_v11  ;;  %v115_v18 = vld [vmem:[%s8201_s1 + $0x288] sm:$0xff]  ;;  %v5140_v21 = vcombine.low %v107_v10, %v111_v11 }
  0x16   :  { %3187 = vmatpush1.bf16.msra.mxu0 %v5098_v42  ;;  %3351 = vmatpush1.bf16.msra.mxu1 %v5100_v43  ;;  %v5139_v14 = vcombine.high %v106_v8, %v110_v9  ;;  %v114_v16 = vld [vmem:[%s8201_s1 + $0x280] sm:$0xff]  ;;  %v119_v19 = vld [vmem:[%s8201_s1 + $0x2a8] sm:$0xff]  ;;  %v5138_v20 = vcombine.low %v106_v8, %v110_v9 }
  0x17   :  { %3188 = vmatprep.subr.bf16.mxu0 %v5107_v44  ;;  %3352 = vmatprep.subr.bf16.mxu1 %v5109_v45  ;;  %v118_v17 = vld [vmem:[%s8201_s1 + $0x2a0] sm:$0xff]  ;;  %v5149_v23 = vcombine.high %v115_v18, %v119_v19  ;;  %v123_v26 = vld [vmem:[%s8201_s1 + $0x2c8] sm:$0xff]  ;;  %v5148_v29 = vcombine.low %v115_v18, %v119_v19 }
  0x18   :  { %v5147_v22 = vcombine.high %v114_v16, %v118_v17  ;;  %v122_v24 = vld [vmem:[%s8201_s1 + $0x2c0] sm:$0xff]  ;;  %v127_v27 = vld [vmem:[%s8201_s1 + $0x2e8] sm:$0xff]  ;;  %v5146_v28 = vcombine.low %v114_v16, %v118_v17 }
  0x19   :  { %v126_v25 = vld [vmem:[%s8201_s1 + $0x2e0] sm:$0xff]  ;;  %v5157_v31 = vcombine.high %v123_v26, %v127_v27  ;;  %v131_v34 = vld [vmem:[%s8201_s1 + $0x308] sm:$0xff]  ;;  %v5156_v37 = vcombine.low %v123_v26, %v127_v27 }
  0x1a   :  { %3189 = vmatpush1.bf16.msra.mxu0 %v5106_v50  ;;  %3353 = vmatpush1.bf16.msra.mxu1 %v5108_v51  ;;  %v5155_v30 = vcombine.high %v122_v24, %v126_v25  ;;  %v130_v32 = vld [vmem:[%s8201_s1 + $0x300] sm:$0xff]  ;;  %v135_v35 = vld [vmem:[%s8201_s1 + $0x328] sm:$0xff]  ;;  %v5154_v36 = vcombine.low %v122_v24, %v126_v25 }
  0x1b   :  { %3190 = vmatprep.subr.bf16.mxu0 %v5115_v52  ;;  %3354 = vmatprep.subr.bf16.mxu1 %v5117_v54  ;;  %v134_v33 = vld [vmem:[%s8201_s1 + $0x320] sm:$0xff]  ;;  %v5165_v39 = vcombine.high %v131_v34, %v135_v35  ;;  %v139_v42 = vld [vmem:[%s8201_s1 + $0x348] sm:$0xff]  ;;  %v5164_v45 = vcombine.low %v131_v34, %v135_v35 }
  0x1c   :  { %v5163_v38 = vcombine.high %v130_v32, %v134_v33  ;;  %v138_v40 = vld [vmem:[%s8201_s1 + $0x340] sm:$0xff]  ;;  %v143_v43 = vld [vmem:[%s8201_s1 + $0x368] sm:$0xff]  ;;  %v5162_v44 = vcombine.low %v130_v32, %v134_v33 }
  0x1d   :  { %v142_v41 = vld [vmem:[%s8201_s1 + $0x360] sm:$0xff]  ;;  %v5173_v47 = vcombine.high %v139_v42, %v143_v43  ;;  %v147_v50 = vld [vmem:[%s8201_s1 + $0x388] sm:$0xff]  ;;  %v5172_v54 = vcombine.low %v139_v42, %v143_v43 }
  0x1e   :  { %3191 = vmatpush1.bf16.msra.mxu0 %v5114_v60  ;;  %3355 = vmatpush1.bf16.msra.mxu1 %v5116_v61  ;;  %v5171_v46 = vcombine.high %v138_v40, %v142_v41  ;;  %v146_v48 = vld [vmem:[%s8201_s1 + $0x380] sm:$0xff]  ;;  %v151_v51 = vld [vmem:[%s8201_s1 + $0x3a8] sm:$0xff]  ;;  %v5170_v52 = vcombine.low %v138_v40, %v142_v41 }
  0x1f   :  { %3192 = vmatprep.subr.bf16.mxu0 %v5123_v62  ;;  %3356 = vmatprep.subr.bf16.mxu1 %v5125_v63  ;;  %v150_v49 = vld [vmem:[%s8201_s1 + $0x3a0] sm:$0xff]  ;;  %v5181_v56 = vcombine.high %v147_v50, %v151_v51  ;;  %v155_v60 = vld [vmem:[%s8201_s1 + $0x3c8] sm:$0xff]  ;;  %v5180_v63 = vcombine.low %v147_v50, %v151_v51 }
  0x20   :  { %v5179_v55 = vcombine.high %v146_v48, %v150_v49  ;;  %v154_v58 = vld [vmem:[%s8201_s1 + $0x3c0] sm:$0xff]  ;;  %v159_v61 = vld [vmem:[%s8201_s1 + $0x3e8] sm:$0xff]  ;;  %v5178_v62 = vcombine.low %v146_v48, %v150_v49 }
  0x21   :  { %v158_v59 = vld [vmem:[%s8201_s1 + $0x3e0] sm:$0xff]  ;;  %v5189_v1 = vcombine.high %v155_v60, %v159_v61 }
  0x22   :  { %3193 = vmatpush1.bf16.msra.mxu0 %v5122_v4  ;;  %3357 = vmatpush1.bf16.msra.mxu1 %v5124_v5  ;;  %v5187_v0 = vcombine.high %v154_v58, %v158_v59  ;;  %v162_v2 = vld [vmem:[%s8201_s1 + $0x400] sm:$0xff]  ;;  %v163_v4 = vld [vmem:[%s8201_s1 + $0x408] sm:$0xff] }
  0x23   :  { %3194 = vmatprep.subr.bf16.mxu0 %v5131_v6  ;;  %3358 = vmatprep.subr.bf16.mxu1 %v5133_v7  ;;  %v166_v3 = vld [vmem:[%s8201_s1 + $0x420] sm:$0xff]  ;;  %v167_v5 = vld [vmem:[%s8201_s1 + $0x428] sm:$0xff]  ;;  %v5186_v6 = vcombine.low %v154_v58, %v158_v59  ;;  %v5188_v7 = vcombine.low %v155_v60, %v159_v61 }
  0x24   :  { %v5195_v8 = vcombine.high %v162_v2, %v166_v3  ;;  %v5197_v9 = vcombine.high %v163_v4, %v167_v5  ;;  %v170_v10 = vld [vmem:[%s8201_s1 + $0x440] sm:$0xff]  ;;  %v5194_v16 = vcombine.low %v162_v2, %v166_v3  ;;  %v5196_v17 = vcombine.low %v163_v4, %v167_v5 }
  0x25   :  { %v174_v11 = vld [vmem:[%s8201_s1 + $0x460] sm:$0xff] }
  0x26   :  { %3195 = vmatpush1.bf16.msra.mxu0 %v5130_v12  ;;  %3359 = vmatpush1.bf16.msra.mxu1 %v5132_v13  ;;  %v6333_v12 = vcombine.low %v6197_v53, %v6197_v53  ;;  %v171_v13 = vld [vmem:[%s8201_s1 + $0x448] sm:$0xff]  ;;  %v5203_v53 = vcombine.high %v170_v10, %v174_v11  ;;  %v178_v19 = vld [vmem:[%s8201_s1 + $0x480] sm:$0xff]  ;;  %v5202_v24 = vcombine.low %v170_v10, %v174_v11 }
  0x27   :  { %3196 = vmatprep.subr.bf16.mxu0 %v5139_v14  ;;  %3360 = vmatprep.subr.bf16.mxu1 %v5141_v15  ;;  %v175_v14 = vld [vmem:[%s8201_s1 + $0x468] sm:$0xff] }
  0x28   :  { %v6344_v15 = vld [vmem:[%s8202_s0 + $0x8] sm:$0xff]  ;;  %v5205_v18 = vcombine.high %v171_v13, %v175_v14  ;;  %v5204_v25 = vcombine.low %v171_v13, %v175_v14 }
  0x2a   :  { %3197 = vmatpush1.bf16.msra.mxu0 %v5138_v20  ;;  %3361 = vmatpush1.bf16.msra.mxu1 %v5140_v21  ;;  %v182_v20 = vld [vmem:[%s8201_s1 + $0x4a0] sm:$0xff]  ;;  %v6354_v21 = vcombine.high %v6344_v15, %v6344_v15 }
  0x2b   :  { %3198 = vmatprep.subr.bf16.mxu0 %v5147_v22  ;;  %3362 = vmatprep.subr.bf16.mxu1 %v5149_v23  ;;  %v179_v22 = vld [vmem:[%s8201_s1 + $0x488] sm:$0xff]  ;;  %v5211_v26 = vcombine.high %v178_v19, %v182_v20  ;;  %v5210_v32 = vcombine.low %v178_v19, %v182_v20 }
  0x2c   :  { %v183_v23 = vld [vmem:[%s8201_s1 + $0x4a8] sm:$0xff] }
  0x2d   :  { %v5213_v27 = vcombine.high %v179_v22, %v183_v23  ;;  %v5212_v33 = vcombine.low %v179_v22, %v183_v23 }
  0x2e   :  { %3199 = vmatpush1.bf16.msra.mxu0 %v5146_v28  ;;  %3363 = vmatpush1.bf16.msra.mxu1 %v5148_v29  ;;  %v186_v28 = vld [vmem:[%s8201_s1 + $0x4c0] sm:$0xff] }
  0x2f   :  { %3200 = vmatprep.subr.bf16.mxu0 %v5155_v30  ;;  %3364 = vmatprep.subr.bf16.mxu1 %v5157_v31  ;;  %v190_v29 = vld [vmem:[%s8201_s1 + $0x4e0] sm:$0xff]  ;;  %v187_v30 = vld [vmem:[%s8201_s1 + $0x4c8] sm:$0xff] }
  0x30   :  { %v191_v31 = vld [vmem:[%s8201_s1 + $0x4e8] sm:$0xff]  ;;  %v5219_v34 = vcombine.high %v186_v28, %v190_v29  ;;  %v5218_v40 = vcombine.low %v186_v28, %v190_v29 }
  0x31   :  { %v5221_v35 = vcombine.high %v187_v30, %v191_v31  ;;  %v5220_v41 = vcombine.low %v187_v30, %v191_v31 }
  0x32   :  { %3201 = vmatpush1.bf16.msra.mxu0 %v5154_v36  ;;  %3365 = vmatpush1.bf16.msra.mxu1 %v5156_v37  ;;  %v194_v36 = vld [vmem:[%s8201_s1 + $0x500] sm:$0xff] }
  0x33   :  { %3202 = vmatprep.subr.bf16.mxu0 %v5163_v38  ;;  %3366 = vmatprep.subr.bf16.mxu1 %v5165_v39  ;;  %v198_v37 = vld [vmem:[%s8201_s1 + $0x520] sm:$0xff]  ;;  %v195_v38 = vld [vmem:[%s8201_s1 + $0x508] sm:$0xff] }
  0x34   :  { %v199_v39 = vld [vmem:[%s8201_s1 + $0x528] sm:$0xff]  ;;  %v5227_v42 = vcombine.high %v194_v36, %v198_v37  ;;  %v5226_v48 = vcombine.low %v194_v36, %v198_v37 }
  0x35   :  { %v5229_v43 = vcombine.high %v195_v38, %v199_v39  ;;  %v5228_v49 = vcombine.low %v195_v38, %v199_v39 }
  0x36   :  { %3203 = vmatpush1.bf16.msra.mxu0 %v5162_v44  ;;  %3367 = vmatpush1.bf16.msra.mxu1 %v5164_v45  ;;  %v202_v44 = vld [vmem:[%s8201_s1 + $0x540] sm:$0xff] }
  0x37   :  { %3204 = vmatprep.subr.bf16.mxu0 %v5171_v46  ;;  %3368 = vmatprep.subr.bf16.mxu1 %v5173_v47  ;;  %v206_v45 = vld [vmem:[%s8201_s1 + $0x560] sm:$0xff]  ;;  %v203_v46 = vld [vmem:[%s8201_s1 + $0x548] sm:$0xff] }
  0x38   :  { %v207_v47 = vld [vmem:[%s8201_s1 + $0x568] sm:$0xff]  ;;  %v5235_v50 = vcombine.high %v202_v44, %v206_v45  ;;  %v5234_v58 = vcombine.low %v202_v44, %v206_v45 }
  0x39   :  { %v5237_v51 = vcombine.high %v203_v46, %v207_v47  ;;  %v5236_v59 = vcombine.low %v203_v46, %v207_v47 }
  0x3a   :  { %3205 = vmatpush1.bf16.msra.mxu0 %v5170_v52  ;;  %3369 = vmatpush1.bf16.msra.mxu1 %v5172_v54  ;;  %v210_v52 = vld [vmem:[%s8201_s1 + $0x580] sm:$0xff] }
  0x3b   :  { %3206 = vmatprep.subr.bf16.mxu0 %v5179_v55  ;;  %3370 = vmatprep.subr.bf16.mxu1 %v5181_v56  ;;  %v214_v54 = vld [vmem:[%s8201_s1 + $0x5a0] sm:$0xff]  ;;  %v211_v55 = vld [vmem:[%s8201_s1 + $0x588] sm:$0xff] }
  0x3c   :  { %v215_v56 = vld [vmem:[%s8201_s1 + $0x5a8] sm:$0xff]  ;;  %v5243_v60 = vcombine.high %v210_v52, %v214_v54  ;;  %v5242_v2 = vcombine.low %v210_v52, %v214_v54 }
  0x3d   :  { %v5245_v61 = vcombine.high %v211_v55, %v215_v56  ;;  %v5244_v3 = vcombine.low %v211_v55, %v215_v56 }
  0x3e   :  { %3207 = vmatpush1.bf16.msra.mxu0 %v5178_v62  ;;  %3371 = vmatpush1.bf16.msra.mxu1 %v5180_v63  ;;  %v218_v62 = vld [vmem:[%s8201_s1 + $0x5c0] sm:$0xff] }
  0x3f   :  { %3208 = vmatprep.subr.bf16.mxu0 %v5187_v0  ;;  %3372 = vmatprep.subr.bf16.mxu1 %v5189_v1  ;;  %v222_v63 = vld [vmem:[%s8201_s1 + $0x5e0] sm:$0xff]  ;;  %v219_v0 = vld [vmem:[%s8201_s1 + $0x5c8] sm:$0xff] }
  0x40   :  { %v223_v1 = vld [vmem:[%s8201_s1 + $0x5e8] sm:$0xff]  ;;  %v5251_v4 = vcombine.high %v218_v62, %v222_v63  ;;  %v5250_v10 = vcombine.low %v218_v62, %v222_v63 }
  0x41   :  { %v5253_v5 = vcombine.high %v219_v0, %v223_v1  ;;  %v5252_v11 = vcombine.low %v219_v0, %v223_v1 }
  0x42   :  { %3209 = vmatpush1.bf16.msra.mxu0 %v5186_v6  ;;  %3373 = vmatpush1.bf16.msra.mxu1 %v5188_v7  ;;  %v226_v6 = vld [vmem:[%s8201_s1 + $0x600] sm:$0xff] }
  0x43   :  { %3219 = vmatprep.subr.bf16.mxu0 %v5195_v8  ;;  %3383 = vmatprep.subr.bf16.mxu1 %v5197_v9  ;;  %v230_v7 = vld [vmem:[%s8201_s1 + $0x620] sm:$0xff]  ;;  %v227_v8 = vld [vmem:[%s8201_s1 + $0x608] sm:$0xff] }
  0x44   :  { %v231_v9 = vld [vmem:[%s8201_s1 + $0x628] sm:$0xff]  ;;  %v5259_v13 = vcombine.high %v226_v6, %v230_v7  ;;  %v5258_v19 = vcombine.low %v226_v6, %v230_v7 }
  0x45   :  { %3211 = vmatmul.mubr.bf16.vlgmr.msra.gmra.mrb[0].mxu0 %v6333_v12  ;;  %3375 = vmatmul.mubr.bf16.vlgmr.msra.gmra.mrb[0].mxu1 %v6333_v12  ;;  %v5261_v14 = vcombine.high %v227_v8, %v231_v9  ;;  %v5260_v20 = vcombine.low %v227_v8, %v231_v9 }
  0x46   :  { %3220 = vmatpush1.bf16.msra.mxu0 %v5194_v16  ;;  %3384 = vmatpush1.bf16.msra.mxu1 %v5196_v17  ;;  %v234_v16 = vld [vmem:[%s8201_s1 + $0x640] sm:$0xff] }
  0x47   :  { %3221 = vmatprep.subr.bf16.mxu0 %v5203_v53  ;;  %3385 = vmatprep.subr.bf16.mxu1 %v5205_v18  ;;  %v238_v17 = vld [vmem:[%s8201_s1 + $0x660] sm:$0xff]  ;;  %v235_v53 = vld [vmem:[%s8201_s1 + $0x648] sm:$0xff] }
  0x48   :  { %3251 = vmatprep.mubr.bf16.mxu0 %v6354_v21  ;;  %3415 = vmatprep.mubr.bf16.mxu1 %v6354_v21  ;;  %v239_v18 = vld [vmem:[%s8201_s1 + $0x668] sm:$0xff]  ;;  %v5267_v22 = vcombine.high %v234_v16, %v238_v17  ;;  %v5266_v28 = vcombine.low %v234_v16, %v238_v17 }
  0x49   :  { %v5269_v23 = vcombine.high %v235_v53, %v239_v18  ;;  %v5268_v29 = vcombine.low %v235_v53, %v239_v18 }
  0x4a   :  { %3222 = vmatpush1.bf16.msra.mxu0 %v5202_v24  ;;  %3386 = vmatpush1.bf16.msra.mxu1 %v5204_v25  ;;  %v242_v24 = vld [vmem:[%s8201_s1 + $0x680] sm:$0xff] }
  0x4b   :  { %3223 = vmatprep.subr.bf16.mxu0 %v5211_v26  ;;  %3387 = vmatprep.subr.bf16.mxu1 %v5213_v27  ;;  %v246_v25 = vld [vmem:[%s8201_s1 + $0x6a0] sm:$0xff]  ;;  %v243_v26 = vld [vmem:[%s8201_s1 + $0x688] sm:$0xff] }
  0x4c   :  { %v247_v27 = vld [vmem:[%s8201_s1 + $0x6a8] sm:$0xff]  ;;  %v5275_v30 = vcombine.high %v242_v24, %v246_v25  ;;  %v5274_v36 = vcombine.low %v242_v24, %v246_v25  ;;  %v6553_v25 = vld [vmem:[%s8202_s0 + $0x10] sm:$0xff] }
  0x4d   :  { %v5277_v31 = vcombine.high %v243_v26, %v247_v27  ;;  %v5276_v37 = vcombine.low %v243_v26, %v247_v27  ;;  %v303_v24 = vld [vmem:[%s8201_s1 + $0x868] sm:$0xff] }
  0x4e   :  { %3224 = vmatpush1.bf16.msra.mxu0 %v5210_v32  ;;  %3388 = vmatpush1.bf16.msra.mxu1 %v5212_v33  ;;  %v250_v32 = vld [vmem:[%s8201_s1 + $0x6c0] sm:$0xff] }
  0x4f   :  { %3225 = vmatprep.subr.bf16.mxu0 %v5219_v34  ;;  %3389 = vmatprep.subr.bf16.mxu1 %v5221_v35  ;;  %v254_v33 = vld [vmem:[%s8201_s1 + $0x6e0] sm:$0xff]  ;;  %v251_v34 = vld [vmem:[%s8201_s1 + $0x6c8] sm:$0xff] }
  0x50   :  { %v255_v35 = vld [vmem:[%s8201_s1 + $0x6e8] sm:$0xff]  ;;  %v5283_v38 = vcombine.high %v250_v32, %v254_v33  ;;  %v5282_v44 = vcombine.low %v250_v32, %v254_v33 }
  0x51   :  { %v5285_v39 = vcombine.high %v251_v34, %v255_v35  ;;  %v5284_v45 = vcombine.low %v251_v34, %v255_v35  ;;  %v307_v32 = vld [vmem:[%s8201_s1 + $0x888] sm:$0xff] }
  0x52   :  { %3226 = vmatpush1.bf16.msra.mxu0 %v5218_v40  ;;  %3390 = vmatpush1.bf16.msra.mxu1 %v5220_v41  ;;  %v258_v40 = vld [vmem:[%s8201_s1 + $0x700] sm:$0xff]  ;;  %v311_v33 = vld [vmem:[%s8201_s1 + $0x8a8] sm:$0xff] }
  0x53   :  { %3227 = vmatprep.subr.bf16.mxu0 %v5227_v42  ;;  %3391 = vmatprep.subr.bf16.mxu1 %v5229_v43  ;;  %v262_v41 = vld [vmem:[%s8201_s1 + $0x720] sm:$0xff]  ;;  %v259_v42 = vld [vmem:[%s8201_s1 + $0x708] sm:$0xff] }
  0x54   :  { %v263_v43 = vld [vmem:[%s8201_s1 + $0x728] sm:$0xff]  ;;  %v5291_v46 = vcombine.high %v258_v40, %v262_v41  ;;  %v5290_v52 = vcombine.low %v258_v40, %v262_v41 }
  0x55   :  { %v5293_v47 = vcombine.high %v259_v42, %v263_v43  ;;  %v5292_v54 = vcombine.low %v259_v42, %v263_v43  ;;  %v315_v40 = vld [vmem:[%s8201_s1 + $0x8c8] sm:$0xff]  ;;  %v5340_v43 = vcombine.low %v307_v32, %v311_v33 }
  0x56   :  { %3228 = vmatpush1.bf16.msra.mxu0 %v5226_v48  ;;  %3392 = vmatpush1.bf16.msra.mxu1 %v5228_v49  ;;  %v266_v48 = vld [vmem:[%s8201_s1 + $0x740] sm:$0xff]  ;;  %v319_v41 = vld [vmem:[%s8201_s1 + $0x8e8] sm:$0xff] }
  0x57   :  { %3229 = vmatprep.subr.bf16.mxu0 %v5235_v50  ;;  %3393 = vmatprep.subr.bf16.mxu1 %v5237_v51  ;;  %v270_v49 = vld [vmem:[%s8201_s1 + $0x760] sm:$0xff]  ;;  %v267_v50 = vld [vmem:[%s8201_s1 + $0x748] sm:$0xff] }
  0x58   :  { %v271_v51 = vld [vmem:[%s8201_s1 + $0x768] sm:$0xff]  ;;  %v5299_v55 = vcombine.high %v266_v48, %v270_v49  ;;  %v5298_v62 = vcombine.low %v266_v48, %v270_v49 }
  0x59   :  { %v5301_v56 = vcombine.high %v267_v50, %v271_v51  ;;  %v5300_v63 = vcombine.low %v267_v50, %v271_v51  ;;  %v323_v48 = vld [vmem:[%s8201_s1 + $0x908] sm:$0xff]  ;;  %v5348_v51 = vcombine.low %v315_v40, %v319_v41 }
  0x5a   :  { %3230 = vmatpush1.bf16.msra.mxu0 %v5234_v58  ;;  %3394 = vmatpush1.bf16.msra.mxu1 %v5236_v59  ;;  %v274_v58 = vld [vmem:[%s8201_s1 + $0x780] sm:$0xff]  ;;  %v327_v49 = vld [vmem:[%s8201_s1 + $0x928] sm:$0xff] }
  0x5b   :  { %3231 = vmatprep.subr.bf16.mxu0 %v5243_v60  ;;  %3395 = vmatprep.subr.bf16.mxu1 %v5245_v61  ;;  %v278_v59 = vld [vmem:[%s8201_s1 + $0x7a0] sm:$0xff]  ;;  %v275_v60 = vld [vmem:[%s8201_s1 + $0x788] sm:$0xff] }
  0x5c   :  { %v279_v61 = vld [vmem:[%s8201_s1 + $0x7a8] sm:$0xff]  ;;  %v5307_v0 = vcombine.high %v274_v58, %v278_v59  ;;  %v5306_v6 = vcombine.low %v274_v58, %v278_v59 }
  0x5d   :  { %v5309_v1 = vcombine.high %v275_v60, %v279_v61  ;;  %v5308_v7 = vcombine.low %v275_v60, %v279_v61  ;;  %v331_v58 = vld [vmem:[%s8201_s1 + $0x948] sm:$0xff]  ;;  %v5356_v61 = vcombine.low %v323_v48, %v327_v49 }
  0x5e   :  { %3232 = vmatpush1.bf16.msra.mxu0 %v5242_v2  ;;  %3396 = vmatpush1.bf16.msra.mxu1 %v5244_v3  ;;  %v282_v2 = vld [vmem:[%s8201_s1 + $0x7c0] sm:$0xff]  ;;  %v335_v59 = vld [vmem:[%s8201_s1 + $0x968] sm:$0xff] }
  0x5f   :  { %3233 = vmatprep.subr.bf16.mxu0 %v5251_v4  ;;  %3397 = vmatprep.subr.bf16.mxu1 %v5253_v5  ;;  %v286_v3 = vld [vmem:[%s8201_s1 + $0x7e0] sm:$0xff]  ;;  %v283_v4 = vld [vmem:[%s8201_s1 + $0x7c8] sm:$0xff] }
  0x60   :  { %v287_v5 = vld [vmem:[%s8201_s1 + $0x7e8] sm:$0xff]  ;;  %v5315_v8 = vcombine.high %v282_v2, %v286_v3  ;;  %v5314_v16 = vcombine.low %v282_v2, %v286_v3 }
  0x61   :  { %v5317_v9 = vcombine.high %v283_v4, %v287_v5  ;;  %v5316_v17 = vcombine.low %v283_v4, %v287_v5  ;;  %v339_v2 = vld [vmem:[%s8201_s1 + $0x988] sm:$0xff]  ;;  %v5364_v5 = vcombine.low %v331_v58, %v335_v59 }
  0x62   :  { %3234 = vmatpush1.bf16.msra.mxu0 %v5250_v10  ;;  %3398 = vmatpush1.bf16.msra.mxu1 %v5252_v11  ;;  %v290_v10 = vld [vmem:[%s8201_s1 + $0x800] sm:$0xff]  ;;  %v343_v3 = vld [vmem:[%s8201_s1 + $0x9a8] sm:$0xff] }
  0x63   :  { %3235 = vmatprep.subr.bf16.mxu0 %v5259_v13  ;;  %3399 = vmatprep.subr.bf16.mxu1 %v5261_v14  ;;  %v294_v11 = vld [vmem:[%s8201_s1 + $0x820] sm:$0xff]  ;;  %v291_v13 = vld [vmem:[%s8201_s1 + $0x808] sm:$0xff] }
  0x64   :  { %v295_v14 = vld [vmem:[%s8201_s1 + $0x828] sm:$0xff]  ;;  %v5323_v53 = vcombine.high %v290_v10, %v294_v11  ;;  %v5322_v26 = vcombine.low %v290_v10, %v294_v11 }
  0x65   :  { %v5325_v18 = vcombine.high %v291_v13, %v295_v14  ;;  %v5324_v27 = vcombine.low %v291_v13, %v295_v14  ;;  %v347_v10 = vld [vmem:[%s8201_s1 + $0x9c8] sm:$0xff]  ;;  %v5372_v14 = vcombine.low %v339_v2, %v343_v3 }
  0x66   :  { %3236 = vmatpush1.bf16.msra.mxu0 %v5258_v19  ;;  %3400 = vmatpush1.bf16.msra.mxu1 %v5260_v20  ;;  %v298_v19 = vld [vmem:[%s8201_s1 + $0x840] sm:$0xff]  ;;  %v351_v11 = vld [vmem:[%s8201_s1 + $0x9e8] sm:$0xff] }
  0x67   :  { %3237 = vmatprep.subr.bf16.mxu0 %v5267_v22  ;;  %3401 = vmatprep.subr.bf16.mxu1 %v5269_v23  ;;  %v302_v20 = vld [vmem:[%s8201_s1 + $0x860] sm:$0xff]  ;;  %v6542_v22 = vcombine.low %v6344_v15, %v6344_v15  ;;  %v299_v23 = vld [vmem:[%s8201_s1 + $0x848] sm:$0xff] }
  0x68   :  { %v5331_v15 = vcombine.high %v298_v19, %v302_v20  ;;  %v5330_v34 = vcombine.low %v298_v19, %v302_v20  ;;  %v5332_v35 = vcombine.low %v299_v23, %v303_v24  ;;  %v355_v19 = vld [vmem:[%s8201_s1 + $0xa08] sm:$0xff] }
  0x69   :  { %v359_v20 = vld [vmem:[%s8201_s1 + $0xa28] sm:$0xff] }
  0x6a   :  { %3238 = vmatpush1.bf16.msra.mxu0 %v5266_v28  ;;  %3402 = vmatpush1.bf16.msra.mxu1 %v5268_v29  ;;  %v5333_v28 = vcombine.high %v299_v23, %v303_v24  ;;  %v306_v29 = vld [vmem:[%s8201_s1 + $0x880] sm:$0xff]  ;;  %v5380_v24 = vcombine.low %v347_v10, %v351_v11 }
  0x6b   :  { %3239 = vmatprep.subr.bf16.mxu0 %v5275_v30  ;;  %3403 = vmatprep.subr.bf16.mxu1 %v5277_v31  ;;  %v310_v30 = vld [vmem:[%s8201_s1 + $0x8a0] sm:$0xff]  ;;  %v6563_v31 = vcombine.high %v6553_v25, %v6553_v25 }
  0x6c   :  { %v5338_v42 = vcombine.low %v306_v29, %v310_v30 }
  0x6e   :  { %3240 = vmatpush1.bf16.msra.mxu0 %v5274_v36  ;;  %3404 = vmatpush1.bf16.msra.mxu1 %v5276_v37  ;;  %v5339_v36 = vcombine.high %v306_v29, %v310_v30  ;;  %v5341_v37 = vcombine.high %v307_v32, %v311_v33  ;;  %v363_v29 = vld [vmem:[%s8201_s1 + $0xa48] sm:$0xff]  ;;  %v5388_v33 = vcombine.low %v355_v19, %v359_v20 }
  0x6f   :  { %3241 = vmatprep.subr.bf16.mxu0 %v5283_v38  ;;  %3405 = vmatprep.subr.bf16.mxu1 %v5285_v39  ;;  %v314_v38 = vld [vmem:[%s8201_s1 + $0x8c0] sm:$0xff]  ;;  %v367_v30 = vld [vmem:[%s8201_s1 + $0xa68] sm:$0xff] }
  0x70   :  { %v318_v39 = vld [vmem:[%s8201_s1 + $0x8e0] sm:$0xff] }
  0x71   :  { %v5346_v50 = vcombine.low %v314_v38, %v318_v39 }
  0x72   :  { %3242 = vmatpush1.bf16.msra.mxu0 %v5282_v44  ;;  %3406 = vmatpush1.bf16.msra.mxu1 %v5284_v45  ;;  %v5347_v44 = vcombine.high %v314_v38, %v318_v39  ;;  %v5349_v45 = vcombine.high %v315_v40, %v319_v41  ;;  %v371_v38 = vld [vmem:[%s8201_s1 + $0xa88] sm:$0xff]  ;;  %v5396_v41 = vcombine.low %v363_v29, %v367_v30 }
  0x73   :  { %3243 = vmatprep.subr.bf16.mxu0 %v5291_v46  ;;  %3407 = vmatprep.subr.bf16.mxu1 %v5293_v47  ;;  %v322_v46 = vld [vmem:[%s8201_s1 + $0x900] sm:$0xff]  ;;  %v375_v39 = vld [vmem:[%s8201_s1 + $0xaa8] sm:$0xff] }
  0x74   :  { %v326_v47 = vld [vmem:[%s8201_s1 + $0x920] sm:$0xff] }
  0x75   :  { %v5354_v60 = vcombine.low %v322_v46, %v326_v47 }
  0x76   :  { %3244 = vmatpush1.bf16.msra.mxu0 %v5290_v52  ;;  %3408 = vmatpush1.bf16.msra.mxu1 %v5292_v54  ;;  %v5355_v52 = vcombine.high %v322_v46, %v326_v47  ;;  %v5357_v54 = vcombine.high %v323_v48, %v327_v49  ;;  %v379_v46 = vld [vmem:[%s8201_s1 + $0xac8] sm:$0xff]  ;;  %v5404_v49 = vcombine.low %v371_v38, %v375_v39 }
  0x77   :  { %3245 = vmatprep.subr.bf16.mxu0 %v5299_v55  ;;  %3409 = vmatprep.subr.bf16.mxu1 %v5301_v56  ;;  %v330_v55 = vld [vmem:[%s8201_s1 + $0x940] sm:$0xff]  ;;  %v383_v47 = vld [vmem:[%s8201_s1 + $0xae8] sm:$0xff] }
  0x78   :  { %v334_v56 = vld [vmem:[%s8201_s1 + $0x960] sm:$0xff] }
  0x79   :  { %v5362_v4 = vcombine.low %v330_v55, %v334_v56 }
  0x7a   :  { %3246 = vmatpush1.bf16.msra.mxu0 %v5298_v62  ;;  %3410 = vmatpush1.bf16.msra.mxu1 %v5300_v63  ;;  %v5363_v62 = vcombine.high %v330_v55, %v334_v56  ;;  %v5365_v63 = vcombine.high %v331_v58, %v335_v59  ;;  %v387_v55 = vld [vmem:[%s8201_s1 + $0xb08] sm:$0xff]  ;;  %v5412_v59 = vcombine.low %v379_v46, %v383_v47 }
  0x7b   :  { %3247 = vmatprep.subr.bf16.mxu0 %v5307_v0  ;;  %3411 = vmatprep.subr.bf16.mxu1 %v5309_v1  ;;  %v338_v0 = vld [vmem:[%s8201_s1 + $0x980] sm:$0xff]  ;;  %v391_v56 = vld [vmem:[%s8201_s1 + $0xb28] sm:$0xff] }
  0x7c   :  { %v342_v1 = vld [vmem:[%s8201_s1 + $0x9a0] sm:$0xff] }
  0x7d   :  { %v5370_v13 = vcombine.low %v338_v0, %v342_v1 }
  0x7e   :  { %3248 = vmatpush1.bf16.msra.mxu0 %v5306_v6  ;;  %3412 = vmatpush1.bf16.msra.mxu1 %v5308_v7  ;;  %v5371_v6 = vcombine.high %v338_v0, %v342_v1  ;;  %v5373_v7 = vcombine.high %v339_v2, %v343_v3  ;;  %v395_v0 = vld [vmem:[%s8201_s1 + $0xb48] sm:$0xff]  ;;  %v5420_v3 = vcombine.low %v387_v55, %v391_v56 }
  0x7f   :  { %3249 = vmatprep.subr.bf16.mxu0 %v5315_v8  ;;  %3413 = vmatprep.subr.bf16.mxu1 %v5317_v9  ;;  %v346_v8 = vld [vmem:[%s8201_s1 + $0x9c0] sm:$0xff]  ;;  %v399_v1 = vld [vmem:[%s8201_s1 + $0xb68] sm:$0xff] }
  0x80   :  { %v350_v9 = vld [vmem:[%s8201_s1 + $0x9e0] sm:$0xff] }
  0x81   :  { %v5378_v23 = vcombine.low %v346_v8, %v350_v9 }
  0x82   :  { %3250 = vmatpush1.bf16.msra.mxu0 %v5314_v16  ;;  %3414 = vmatpush1.bf16.msra.mxu1 %v5316_v17  ;;  %v5379_v16 = vcombine.high %v346_v8, %v350_v9  ;;  %v5381_v17 = vcombine.high %v347_v10, %v351_v11  ;;  %v403_v8 = vld [vmem:[%s8201_s1 + $0xb88] sm:$0xff]  ;;  %v5428_v11 = vcombine.low %v395_v0, %v399_v1 }
  0x83   :  { %3260 = vmatprep.subr.bf16.mxu0 %v5323_v53  ;;  %3424 = vmatprep.subr.bf16.mxu1 %v5325_v18  ;;  %v354_v53 = vld [vmem:[%s8201_s1 + $0xa00] sm:$0xff]  ;;  %v407_v9 = vld [vmem:[%s8201_s1 + $0xba8] sm:$0xff] }
  0x84   :  { %v358_v18 = vld [vmem:[%s8201_s1 + $0xa20] sm:$0xff] }
  0x85   :  { %3252 = vmatmul.mubr.bf16.vlgmr.msra.gmra.mrb[0].mxu0 %v6542_v22  ;;  %3416 = vmatmul.mubr.bf16.vlgmr.msra.gmra.mrb[0].mxu1 %v6542_v22  ;;  %v5386_v32 = vcombine.low %v354_v53, %v358_v18 }
  0x86   :  { %3261 = vmatpush1.bf16.msra.mxu0 %v5322_v26  ;;  %3425 = vmatpush1.bf16.msra.mxu1 %v5324_v27  ;;  %v5387_v26 = vcombine.high %v354_v53, %v358_v18  ;;  %v5389_v27 = vcombine.high %v355_v19, %v359_v20  ;;  %v411_v53 = vld [vmem:[%s8201_s1 + $0xbc8] sm:$0xff]  ;;  %v5436_v20 = vcombine.low %v403_v8, %v407_v9 }
  0x87   :  { %3262 = vmatprep.subr.bf16.mxu0 %v5331_v15  ;;  %3426 = vmatprep.subr.bf16.mxu1 %v5333_v28  ;;  %v362_v15 = vld [vmem:[%s8201_s1 + $0xa40] sm:$0xff]  ;;  %v415_v18 = vld [vmem:[%s8201_s1 + $0xbe8] sm:$0xff] }
  0x88   :  { %3292 = vmatprep.mubr.bf16.mxu0 %v6563_v31  ;;  %3456 = vmatprep.mubr.bf16.mxu1 %v6563_v31  ;;  %v366_v28 = vld [vmem:[%s8201_s1 + $0xa60] sm:$0xff] }
  0x89   :  { %v5394_v40 = vcombine.low %v362_v15, %v366_v28 }
  0x8a   :  { %3263 = vmatpush1.bf16.msra.mxu0 %v5330_v34  ;;  %3427 = vmatpush1.bf16.msra.mxu1 %v5332_v35  ;;  %v5395_v34 = vcombine.high %v362_v15, %v366_v28  ;;  %v5397_v35 = vcombine.high %v363_v29, %v367_v30  ;;  %v419_v15 = vld [vmem:[%s8201_s1 + $0xc08] sm:$0xff]  ;;  %v5444_v30 = vcombine.low %v411_v53, %v415_v18 }
  0x8b   :  { %3264 = vmatprep.subr.bf16.mxu0 %v5339_v36  ;;  %3428 = vmatprep.subr.bf16.mxu1 %v5341_v37  ;;  %v370_v36 = vld [vmem:[%s8201_s1 + $0xa80] sm:$0xff]  ;;  %v423_v28 = vld [vmem:[%s8201_s1 + $0xc28] sm:$0xff] }
  0x8c   :  { %v374_v37 = vld [vmem:[%s8201_s1 + $0xaa0] sm:$0xff] }
  0x8d   :  { %v5402_v48 = vcombine.low %v370_v36, %v374_v37 }
  0x8e   :  { %3265 = vmatpush1.bf16.msra.mxu0 %v5338_v42  ;;  %3429 = vmatpush1.bf16.msra.mxu1 %v5340_v43  ;;  %v5403_v42 = vcombine.high %v370_v36, %v374_v37  ;;  %v5405_v43 = vcombine.high %v371_v38, %v375_v39  ;;  %v6751_v36 = vcombine.low %v6553_v25, %v6553_v25  ;;  %v427_v37 = vld [vmem:[%s8201_s1 + $0xc48] sm:$0xff]  ;;  %v6762_v39 = vld [vmem:[%s8202_s0 + $0x18] sm:$0xff] }
  0x8f   :  { %3266 = vmatprep.subr.bf16.mxu0 %v5347_v44  ;;  %3430 = vmatprep.subr.bf16.mxu1 %v5349_v45  ;;  %v378_v44 = vld [vmem:[%s8201_s1 + $0xac0] sm:$0xff]  ;;  %v431_v38 = vld [vmem:[%s8201_s1 + $0xc68] sm:$0xff] }
  0x90   :  { %v382_v45 = vld [vmem:[%s8201_s1 + $0xae0] sm:$0xff] }
  0x91   :  { %v5410_v58 = vcombine.low %v378_v44, %v382_v45 }
  0x92   :  { %3267 = vmatpush1.bf16.msra.mxu0 %v5346_v50  ;;  %3431 = vmatpush1.bf16.msra.mxu1 %v5348_v51  ;;  %v5411_v50 = vcombine.high %v378_v44, %v382_v45  ;;  %v5413_v51 = vcombine.high %v379_v46, %v383_v47  ;;  %v438_v44 = vld [vmem:[%s8201_s1 + $0xca0] sm:$0xff]  ;;  %v6772_v45 = vcombine.high %v6762_v39, %v6762_v39  ;;  %v435_v46 = vld [vmem:[%s8201_s1 + $0xc88] sm:$0xff] }
  0x93   :  { %3268 = vmatprep.subr.bf16.mxu0 %v5355_v52  ;;  %3432 = vmatprep.subr.bf16.mxu1 %v5357_v54  ;;  %v386_v52 = vld [vmem:[%s8201_s1 + $0xb00] sm:$0xff]  ;;  %v439_v47 = vld [vmem:[%s8201_s1 + $0xca8] sm:$0xff] }
  0x94   :  { %v390_v54 = vld [vmem:[%s8201_s1 + $0xb20] sm:$0xff] }
  0x95   :  { %v5418_v2 = vcombine.low %v386_v52, %v390_v54 }
  0x96   :  { %3269 = vmatpush1.bf16.msra.mxu0 %v5354_v60  ;;  %3433 = vmatpush1.bf16.msra.mxu1 %v5356_v61  ;;  %v5419_v60 = vcombine.high %v386_v52, %v390_v54  ;;  %v5421_v61 = vcombine.high %v387_v55, %v391_v56  ;;  %v442_v52 = vld [vmem:[%s8201_s1 + $0xcc0] sm:$0xff]  ;;  %v443_v55 = vld [vmem:[%s8201_s1 + $0xcc8] sm:$0xff] }
  0x97   :  { %3270 = vmatprep.subr.bf16.mxu0 %v5363_v62  ;;  %3434 = vmatprep.subr.bf16.mxu1 %v5365_v63  ;;  %v394_v62 = vld [vmem:[%s8201_s1 + $0xb40] sm:$0xff]  ;;  %v447_v56 = vld [vmem:[%s8201_s1 + $0xce8] sm:$0xff] }
  0x98   :  { %v398_v63 = vld [vmem:[%s8201_s1 + $0xb60] sm:$0xff] }
  0x99   :  { %v5426_v10 = vcombine.low %v394_v62, %v398_v63  ;;  %v446_v54 = vld [vmem:[%s8201_s1 + $0xce0] sm:$0xff] }
  0x9a   :  { %3271 = vmatpush1.bf16.msra.mxu0 %v5362_v4  ;;  %3435 = vmatpush1.bf16.msra.mxu1 %v5364_v5  ;;  %v5427_v4 = vcombine.high %v394_v62, %v398_v63  ;;  %v5429_v5 = vcombine.high %v395_v0, %v399_v1  ;;  %v450_v62 = vld [vmem:[%s8201_s1 + $0xd00] sm:$0xff]  ;;  %v451_v0 = vld [vmem:[%s8201_s1 + $0xd08] sm:$0xff] }
  0x9b   :  { %3272 = vmatprep.subr.bf16.mxu0 %v5371_v6  ;;  %3436 = vmatprep.subr.bf16.mxu1 %v5373_v7  ;;  %v402_v6 = vld [vmem:[%s8201_s1 + $0xb80] sm:$0xff]  ;;  %v455_v1 = vld [vmem:[%s8201_s1 + $0xd28] sm:$0xff] }
  0x9c   :  { %v406_v7 = vld [vmem:[%s8201_s1 + $0xba0] sm:$0xff] }
  0x9d   :  { %v5434_v19 = vcombine.low %v402_v6, %v406_v7  ;;  %v454_v63 = vld [vmem:[%s8201_s1 + $0xd20] sm:$0xff] }
  0x9e   :  { %3273 = vmatpush1.bf16.msra.mxu0 %v5370_v13  ;;  %3437 = vmatpush1.bf16.msra.mxu1 %v5372_v14  ;;  %v5435_v13 = vcombine.high %v402_v6, %v406_v7  ;;  %v5437_v14 = vcombine.high %v403_v8, %v407_v9  ;;  %v458_v6 = vld [vmem:[%s8201_s1 + $0xd40] sm:$0xff]  ;;  %v459_v8 = vld [vmem:[%s8201_s1 + $0xd48] sm:$0xff] }
  0x9f   :  { %3274 = vmatprep.subr.bf16.mxu0 %v5379_v16  ;;  %3438 = vmatprep.subr.bf16.mxu1 %v5381_v17  ;;  %v410_v16 = vld [vmem:[%s8201_s1 + $0xbc0] sm:$0xff]  ;;  %v463_v9 = vld [vmem:[%s8201_s1 + $0xd68] sm:$0xff] }
  0xa0   :  { %v414_v17 = vld [vmem:[%s8201_s1 + $0xbe0] sm:$0xff] }
  0xa1   :  { %v5442_v29 = vcombine.low %v410_v16, %v414_v17  ;;  %v462_v7 = vld [vmem:[%s8201_s1 + $0xd60] sm:$0xff] }
  0xa2   :  { %3275 = vmatpush1.bf16.msra.mxu0 %v5378_v23  ;;  %3439 = vmatpush1.bf16.msra.mxu1 %v5380_v24  ;;  %v5443_v23 = vcombine.high %v410_v16, %v414_v17  ;;  %v5445_v24 = vcombine.high %v411_v53, %v415_v18  ;;  %v466_v16 = vld [vmem:[%s8201_s1 + $0xd80] sm:$0xff]  ;;  %v467_v53 = vld [vmem:[%s8201_s1 + $0xd88] sm:$0xff] }
  0xa3   :  { %3276 = vmatprep.subr.bf16.mxu0 %v5387_v26  ;;  %3440 = vmatprep.subr.bf16.mxu1 %v5389_v27  ;;  %v418_v26 = vld [vmem:[%s8201_s1 + $0xc00] sm:$0xff]  ;;  %v471_v18 = vld [vmem:[%s8201_s1 + $0xda8] sm:$0xff] }
  0xa4   :  { %v422_v27 = vld [vmem:[%s8201_s1 + $0xc20] sm:$0xff] }
  0xa5   :  { %v470_v17 = vld [vmem:[%s8201_s1 + $0xda0] sm:$0xff] }
  0xa6   :  { %3277 = vmatpush1.bf16.msra.mxu0 %v5386_v32  ;;  %3441 = vmatpush1.bf16.msra.mxu1 %v5388_v33  ;;  %v5451_v32 = vcombine.high %v418_v26, %v422_v27  ;;  %v5453_v33 = vcombine.high %v419_v15, %v423_v28 }
  0xa7   :  { %3278 = vmatprep.subr.bf16.mxu0 %v5395_v34  ;;  %3442 = vmatprep.subr.bf16.mxu1 %v5397_v35  ;;  %v426_v34 = vld [vmem:[%s8201_s1 + $0xc40] sm:$0xff] }
  0xa8   :  { %v430_v35 = vld [vmem:[%s8201_s1 + $0xc60] sm:$0xff] }
  0xa9   :  { %v5459_v25 = vcombine.high %v426_v34, %v430_v35 }
  0xaa   :  { %3279 = vmatpush1.bf16.msra.mxu0 %v5394_v40  ;;  %3443 = vmatpush1.bf16.msra.mxu1 %v5396_v41  ;;  %v5450_v40 = vcombine.low %v418_v26, %v422_v27  ;;  %v5452_v41 = vcombine.low %v419_v15, %v423_v28  ;;  %v474_v26 = vld [vmem:[%s8201_s1 + $0xdc0] sm:$0xff]  ;;  %v475_v15 = vld [vmem:[%s8201_s1 + $0xdc8] sm:$0xff] }
  0xab   :  { %3280 = vmatprep.subr.bf16.mxu0 %v5403_v42  ;;  %3444 = vmatprep.subr.bf16.mxu1 %v5405_v43  ;;  %v5461_v42 = vcombine.high %v427_v37, %v431_v38  ;;  %v434_v43 = vld [vmem:[%s8201_s1 + $0xc80] sm:$0xff]  ;;  %v479_v28 = vld [vmem:[%s8201_s1 + $0xde8] sm:$0xff] }
  0xac   :  { %v478_v27 = vld [vmem:[%s8201_s1 + $0xde0] sm:$0xff] }
  0xae   :  { %3281 = vmatpush1.bf16.msra.mxu0 %v5402_v48  ;;  %3445 = vmatpush1.bf16.msra.mxu1 %v5404_v49  ;;  %v5458_v48 = vcombine.low %v426_v34, %v430_v35  ;;  %v5460_v49 = vcombine.low %v427_v37, %v431_v38  ;;  %v482_v34 = vld [vmem:[%s8201_s1 + $0xe00] sm:$0xff]  ;;  %v483_v37 = vld [vmem:[%s8201_s1 + $0xe08] sm:$0xff] }
  0xaf   :  { %3282 = vmatprep.subr.bf16.mxu0 %v5411_v50  ;;  %3446 = vmatprep.subr.bf16.mxu1 %v5413_v51  ;;  %v5467_v50 = vcombine.high %v434_v43, %v438_v44  ;;  %v5469_v51 = vcombine.high %v435_v46, %v439_v47  ;;  %v486_v35 = vld [vmem:[%s8201_s1 + $0xe20] sm:$0xff]  ;;  %v487_v38 = vld [vmem:[%s8201_s1 + $0xe28] sm:$0xff] }
  0xb2   :  { %3283 = vmatpush1.bf16.msra.mxu0 %v5410_v58  ;;  %3447 = vmatpush1.bf16.msra.mxu1 %v5412_v59  ;;  %v5466_v58 = vcombine.low %v434_v43, %v438_v44  ;;  %v5468_v59 = vcombine.low %v435_v46, %v439_v47  ;;  %v490_v43 = vld [vmem:[%s8201_s1 + $0xe40] sm:$0xff]  ;;  %v491_v46 = vld [vmem:[%s8201_s1 + $0xe48] sm:$0xff] }
  0xb3   :  { %3284 = vmatprep.subr.bf16.mxu0 %v5419_v60  ;;  %3448 = vmatprep.subr.bf16.mxu1 %v5421_v61  ;;  %v5475_v60 = vcombine.high %v442_v52, %v446_v54  ;;  %v5477_v61 = vcombine.high %v443_v55, %v447_v56  ;;  %v494_v44 = vld [vmem:[%s8201_s1 + $0xe60] sm:$0xff]  ;;  %v495_v47 = vld [vmem:[%s8201_s1 + $0xe68] sm:$0xff] }
  0xb6   :  { %3285 = vmatpush1.bf16.msra.mxu0 %v5418_v2  ;;  %3449 = vmatpush1.bf16.msra.mxu1 %v5420_v3  ;;  %v5474_v2 = vcombine.low %v442_v52, %v446_v54  ;;  %v5476_v3 = vcombine.low %v443_v55, %v447_v56  ;;  %v498_v52 = vld [vmem:[%s8201_s1 + $0xe80] sm:$0xff]  ;;  %v499_v55 = vld [vmem:[%s8201_s1 + $0xe88] sm:$0xff] }
  0xb7   :  { %3286 = vmatprep.subr.bf16.mxu0 %v5427_v4  ;;  %3450 = vmatprep.subr.bf16.mxu1 %v5429_v5  ;;  %v5483_v4 = vcombine.high %v450_v62, %v454_v63  ;;  %v5485_v5 = vcombine.high %v451_v0, %v455_v1  ;;  %v502_v54 = vld [vmem:[%s8201_s1 + $0xea0] sm:$0xff]  ;;  %v503_v56 = vld [vmem:[%s8201_s1 + $0xea8] sm:$0xff] }
  0xba   :  { %3287 = vmatpush1.bf16.msra.mxu0 %v5426_v10  ;;  %3451 = vmatpush1.bf16.msra.mxu1 %v5428_v11  ;;  %v5482_v10 = vcombine.low %v450_v62, %v454_v63  ;;  %v5484_v11 = vcombine.low %v451_v0, %v455_v1  ;;  %v506_v62 = vld [vmem:[%s8201_s1 + $0xec0] sm:$0xff]  ;;  %v507_v0 = vld [vmem:[%s8201_s1 + $0xec8] sm:$0xff] }
  0xbb   :  { %3288 = vmatprep.subr.bf16.mxu0 %v5435_v13  ;;  %3452 = vmatprep.subr.bf16.mxu1 %v5437_v14  ;;  %v5491_v13 = vcombine.high %v458_v6, %v462_v7  ;;  %v5493_v14 = vcombine.high %v459_v8, %v463_v9  ;;  %v510_v63 = vld [vmem:[%s8201_s1 + $0xee0] sm:$0xff]  ;;  %v511_v1 = vld [vmem:[%s8201_s1 + $0xee8] sm:$0xff] }
  0xbe   :  { %3289 = vmatpush1.bf16.msra.mxu0 %v5434_v19  ;;  %3453 = vmatpush1.bf16.msra.mxu1 %v5436_v20  ;;  %v5490_v19 = vcombine.low %v458_v6, %v462_v7  ;;  %v5492_v20 = vcombine.low %v459_v8, %v463_v9  ;;  %v514_v6 = vld [vmem:[%s8201_s1 + $0xf00] sm:$0xff]  ;;  %v515_v8 = vld [vmem:[%s8201_s1 + $0xf08] sm:$0xff] }
  0xbf   :  { %3290 = vmatprep.subr.bf16.mxu0 %v5443_v23  ;;  %3454 = vmatprep.subr.bf16.mxu1 %v5445_v24  ;;  %v5499_v23 = vcombine.high %v466_v16, %v470_v17  ;;  %v5501_v24 = vcombine.high %v467_v53, %v471_v18  ;;  %v518_v7 = vld [vmem:[%s8201_s1 + $0xf20] sm:$0xff]  ;;  %v519_v9 = vld [vmem:[%s8201_s1 + $0xf28] sm:$0xff] }
  0xc2   :  { %3291 = vmatpush1.bf16.msra.mxu0 %v5442_v29  ;;  %3455 = vmatpush1.bf16.msra.mxu1 %v5444_v30  ;;  %v5498_v29 = vcombine.low %v466_v16, %v470_v17  ;;  %v5500_v30 = vcombine.low %v467_v53, %v471_v18  ;;  %v522_v16 = vld [vmem:[%s8201_s1 + $0xf40] sm:$0xff]  ;;  %v523_v53 = vld [vmem:[%s8201_s1 + $0xf48] sm:$0xff] }
  0xc3   :  { %3301 = vmatprep.subr.bf16.mxu0 %v5451_v32  ;;  %3465 = vmatprep.subr.bf16.mxu1 %v5453_v33  ;;  %v5507_v32 = vcombine.high %v474_v26, %v478_v27  ;;  %v5509_v33 = vcombine.high %v475_v15, %v479_v28  ;;  %v526_v17 = vld [vmem:[%s8201_s1 + $0xf60] sm:$0xff]  ;;  %v527_v18 = vld [vmem:[%s8201_s1 + $0xf68] sm:$0xff] }
  0xc5   :  { %3293 = vmatmul.mubr.bf16.vlgmr.msra.gmra.mrb[0].mxu0 %v6751_v36  ;;  %3457 = vmatmul.mubr.bf16.vlgmr.msra.gmra.mrb[0].mxu1 %v6751_v36 }
  0xc6   :  { %3302 = vmatpush1.bf16.msra.mxu0 %v5450_v40  ;;  %3466 = vmatpush1.bf16.msra.mxu1 %v5452_v41  ;;  %v5506_v40 = vcombine.low %v474_v26, %v478_v27  ;;  %v5508_v41 = vcombine.low %v475_v15, %v479_v28  ;;  %v530_v26 = vld [vmem:[%s8201_s1 + $0xf80] sm:$0xff]  ;;  %v531_v15 = vld [vmem:[%s8201_s1 + $0xf88] sm:$0xff] }
  0xc7   :  { %3303 = vmatprep.subr.bf16.mxu0 %v5459_v25  ;;  %3467 = vmatprep.subr.bf16.mxu1 %v5461_v42  ;;  %v5515_v25 = vcombine.high %v482_v34, %v486_v35  ;;  %v5517_v42 = vcombine.high %v483_v37, %v487_v38  ;;  %v534_v27 = vld [vmem:[%s8201_s1 + $0xfa0] sm:$0xff]  ;;  %v535_v28 = vld [vmem:[%s8201_s1 + $0xfa8] sm:$0xff] }
  0xc8   :  { %3333 = vmatprep.mubr.bf16.mxu0 %v6772_v45  ;;  %3497 = vmatprep.mubr.bf16.mxu1 %v6772_v45 }
  0xca   :  { %3304 = vmatpush1.bf16.msra.mxu0 %v5458_v48  ;;  %3468 = vmatpush1.bf16.msra.mxu1 %v5460_v49  ;;  %v5514_v48 = vcombine.low %v482_v34, %v486_v35  ;;  %v5516_v49 = vcombine.low %v483_v37, %v487_v38  ;;  %v538_v34 = vld [vmem:[%s8201_s1 + $0xfc0] sm:$0xff]  ;;  %v539_v37 = vld [vmem:[%s8201_s1 + $0xfc8] sm:$0xff] }
  0xcb   :  { %3305 = vmatprep.subr.bf16.mxu0 %v5467_v50  ;;  %3469 = vmatprep.subr.bf16.mxu1 %v5469_v51  ;;  %v5523_v50 = vcombine.high %v490_v43, %v494_v44  ;;  %v5525_v51 = vcombine.high %v491_v46, %v495_v47  ;;  %v542_v35 = vld [vmem:[%s8201_s1 + $0xfe0] sm:$0xff]  ;;  %v543_v38 = vld [vmem:[%s8201_s1 + $0xfe8] sm:$0xff] }
  0xce   :  { %3306 = vmatpush1.bf16.msra.mxu0 %v5466_v58  ;;  %3470 = vmatpush1.bf16.msra.mxu1 %v5468_v59  ;;  %v5522_v58 = vcombine.low %v490_v43, %v494_v44  ;;  %v5524_v59 = vcombine.low %v491_v46, %v495_v47  ;;  %v36_v43 = vld [vmem:[%s8201_s1 + $0x10] sm:$0xff]  ;;  %v37_v46 = vld [vmem:[%s8201_s1 + $0x18] sm:$0xff] }
  0xcf   :  { %3307 = vmatprep.subr.bf16.mxu0 %v5475_v60  ;;  %3471 = vmatprep.subr.bf16.mxu1 %v5477_v61  ;;  %v5531_v60 = vcombine.high %v498_v52, %v502_v54  ;;  %v5533_v61 = vcombine.high %v499_v55, %v503_v56  ;;  %v40_v44 = vld [vmem:[%s8201_s1 + $0x30] sm:$0xff]  ;;  %v41_v47 = vld [vmem:[%s8201_s1 + $0x38] sm:$0xff] }
  0xd2   :  { %3308 = vmatpush1.bf16.msra.mxu0 %v5474_v2  ;;  %3472 = vmatpush1.bf16.msra.mxu1 %v5476_v3  ;;  %v5530_v2 = vcombine.low %v498_v52, %v502_v54  ;;  %v5532_v3 = vcombine.low %v499_v55, %v503_v56  ;;  %v44_v52 = vld [vmem:[%s8201_s1 + $0x50] sm:$0xff]  ;;  %v6960_v55 = vcombine.low %v6762_v39, %v6762_v39  ;;  %v45_v56 = vld [vmem:[%s8201_s1 + $0x58] sm:$0xff] }
  0xd3   :  { %3309 = vmatprep.subr.bf16.mxu0 %v5483_v4  ;;  %3473 = vmatprep.subr.bf16.mxu1 %v5485_v5  ;;  %v5539_v4 = vcombine.high %v506_v62, %v510_v63  ;;  %v5541_v5 = vcombine.high %v507_v0, %v511_v1  ;;  %v48_v54 = vld [vmem:[%s8201_s1 + $0x70] sm:$0xff] }
  0xd4   :  { %v52_v39 = vld [vmem:[%s8201_s1 + $0x90] sm:$0xff] }
  0xd6   :  { %3310 = vmatpush1.bf16.msra.mxu0 %v5482_v10  ;;  %3474 = vmatpush1.bf16.msra.mxu1 %v5484_v11  ;;  %v5538_v10 = vcombine.low %v506_v62, %v510_v63  ;;  %v5540_v11 = vcombine.low %v507_v0, %v511_v1  ;;  %v56_v63 = vld [vmem:[%s8201_s1 + $0xb0] sm:$0xff]  ;;  %v53_v0 = vld [vmem:[%s8201_s1 + $0x98] sm:$0xff] }
  0xd7   :  { %3311 = vmatprep.subr.bf16.mxu0 %v5491_v13  ;;  %3475 = vmatprep.subr.bf16.mxu1 %v5493_v14  ;;  %v5547_v13 = vcombine.high %v514_v6, %v518_v7  ;;  %v5549_v14 = vcombine.high %v515_v8, %v519_v9  ;;  %v57_v1 = vld [vmem:[%s8201_s1 + $0xb8] sm:$0xff] }
  0xda   :  { %3312 = vmatpush1.bf16.msra.mxu0 %v5490_v19  ;;  %3476 = vmatpush1.bf16.msra.mxu1 %v5492_v20  ;;  %v5546_v19 = vcombine.low %v514_v6, %v518_v7  ;;  %v5548_v20 = vcombine.low %v515_v8, %v519_v9  ;;  %v60_v6 = vld [vmem:[%s8201_s1 + $0xd0] sm:$0xff]  ;;  %v61_v8 = vld [vmem:[%s8201_s1 + $0xd8] sm:$0xff] }
  0xdb   :  { %3313 = vmatprep.subr.bf16.mxu0 %v5499_v23  ;;  %3477 = vmatprep.subr.bf16.mxu1 %v5501_v24  ;;  %v5555_v23 = vcombine.high %v522_v16, %v526_v17  ;;  %v5557_v24 = vcombine.high %v523_v53, %v527_v18  ;;  %v64_v7 = vld [vmem:[%s8201_s1 + $0xf0] sm:$0xff]  ;;  %v65_v9 = vld [vmem:[%s8201_s1 + $0xf8] sm:$0xff] }
  0xde   :  { %3314 = vmatpush1.bf16.msra.mxu0 %v5498_v29  ;;  %3478 = vmatpush1.bf16.msra.mxu1 %v5500_v30  ;;  %v5554_v29 = vcombine.low %v522_v16, %v526_v17  ;;  %v5556_v30 = vcombine.low %v523_v53, %v527_v18  ;;  %v68_v16 = vld [vmem:[%s8201_s1 + $0x110] sm:$0xff]  ;;  %v73_v53 = vld [vmem:[%s8201_s1 + $0x138] sm:$0xff]  ;;  %v5094_v18 = vcombine.low %v60_v6, %v64_v7 }
  0xdf   :  { %3315 = vmatprep.subr.bf16.mxu0 %v5507_v32  ;;  %3479 = vmatprep.subr.bf16.mxu1 %v5509_v33  ;;  %v5563_v32 = vcombine.high %v530_v26, %v534_v27  ;;  %v5565_v33 = vcombine.high %v531_v15, %v535_v28  ;;  %v72_v17 = vld [vmem:[%s8201_s1 + $0x130] sm:$0xff] }
  0xe2   :  { %3316 = vmatpush1.bf16.msra.mxu0 %v5506_v40  ;;  %3480 = vmatpush1.bf16.msra.mxu1 %v5508_v41  ;;  %v5562_v40 = vcombine.low %v530_v26, %v534_v27  ;;  %v5564_v41 = vcombine.low %v531_v15, %v535_v28  ;;  %v80_v26 = vld [vmem:[%s8201_s1 + $0x170] sm:$0xff]  ;;  %v77_v27 = vld [vmem:[%s8201_s1 + $0x158] sm:$0xff]  ;;  %v5102_v28 = vcombine.low %v68_v16, %v72_v17 }
  0xe3   :  { %3317 = vmatprep.subr.bf16.mxu0 %v5515_v25  ;;  %3481 = vmatprep.subr.bf16.mxu1 %v5517_v42  ;;  %v5571_v25 = vcombine.high %v538_v34, %v542_v35  ;;  %v5573_v42 = vcombine.high %v539_v37, %v543_v38  ;;  %v81_v15 = vld [vmem:[%s8201_s1 + $0x178] sm:$0xff] }
  0xe6   :  { %3318 = vmatpush1.bf16.msra.mxu0 %v5514_v48  ;;  %3482 = vmatpush1.bf16.msra.mxu1 %v5516_v49  ;;  %v5570_v48 = vcombine.low %v538_v34, %v542_v35  ;;  %v5572_v49 = vcombine.low %v539_v37, %v543_v38  ;;  %v88_v34 = vld [vmem:[%s8201_s1 + $0x1b0] sm:$0xff]  ;;  %v85_v35 = vld [vmem:[%s8201_s1 + $0x198] sm:$0xff] }
  0xe7   :  { %3319 = vmatprep.subr.bf16.mxu0 %v5523_v50  ;;  %3483 = vmatprep.subr.bf16.mxu1 %v5525_v51  ;;  %v5071_v50 = vcombine.high %v36_v43, %v40_v44  ;;  %v5073_v51 = vcombine.high %v37_v46, %v41_v47  ;;  %v89_v37 = vld [vmem:[%s8201_s1 + $0x1b8] sm:$0xff] }
  0xea   :  { %3320 = vmatpush1.bf16.msra.mxu0 %v5522_v58  ;;  %3484 = vmatpush1.bf16.msra.mxu1 %v5524_v59  ;;  %v49_v58 = vld [vmem:[%s8201_s1 + $0x78] sm:$0xff]  ;;  %v5070_v59 = vcombine.low %v36_v43, %v40_v44  ;;  %v96_v43 = vld [vmem:[%s8201_s1 + $0x1f0] sm:$0xff] }
  0xeb   :  { %3321 = vmatprep.subr.bf16.mxu0 %v5531_v60  ;;  %3485 = vmatprep.subr.bf16.mxu1 %v5533_v61  ;;  %v5072_v60 = vcombine.low %v37_v46, %v41_v47  ;;  %v5079_v61 = vcombine.high %v44_v52, %v48_v54  ;;  %v5081_v62 = vcombine.high %v45_v56, %v49_v58  ;;  %v93_v44 = vld [vmem:[%s8201_s1 + $0x1d8] sm:$0xff] }
  0xec   :  { %v97_v46 = vld [vmem:[%s8201_s1 + $0x1f8] sm:$0xff] }
  0xee   :  { %3322 = vmatpush1.bf16.msra.mxu0 %v5530_v2  ;;  %3486 = vmatpush1.bf16.msra.mxu1 %v5532_v3  ;;  %v5078_v2 = vcombine.low %v44_v52, %v48_v54  ;;  %v5080_v3 = vcombine.low %v45_v56, %v49_v58  ;;  %v104_v52 = vld [vmem:[%s8201_s1 + $0x230] sm:$0xff]  ;;  %v101_v54 = vld [vmem:[%s8201_s1 + $0x218] sm:$0xff] }
  0xef   :  { %3323 = vmatprep.subr.bf16.mxu0 %v5539_v4  ;;  %3487 = vmatprep.subr.bf16.mxu1 %v5541_v5  ;;  %v5087_v4 = vcombine.high %v52_v39, %v56_v63  ;;  %v5089_v5 = vcombine.high %v53_v0, %v57_v1  ;;  %v105_v56 = vld [vmem:[%s8201_s1 + $0x238] sm:$0xff] }
  0xf2   :  { %3324 = vmatpush1.bf16.msra.mxu0 %v5538_v10  ;;  %3488 = vmatpush1.bf16.msra.mxu1 %v5540_v11  ;;  %v5086_v10 = vcombine.low %v52_v39, %v56_v63  ;;  %v5088_v11 = vcombine.low %v53_v0, %v57_v1  ;;  %v112_v39 = vld [vmem:[%s8201_s1 + $0x270] sm:$0xff]  ;;  %v109_v63 = vld [vmem:[%s8201_s1 + $0x258] sm:$0xff] }
  0xf3   :  { %3325 = vmatprep.subr.bf16.mxu0 %v5547_v13  ;;  %3489 = vmatprep.subr.bf16.mxu1 %v5549_v14  ;;  %v5095_v13 = vcombine.high %v60_v6, %v64_v7  ;;  %v5097_v14 = vcombine.high %v61_v8, %v65_v9  ;;  %v113_v0 = vld [vmem:[%s8201_s1 + $0x278] sm:$0xff]  ;;  %v120_v6 = vld [vmem:[%s8201_s1 + $0x2b0] sm:$0xff] }
  0xf4   :  { %v117_v7 = vld [vmem:[%s8201_s1 + $0x298] sm:$0xff] }
  0xf6   :  { %3326 = vmatpush1.bf16.msra.mxu0 %v5546_v19  ;;  %3490 = vmatpush1.bf16.msra.mxu1 %v5548_v20  ;;  %v5096_v19 = vcombine.low %v61_v8, %v65_v9  ;;  %v5103_v20 = vcombine.high %v68_v16, %v72_v17  ;;  %v121_v8 = vld [vmem:[%s8201_s1 + $0x2b8] sm:$0xff]  ;;  %v128_v16 = vld [vmem:[%s8201_s1 + $0x2f0] sm:$0xff] }
  0xf7   :  { %3327 = vmatprep.subr.bf16.mxu0 %v5555_v23  ;;  %3491 = vmatprep.subr.bf16.mxu1 %v5557_v24  ;;  %v76_v24 = vld [vmem:[%s8201_s1 + $0x150] sm:$0xff]  ;;  %v125_v17 = vld [vmem:[%s8201_s1 + $0x2d8] sm:$0xff] }
  0xf8   :  { %v5110_v38 = vcombine.low %v76_v24, %v80_v26 }
  0xfa   :  { %3328 = vmatpush1.bf16.msra.mxu0 %v5554_v29  ;;  %3492 = vmatpush1.bf16.msra.mxu1 %v5556_v30  ;;  %v5111_v30 = vcombine.high %v76_v24, %v80_v26  ;;  %v136_v24 = vld [vmem:[%s8201_s1 + $0x330] sm:$0xff]  ;;  %v133_v26 = vld [vmem:[%s8201_s1 + $0x318] sm:$0xff] }
  0xfb   :  { %3329 = vmatprep.subr.bf16.mxu0 %v5563_v32  ;;  %3493 = vmatprep.subr.bf16.mxu1 %v5565_v33  ;;  %v5113_v32 = vcombine.high %v77_v27, %v81_v15  ;;  %v84_v33 = vld [vmem:[%s8201_s1 + $0x190] sm:$0xff] }
  0xfc   :  { %v5118_v47 = vcombine.low %v84_v33, %v88_v34 }
  0xfe   :  { %3330 = vmatpush1.bf16.msra.mxu0 %v5562_v40  ;;  %3494 = vmatpush1.bf16.msra.mxu1 %v5564_v41  ;;  %v5112_v40 = vcombine.low %v77_v27, %v81_v15  ;;  %v5119_v41 = vcombine.high %v84_v33, %v88_v34  ;;  %v137_v27 = vld [vmem:[%s8201_s1 + $0x338] sm:$0xff]  ;;  %v144_v33 = vld [vmem:[%s8201_s1 + $0x370] sm:$0xff] }
  0xff   :  { %3331 = vmatprep.subr.bf16.mxu0 %v5571_v25  ;;  %3495 = vmatprep.subr.bf16.mxu1 %v5573_v42  ;;  %v5121_v25 = vcombine.high %v85_v35, %v89_v37  ;;  %v92_v42 = vld [vmem:[%s8201_s1 + $0x1d0] sm:$0xff]  ;;  %v141_v34 = vld [vmem:[%s8201_s1 + $0x358] sm:$0xff] }
 0x100   :  { %v5126_v58 = vcombine.low %v92_v42, %v96_v43 }
 0x102   :  { %3332 = vmatpush1.bf16.msra.mxu0 %v5570_v48  ;;  %3496 = vmatpush1.bf16.msra.mxu1 %v5572_v49  ;;  %v5120_v48 = vcombine.low %v85_v35, %v89_v37  ;;  %v5127_v49 = vcombine.high %v92_v42, %v96_v43  ;;  %v145_v35 = vld [vmem:[%s8201_s1 + $0x378] sm:$0xff]  ;;  %v152_v42 = vld [vmem:[%s8201_s1 + $0x3b0] sm:$0xff] }
 0x103   :  { %3506 = vmatprep.subr.bf16.mxu0 %v5071_v50  ;;  %3670 = vmatprep.subr.bf16.mxu1 %v5073_v51  ;;  %v5129_v50 = vcombine.high %v93_v44, %v97_v46  ;;  %v100_v51 = vld [vmem:[%s8201_s1 + $0x210] sm:$0xff]  ;;  %v149_v43 = vld [vmem:[%s8201_s1 + $0x398] sm:$0xff] }
 0x104   :  { %v5134_v1 = vcombine.low %v100_v51, %v104_v52 }
 0x105   :  { %3334 = vmatmul.mubr.bf16.vlgmr.msra.gmra.mrb[0].mxu0 %v6960_v55  ;;  %3498 = vmatmul.mubr.bf16.vlgmr.msra.gmra.mrb[0].mxu1 %v6960_v55 }
 0x106   :  { %3507 = vmatpush1.bf16.msra.mxu0 %v5070_v59  ;;  %3671 = vmatpush1.bf16.msra.mxu1 %v5072_v60  ;;  %v5128_v59 = vcombine.low %v93_v44, %v97_v46  ;;  %v5135_v60 = vcombine.high %v100_v51, %v104_v52  ;;  %v153_v44 = vld [vmem:[%s8201_s1 + $0x3b8] sm:$0xff]  ;;  %v160_v51 = vld [vmem:[%s8201_s1 + $0x3f0] sm:$0xff] }
 0x107   :  { %3508 = vmatprep.subr.bf16.mxu0 %v5079_v61  ;;  %3672 = vmatprep.subr.bf16.mxu1 %v5081_v62  ;;  %v5137_v61 = vcombine.high %v101_v54, %v105_v56  ;;  %v108_v62 = vld [vmem:[%s8201_s1 + $0x250] sm:$0xff]  ;;  %v157_v52 = vld [vmem:[%s8201_s1 + $0x3d8] sm:$0xff] }
 0x108   :  { %3538 = vmatprep.mubr.bf16.mxu0 %v6207_v57  ;;  %3702 = vmatprep.mubr.bf16.mxu1 %v6207_v57  ;;  %v69_v57 = vld [vmem:[%s8201_s1 + $0x118] sm:$0xff]  ;;  %v5142_v9 = vcombine.low %v108_v62, %v112_v39 }
 0x109   :  { %v5105_v23 = vcombine.high %v69_v57, %v73_v53  ;;  %v5104_v29 = vcombine.low %v69_v57, %v73_v53  ;;  %v129_v57 = vld [vmem:[%s8201_s1 + $0x2f8] sm:$0xff] }
 0x10a   :  { %3509 = vmatpush1.bf16.msra.mxu0 %v5078_v2  ;;  %3673 = vmatpush1.bf16.msra.mxu1 %v5080_v3  ;;  %v5136_v2 = vcombine.low %v101_v54, %v105_v56  ;;  %v5143_v3 = vcombine.high %v108_v62, %v112_v39  ;;  %v161_v54 = vld [vmem:[%s8201_s1 + $0x3f8] sm:$0xff]  ;;  %v168_v62 = vld [vmem:[%s8201_s1 + $0x430] sm:$0xff] }
 0x10b   :  { %3510 = vmatprep.subr.bf16.mxu0 %v5087_v4  ;;  %3674 = vmatprep.subr.bf16.mxu1 %v5089_v5  ;;  %v5145_v4 = vcombine.high %v109_v63, %v113_v0  ;;  %v116_v5 = vld [vmem:[%s8201_s1 + $0x290] sm:$0xff]  ;;  %v165_v39 = vld [vmem:[%s8201_s1 + $0x418] sm:$0xff] }
 0x10c   :  { %v5150_v53 = vcombine.low %v116_v5, %v120_v6 }
 0x10e   :  { %3511 = vmatpush1.bf16.msra.mxu0 %v5086_v10  ;;  %3675 = vmatpush1.bf16.msra.mxu1 %v5088_v11  ;;  %v5144_v10 = vcombine.low %v109_v63, %v113_v0  ;;  %v5151_v11 = vcombine.high %v116_v5, %v120_v6  ;;  %v169_v63 = vld [vmem:[%s8201_s1 + $0x438] sm:$0xff]  ;;  %v176_v5 = vld [vmem:[%s8201_s1 + $0x470] sm:$0xff] }
 0x10f   :  { %3512 = vmatprep.subr.bf16.mxu0 %v5095_v13  ;;  %3676 = vmatprep.subr.bf16.mxu1 %v5097_v14  ;;  %v5153_v13 = vcombine.high %v117_v7, %v121_v8  ;;  %v124_v14 = vld [vmem:[%s8201_s1 + $0x2d0] sm:$0xff]  ;;  %v173_v6 = vld [vmem:[%s8201_s1 + $0x458] sm:$0xff] }
 0x110   :  { %v5158_v15 = vcombine.low %v124_v14, %v128_v16 }
 0x112   :  { %3513 = vmatpush1.bf16.msra.mxu0 %v5094_v18  ;;  %3677 = vmatpush1.bf16.msra.mxu1 %v5096_v19  ;;  %v5152_v18 = vcombine.low %v117_v7, %v121_v8  ;;  %v5159_v19 = vcombine.high %v124_v14, %v128_v16  ;;  %v177_v7 = vld [vmem:[%s8201_s1 + $0x478] sm:$0xff]  ;;  %v184_v14 = vld [vmem:[%s8201_s1 + $0x4b0] sm:$0xff] }
 0x113   :  { %3514 = vmatprep.subr.bf16.mxu0 %v5103_v20  ;;  %3678 = vmatprep.subr.bf16.mxu1 %v5105_v23  ;;  %v5161_v20 = vcombine.high %v125_v17, %v129_v57  ;;  %v132_v23 = vld [vmem:[%s8201_s1 + $0x310] sm:$0xff]  ;;  %v181_v16 = vld [vmem:[%s8201_s1 + $0x498] sm:$0xff] }
 0x114   :  { %v5166_v37 = vcombine.low %v132_v23, %v136_v24 }
 0x116   :  { %3515 = vmatpush1.bf16.msra.mxu0 %v5102_v28  ;;  %3679 = vmatpush1.bf16.msra.mxu1 %v5104_v29  ;;  %v5160_v28 = vcombine.low %v125_v17, %v129_v57  ;;  %v5167_v29 = vcombine.high %v132_v23, %v136_v24  ;;  %v185_v17 = vld [vmem:[%s8201_s1 + $0x4b8] sm:$0xff]  ;;  %v192_v23 = vld [vmem:[%s8201_s1 + $0x4f0] sm:$0xff] }
 0x117   :  { %3516 = vmatprep.subr.bf16.mxu0 %v5111_v30  ;;  %3680 = vmatprep.subr.bf16.mxu1 %v5113_v32  ;;  %v5169_v30 = vcombine.high %v133_v26, %v137_v27  ;;  %v140_v32 = vld [vmem:[%s8201_s1 + $0x350] sm:$0xff]  ;;  %v193_v24 = vld [vmem:[%s8201_s1 + $0x4f8] sm:$0xff] }
 0x118   :  { %v5174_v46 = vcombine.low %v140_v32, %v144_v33 }
 0x11a   :  { %3517 = vmatpush1.bf16.msra.mxu0 %v5110_v38  ;;  %3681 = vmatpush1.bf16.msra.mxu1 %v5112_v40  ;;  %v5168_v38 = vcombine.low %v133_v26, %v137_v27  ;;  %v5175_v40 = vcombine.high %v140_v32, %v144_v33  ;;  %v5216_v27 = vcombine.low %v181_v16, %v185_v17  ;;  %v201_v32 = vld [vmem:[%s8201_s1 + $0x538] sm:$0xff] }
 0x11b   :  { %3518 = vmatprep.subr.bf16.mxu0 %v5119_v41  ;;  %3682 = vmatprep.subr.bf16.mxu1 %v5121_v25  ;;  %v5177_v41 = vcombine.high %v141_v34, %v145_v35  ;;  %v148_v25 = vld [vmem:[%s8201_s1 + $0x390] sm:$0xff] }
 0x11c   :  { %v5182_v56 = vcombine.low %v148_v25, %v152_v42 }
 0x11e   :  { %3519 = vmatpush1.bf16.msra.mxu0 %v5118_v47  ;;  %3683 = vmatpush1.bf16.msra.mxu1 %v5120_v48  ;;  %v5176_v47 = vcombine.low %v141_v34, %v145_v35  ;;  %v5183_v48 = vcombine.high %v148_v25, %v152_v42  ;;  %v209_v25 = vld [vmem:[%s8201_s1 + $0x578] sm:$0xff] }
 0x11f   :  { %3520 = vmatprep.subr.bf16.mxu0 %v5127_v49  ;;  %3684 = vmatprep.subr.bf16.mxu1 %v5129_v50  ;;  %v5185_v49 = vcombine.high %v149_v43, %v153_v44  ;;  %v156_v50 = vld [vmem:[%s8201_s1 + $0x3d0] sm:$0xff] }
 0x120   :  { %v5190_v0 = vcombine.low %v156_v50, %v160_v51 }
 0x122   :  { %3521 = vmatpush1.bf16.msra.mxu0 %v5126_v58  ;;  %3685 = vmatpush1.bf16.msra.mxu1 %v5128_v59  ;;  %v5184_v58 = vcombine.low %v149_v43, %v153_v44  ;;  %v5191_v59 = vcombine.high %v156_v50, %v160_v51  ;;  %v217_v50 = vld [vmem:[%s8201_s1 + $0x5b8] sm:$0xff] }
 0x123   :  { %3522 = vmatprep.subr.bf16.mxu0 %v5135_v60  ;;  %3686 = vmatprep.subr.bf16.mxu1 %v5137_v61  ;;  %v5193_v60 = vcombine.high %v157_v52, %v161_v54  ;;  %v164_v61 = vld [vmem:[%s8201_s1 + $0x410] sm:$0xff] }
 0x124   :  { %v5198_v8 = vcombine.low %v164_v61, %v168_v62 }
 0x126   :  { %3523 = vmatpush1.bf16.msra.mxu0 %v5134_v1  ;;  %3687 = vmatpush1.bf16.msra.mxu1 %v5136_v2  ;;  %v5192_v1 = vcombine.low %v157_v52, %v161_v54  ;;  %v5199_v2 = vcombine.high %v164_v61, %v168_v62  ;;  %v225_v61 = vld [vmem:[%s8201_s1 + $0x5f8] sm:$0xff] }
 0x127   :  { %3524 = vmatprep.subr.bf16.mxu0 %v5143_v3  ;;  %3688 = vmatprep.subr.bf16.mxu1 %v5145_v4  ;;  %v5201_v3 = vcombine.high %v165_v39, %v169_v63  ;;  %v172_v4 = vld [vmem:[%s8201_s1 + $0x450] sm:$0xff] }
 0x128   :  { %v5206_v57 = vcombine.low %v172_v4, %v176_v5 }
 0x12a   :  { %3525 = vmatpush1.bf16.msra.mxu0 %v5142_v9  ;;  %3689 = vmatpush1.bf16.msra.mxu1 %v5144_v10  ;;  %v5200_v9 = vcombine.low %v165_v39, %v169_v63  ;;  %v5207_v10 = vcombine.high %v172_v4, %v176_v5  ;;  %v233_v4 = vld [vmem:[%s8201_s1 + $0x638] sm:$0xff] }
 0x12b   :  { %3526 = vmatprep.subr.bf16.mxu0 %v5151_v11  ;;  %3690 = vmatprep.subr.bf16.mxu1 %v5153_v13  ;;  %v5209_v11 = vcombine.high %v173_v6, %v177_v7  ;;  %v180_v13 = vld [vmem:[%s8201_s1 + $0x490] sm:$0xff] }
 0x12c   :  { %v5214_v26 = vcombine.low %v180_v13, %v184_v14 }
 0x12e   :  { %3527 = vmatpush1.bf16.msra.mxu0 %v5150_v53  ;;  %3691 = vmatpush1.bf16.msra.mxu1 %v5152_v18  ;;  %v5208_v53 = vcombine.low %v173_v6, %v177_v7  ;;  %v5215_v18 = vcombine.high %v180_v13, %v184_v14  ;;  %v241_v13 = vld [vmem:[%s8201_s1 + $0x678] sm:$0xff] }
 0x12f   :  { %3528 = vmatprep.subr.bf16.mxu0 %v5159_v19  ;;  %3692 = vmatprep.subr.bf16.mxu1 %v5161_v20  ;;  %v5217_v19 = vcombine.high %v181_v16, %v185_v17  ;;  %v188_v20 = vld [vmem:[%s8201_s1 + $0x4d0] sm:$0xff] }
 0x130   :  { %v5222_v33 = vcombine.low %v188_v20, %v192_v23 }
 0x132   :  { %3529 = vmatpush1.bf16.msra.mxu0 %v5158_v15  ;;  %3693 = vmatpush1.bf16.msra.mxu1 %v5160_v28  ;;  %v5223_v15 = vcombine.high %v188_v20, %v192_v23  ;;  %v249_v20 = vld [vmem:[%s8201_s1 + $0x6b8] sm:$0xff] }
 0x133   :  { %3530 = vmatprep.subr.bf16.mxu0 %v5167_v29  ;;  %3694 = vmatprep.subr.bf16.mxu1 %v5169_v30  ;;  %v196_v29 = vld [vmem:[%s8201_s1 + $0x510] sm:$0xff] }
 0x134   :  { %v200_v30 = vld [vmem:[%s8201_s1 + $0x530] sm:$0xff] }
 0x135   :  { %v5231_v35 = vcombine.high %v196_v29, %v200_v30  ;;  %v5230_v42 = vcombine.low %v196_v29, %v200_v30  ;;  %v257_v29 = vld [vmem:[%s8201_s1 + $0x6f8] sm:$0xff] }
 0x136   :  { %3531 = vmatpush1.bf16.msra.mxu0 %v5166_v37  ;;  %3695 = vmatpush1.bf16.msra.mxu1 %v5168_v38  ;;  %v204_v38 = vld [vmem:[%s8201_s1 + $0x550] sm:$0xff] }
 0x137   :  { %3532 = vmatprep.subr.bf16.mxu0 %v5175_v40  ;;  %3696 = vmatprep.subr.bf16.mxu1 %v5177_v41  ;;  %v208_v40 = vld [vmem:[%s8201_s1 + $0x570] sm:$0xff]  ;;  %v205_v41 = vld [vmem:[%s8201_s1 + $0x558] sm:$0xff] }
 0x138   :  { %v5239_v44 = vcombine.high %v204_v38, %v208_v40  ;;  %v5238_v51 = vcombine.low %v204_v38, %v208_v40  ;;  %v5240_v52 = vcombine.low %v205_v41, %v209_v25  ;;  %v265_v38 = vld [vmem:[%s8201_s1 + $0x738] sm:$0xff] }
 0x13a   :  { %3533 = vmatpush1.bf16.msra.mxu0 %v5174_v46  ;;  %3697 = vmatpush1.bf16.msra.mxu1 %v5176_v47  ;;  %v5241_v46 = vcombine.high %v205_v41, %v209_v25  ;;  %v212_v47 = vld [vmem:[%s8201_s1 + $0x590] sm:$0xff] }
 0x13b   :  { %3534 = vmatprep.subr.bf16.mxu0 %v5183_v48  ;;  %3698 = vmatprep.subr.bf16.mxu1 %v5185_v49  ;;  %v216_v48 = vld [vmem:[%s8201_s1 + $0x5b0] sm:$0xff]  ;;  %v213_v49 = vld [vmem:[%s8201_s1 + $0x598] sm:$0xff] }
 0x13c   :  { %v5247_v54 = vcombine.high %v212_v47, %v216_v48  ;;  %v5246_v62 = vcombine.low %v212_v47, %v216_v48  ;;  %v5248_v39 = vcombine.low %v213_v49, %v217_v50  ;;  %v273_v47 = vld [vmem:[%s8201_s1 + $0x778] sm:$0xff] }
 0x13e   :  { %3535 = vmatpush1.bf16.msra.mxu0 %v5182_v56  ;;  %3699 = vmatpush1.bf16.msra.mxu1 %v5184_v58  ;;  %v5249_v56 = vcombine.high %v213_v49, %v217_v50  ;;  %v220_v58 = vld [vmem:[%s8201_s1 + $0x5d0] sm:$0xff] }
 0x13f   :  { %3536 = vmatprep.subr.bf16.mxu0 %v5191_v59  ;;  %3700 = vmatprep.subr.bf16.mxu1 %v5193_v60  ;;  %v224_v59 = vld [vmem:[%s8201_s1 + $0x5f0] sm:$0xff]  ;;  %v221_v60 = vld [vmem:[%s8201_s1 + $0x5d8] sm:$0xff] }
 0x140   :  { %v5255_v63 = vcombine.high %v220_v58, %v224_v59  ;;  %v5254_v5 = vcombine.low %v220_v58, %v224_v59  ;;  %v5256_v6 = vcombine.low %v221_v60, %v225_v61  ;;  %v281_v58 = vld [vmem:[%s8201_s1 + $0x7b8] sm:$0xff] }
 0x142   :  { %3537 = vmatpush1.bf16.msra.mxu0 %v5190_v0  ;;  %3701 = vmatpush1.bf16.msra.mxu1 %v5192_v1  ;;  %v5257_v0 = vcombine.high %v221_v60, %v225_v61  ;;  %v228_v1 = vld [vmem:[%s8201_s1 + $0x610] sm:$0xff] }
 0x143   :  { %3547 = vmatprep.subr.bf16.mxu0 %v5199_v2  ;;  %3711 = vmatprep.subr.bf16.mxu1 %v5201_v3  ;;  %v232_v2 = vld [vmem:[%s8201_s1 + $0x630] sm:$0xff]  ;;  %v229_v3 = vld [vmem:[%s8201_s1 + $0x618] sm:$0xff] }
 0x144   :  { %v5263_v7 = vcombine.high %v228_v1, %v232_v2  ;;  %v5262_v14 = vcombine.low %v228_v1, %v232_v2  ;;  %v5264_v16 = vcombine.low %v229_v3, %v233_v4  ;;  %v289_v1 = vld [vmem:[%s8201_s1 + $0x7f8] sm:$0xff] }
 0x145   :  { %3539 = vmatmul.mubr.bf16.vlgmr.msra.gmra.mrb[4].mxu0 %v6333_v12  ;;  %3703 = vmatmul.mubr.bf16.vlgmr.msra.gmra.mrb[4].mxu1 %v6333_v12  ;;  %v189_v12 = vld [vmem:[%s8201_s1 + $0x4d8] sm:$0xff] }
 0x146   :  { %3548 = vmatpush1.bf16.msra.mxu0 %v5198_v8  ;;  %3712 = vmatpush1.bf16.msra.mxu1 %v5200_v9  ;;  %v5225_v28 = vcombine.high %v189_v12, %v193_v24  ;;  %v5224_v34 = vcombine.low %v189_v12, %v193_v24  ;;  %v5265_v8 = vcombine.high %v229_v3, %v233_v4  ;;  %v236_v9 = vld [vmem:[%s8201_s1 + $0x650] sm:$0xff] }
 0x147   :  { %3549 = vmatprep.subr.bf16.mxu0 %v5207_v10  ;;  %3713 = vmatprep.subr.bf16.mxu1 %v5209_v11  ;;  %v240_v10 = vld [vmem:[%s8201_s1 + $0x670] sm:$0xff]  ;;  %v237_v11 = vld [vmem:[%s8201_s1 + $0x658] sm:$0xff] }
 0x148   :  { %3579 = vmatprep.mubr.bf16.mxu0 %v6354_v21  ;;  %3743 = vmatprep.mubr.bf16.mxu1 %v6354_v21  ;;  %v197_v21 = vld [vmem:[%s8201_s1 + $0x518] sm:$0xff]  ;;  %v5271_v17 = vcombine.high %v236_v9, %v240_v10  ;;  %v5270_v23 = vcombine.low %v236_v9, %v240_v10  ;;  %v5272_v12 = vcombine.low %v237_v11, %v241_v13 }
 0x149   :  { %v5233_v37 = vcombine.high %v197_v21, %v201_v32  ;;  %v5232_v43 = vcombine.low %v197_v21, %v201_v32  ;;  %v297_v9 = vld [vmem:[%s8201_s1 + $0x838] sm:$0xff] }
 0x14a   :  { %3550 = vmatpush1.bf16.msra.mxu0 %v5206_v57  ;;  %3714 = vmatpush1.bf16.msra.mxu1 %v5208_v53  ;;  %v5273_v57 = vcombine.high %v237_v11, %v241_v13  ;;  %v244_v53 = vld [vmem:[%s8201_s1 + $0x690] sm:$0xff] }
 0x14b   :  { %3551 = vmatprep.subr.bf16.mxu0 %v5215_v18  ;;  %3715 = vmatprep.subr.bf16.mxu1 %v5217_v19  ;;  %v248_v18 = vld [vmem:[%s8201_s1 + $0x6b0] sm:$0xff]  ;;  %v245_v19 = vld [vmem:[%s8201_s1 + $0x698] sm:$0xff] }
 0x14c   :  { %v5279_v24 = vcombine.high %v244_v53, %v248_v18  ;;  %v5278_v30 = vcombine.low %v244_v53, %v248_v18  ;;  %v5280_v21 = vcombine.low %v245_v19, %v249_v20  ;;  %v305_v53 = vld [vmem:[%s8201_s1 + $0x878] sm:$0xff] }
 0x14e   :  { %3552 = vmatpush1.bf16.msra.mxu0 %v5214_v26  ;;  %3716 = vmatpush1.bf16.msra.mxu1 %v5216_v27  ;;  %v5281_v26 = vcombine.high %v245_v19, %v249_v20  ;;  %v252_v27 = vld [vmem:[%s8201_s1 + $0x6d0] sm:$0xff] }
 0x14f   :  { %3553 = vmatprep.subr.bf16.mxu0 %v5223_v15  ;;  %3717 = vmatprep.subr.bf16.mxu1 %v5225_v28  ;;  %v256_v15 = vld [vmem:[%s8201_s1 + $0x6f0] sm:$0xff]  ;;  %v253_v28 = vld [vmem:[%s8201_s1 + $0x6d8] sm:$0xff] }
 0x150   :  { %v5287_v32 = vcombine.high %v252_v27, %v256_v15  ;;  %v5286_v40 = vcombine.low %v252_v27, %v256_v15  ;;  %v5288_v41 = vcombine.low %v253_v28, %v257_v29  ;;  %v313_v27 = vld [vmem:[%s8201_s1 + $0x8b8] sm:$0xff] }
 0x152   :  { %3554 = vmatpush1.bf16.msra.mxu0 %v5222_v33  ;;  %3718 = vmatpush1.bf16.msra.mxu1 %v5224_v34  ;;  %v5289_v33 = vcombine.high %v253_v28, %v257_v29  ;;  %v260_v34 = vld [vmem:[%s8201_s1 + $0x710] sm:$0xff] }
 0x153   :  { %3555 = vmatprep.subr.bf16.mxu0 %v5231_v35  ;;  %3719 = vmatprep.subr.bf16.mxu1 %v5233_v37  ;;  %v264_v35 = vld [vmem:[%s8201_s1 + $0x730] sm:$0xff]  ;;  %v261_v37 = vld [vmem:[%s8201_s1 + $0x718] sm:$0xff] }
 0x154   :  { %v5295_v25 = vcombine.high %v260_v34, %v264_v35  ;;  %v5294_v48 = vcombine.low %v260_v34, %v264_v35  ;;  %v5296_v49 = vcombine.low %v261_v37, %v265_v38  ;;  %v324_v35 = vld [vmem:[%s8201_s1 + $0x910] sm:$0xff] }
 0x156   :  { %3556 = vmatpush1.bf16.msra.mxu0 %v5230_v42  ;;  %3720 = vmatpush1.bf16.msra.mxu1 %v5232_v43  ;;  %v5297_v42 = vcombine.high %v261_v37, %v265_v38  ;;  %v268_v43 = vld [vmem:[%s8201_s1 + $0x750] sm:$0xff] }
 0x157   :  { %3557 = vmatprep.subr.bf16.mxu0 %v5239_v44  ;;  %3721 = vmatprep.subr.bf16.mxu1 %v5241_v46  ;;  %v272_v44 = vld [vmem:[%s8201_s1 + $0x770] sm:$0xff]  ;;  %v269_v46 = vld [vmem:[%s8201_s1 + $0x758] sm:$0xff] }
 0x158   :  { %v5303_v50 = vcombine.high %v268_v43, %v272_v44  ;;  %v5302_v59 = vcombine.low %v268_v43, %v272_v44  ;;  %v5304_v60 = vcombine.low %v269_v46, %v273_v47  ;;  %v328_v37 = vld [vmem:[%s8201_s1 + $0x930] sm:$0xff] }
 0x159   :  { %v332_v43 = vld [vmem:[%s8201_s1 + $0x950] sm:$0xff] }
 0x15a   :  { %3558 = vmatpush1.bf16.msra.mxu0 %v5238_v51  ;;  %3722 = vmatpush1.bf16.msra.mxu1 %v5240_v52  ;;  %v5305_v51 = vcombine.high %v269_v46, %v273_v47  ;;  %v276_v52 = vld [vmem:[%s8201_s1 + $0x790] sm:$0xff]  ;;  %v5359_v47 = vcombine.high %v324_v35, %v328_v37 }
 0x15b   :  { %3559 = vmatprep.subr.bf16.mxu0 %v5247_v54  ;;  %3723 = vmatprep.subr.bf16.mxu1 %v5249_v56  ;;  %v280_v54 = vld [vmem:[%s8201_s1 + $0x7b0] sm:$0xff]  ;;  %v277_v56 = vld [vmem:[%s8201_s1 + $0x798] sm:$0xff] }
 0x15c   :  { %v5311_v61 = vcombine.high %v276_v52, %v280_v54  ;;  %v5310_v2 = vcombine.low %v276_v52, %v280_v54  ;;  %v5312_v3 = vcombine.low %v277_v56, %v281_v58  ;;  %v336_v44 = vld [vmem:[%s8201_s1 + $0x970] sm:$0xff] }
 0x15d   :  { %v340_v52 = vld [vmem:[%s8201_s1 + $0x990] sm:$0xff] }
 0x15e   :  { %3560 = vmatpush1.bf16.msra.mxu0 %v5246_v62  ;;  %3724 = vmatpush1.bf16.msra.mxu1 %v5248_v39  ;;  %v5313_v62 = vcombine.high %v277_v56, %v281_v58  ;;  %v284_v39 = vld [vmem:[%s8201_s1 + $0x7d0] sm:$0xff]  ;;  %v5367_v58 = vcombine.high %v332_v43, %v336_v44 }
 0x15f   :  { %3561 = vmatprep.subr.bf16.mxu0 %v5255_v63  ;;  %3725 = vmatprep.subr.bf16.mxu1 %v5257_v0  ;;  %v288_v63 = vld [vmem:[%s8201_s1 + $0x7f0] sm:$0xff]  ;;  %v285_v0 = vld [vmem:[%s8201_s1 + $0x7d8] sm:$0xff] }
 0x160   :  { %v5319_v4 = vcombine.high %v284_v39, %v288_v63  ;;  %v5318_v10 = vcombine.low %v284_v39, %v288_v63  ;;  %v5320_v11 = vcombine.low %v285_v0, %v289_v1  ;;  %v344_v54 = vld [vmem:[%s8201_s1 + $0x9b0] sm:$0xff] }
 0x161   :  { %v348_v39 = vld [vmem:[%s8201_s1 + $0x9d0] sm:$0xff] }
 0x162   :  { %3562 = vmatpush1.bf16.msra.mxu0 %v5254_v5  ;;  %3726 = vmatpush1.bf16.msra.mxu1 %v5256_v6  ;;  %v5321_v5 = vcombine.high %v285_v0, %v289_v1  ;;  %v292_v6 = vld [vmem:[%s8201_s1 + $0x810] sm:$0xff]  ;;  %v5375_v1 = vcombine.high %v340_v52, %v344_v54 }
 0x163   :  { %3563 = vmatprep.subr.bf16.mxu0 %v5263_v7  ;;  %3727 = vmatprep.subr.bf16.mxu1 %v5265_v8  ;;  %v296_v7 = vld [vmem:[%s8201_s1 + $0x830] sm:$0xff]  ;;  %v293_v8 = vld [vmem:[%s8201_s1 + $0x818] sm:$0xff] }
 0x164   :  { %v5327_v13 = vcombine.high %v292_v6, %v296_v7  ;;  %v5326_v18 = vcombine.low %v292_v6, %v296_v7  ;;  %v5328_v19 = vcombine.low %v293_v8, %v297_v9  ;;  %v352_v63 = vld [vmem:[%s8201_s1 + $0x9f0] sm:$0xff] }
 0x165   :  { %v356_v6 = vld [vmem:[%s8201_s1 + $0xa10] sm:$0xff] }
 0x166   :  { %3564 = vmatpush1.bf16.msra.mxu0 %v5262_v14  ;;  %3728 = vmatpush1.bf16.msra.mxu1 %v5264_v16  ;;  %v5329_v14 = vcombine.high %v293_v8, %v297_v9  ;;  %v300_v16 = vld [vmem:[%s8201_s1 + $0x850] sm:$0xff]  ;;  %v5383_v9 = vcombine.high %v348_v39, %v352_v63 }
 0x167   :  { %3565 = vmatprep.subr.bf16.mxu0 %v5271_v17  ;;  %3729 = vmatprep.subr.bf16.mxu1 %v5273_v57  ;;  %v304_v17 = vld [vmem:[%s8201_s1 + $0x870] sm:$0xff]  ;;  %v301_v57 = vld [vmem:[%s8201_s1 + $0x858] sm:$0xff] }
 0x168   :  { %v5335_v20 = vcombine.high %v300_v16, %v304_v17  ;;  %v5334_v15 = vcombine.low %v300_v16, %v304_v17  ;;  %v5336_v28 = vcombine.low %v301_v57, %v305_v53  ;;  %v360_v7 = vld [vmem:[%s8201_s1 + $0xa30] sm:$0xff] }
 0x169   :  { %v364_v16 = vld [vmem:[%s8201_s1 + $0xa50] sm:$0xff] }
 0x16a   :  { %3566 = vmatpush1.bf16.msra.mxu0 %v5270_v23  ;;  %3730 = vmatpush1.bf16.msra.mxu1 %v5272_v12  ;;  %v5337_v23 = vcombine.high %v301_v57, %v305_v53  ;;  %v308_v12 = vld [vmem:[%s8201_s1 + $0x890] sm:$0xff]  ;;  %v5391_v53 = vcombine.high %v356_v6, %v360_v7 }
 0x16b   :  { %3567 = vmatprep.subr.bf16.mxu0 %v5279_v24  ;;  %3731 = vmatprep.subr.bf16.mxu1 %v5281_v26  ;;  %v312_v24 = vld [vmem:[%s8201_s1 + $0x8b0] sm:$0xff]  ;;  %v309_v26 = vld [vmem:[%s8201_s1 + $0x898] sm:$0xff] }
 0x16c   :  { %v5343_v29 = vcombine.high %v308_v12, %v312_v24  ;;  %v5342_v34 = vcombine.low %v308_v12, %v312_v24  ;;  %v5344_v38 = vcombine.low %v309_v26, %v313_v27  ;;  %v368_v17 = vld [vmem:[%s8201_s1 + $0xa70] sm:$0xff] }
 0x16d   :  { %v5399_v24 = vcombine.high %v364_v16, %v368_v17 }
 0x16e   :  { %3568 = vmatpush1.bf16.msra.mxu0 %v5278_v30  ;;  %3732 = vmatpush1.bf16.msra.mxu1 %v5280_v21  ;;  %v316_v30 = vld [vmem:[%s8201_s1 + $0x8d0] sm:$0xff]  ;;  %v5345_v21 = vcombine.high %v309_v26, %v313_v27 }
 0x16f   :  { %3569 = vmatprep.subr.bf16.mxu0 %v5287_v32  ;;  %3733 = vmatprep.subr.bf16.mxu1 %v5289_v33  ;;  %v320_v32 = vld [vmem:[%s8201_s1 + $0x8f0] sm:$0xff]  ;;  %v321_v33 = vld [vmem:[%s8201_s1 + $0x8f8] sm:$0xff] }
 0x170   :  { %v372_v27 = vld [vmem:[%s8201_s1 + $0xa90] sm:$0xff] }
 0x172   :  { %3570 = vmatpush1.bf16.msra.mxu0 %v5286_v40  ;;  %3734 = vmatpush1.bf16.msra.mxu1 %v5288_v41  ;;  %v5351_v40 = vcombine.high %v316_v30, %v320_v32  ;;  %v325_v41 = vld [vmem:[%s8201_s1 + $0x918] sm:$0xff] }
 0x173   :  { %3571 = vmatprep.subr.bf16.mxu0 %v5295_v25  ;;  %3735 = vmatprep.subr.bf16.mxu1 %v5297_v42  ;;  %v5350_v42 = vcombine.low %v316_v30, %v320_v32  ;;  %v5398_v30 = vcombine.low %v364_v16, %v368_v17  ;;  %v421_v16 = vld [vmem:[%s8201_s1 + $0xc18] sm:$0xff] }
 0x174   :  { %v425_v17 = vld [vmem:[%s8201_s1 + $0xc38] sm:$0xff] }
 0x176   :  { %3572 = vmatpush1.bf16.msra.mxu0 %v5294_v48  ;;  %3736 = vmatpush1.bf16.msra.mxu1 %v5296_v49  ;;  %v333_v48 = vld [vmem:[%s8201_s1 + $0x958] sm:$0xff] }
 0x177   :  { %3573 = vmatprep.subr.bf16.mxu0 %v5303_v50  ;;  %3737 = vmatprep.subr.bf16.mxu1 %v5305_v51  ;;  %v337_v49 = vld [vmem:[%s8201_s1 + $0x978] sm:$0xff]  ;;  %v5358_v51 = vcombine.low %v324_v35, %v328_v37 }
 0x178   :  { %v5368_v0 = vcombine.low %v333_v48, %v337_v49  ;;  %v381_v35 = vld [vmem:[%s8201_s1 + $0xad8] sm:$0xff] }
 0x179   :  { %v385_v37 = vld [vmem:[%s8201_s1 + $0xaf8] sm:$0xff] }
 0x17a   :  { %3574 = vmatpush1.bf16.msra.mxu0 %v5302_v59  ;;  %3738 = vmatpush1.bf16.msra.mxu1 %v5304_v60  ;;  %v341_v59 = vld [vmem:[%s8201_s1 + $0x998] sm:$0xff] }
 0x17b   :  { %3575 = vmatprep.subr.bf16.mxu0 %v5311_v61  ;;  %3739 = vmatprep.subr.bf16.mxu1 %v5313_v62  ;;  %v345_v60 = vld [vmem:[%s8201_s1 + $0x9b8] sm:$0xff]  ;;  %v5369_v61 = vcombine.high %v333_v48, %v337_v49  ;;  %v5366_v62 = vcombine.low %v332_v43, %v336_v44 }
 0x17c   :  { %v5376_v8 = vcombine.low %v341_v59, %v345_v60  ;;  %v389_v43 = vld [vmem:[%s8201_s1 + $0xb18] sm:$0xff] }
 0x17d   :  { %v393_v44 = vld [vmem:[%s8201_s1 + $0xb38] sm:$0xff] }
 0x17e   :  { %3576 = vmatpush1.bf16.msra.mxu0 %v5310_v2  ;;  %3740 = vmatpush1.bf16.msra.mxu1 %v5312_v3  ;;  %v349_v2 = vld [vmem:[%s8201_s1 + $0x9d8] sm:$0xff]  ;;  %v5425_v49 = vcombine.high %v389_v43, %v393_v44 }
 0x17f   :  { %3577 = vmatprep.subr.bf16.mxu0 %v5319_v4  ;;  %3741 = vmatprep.subr.bf16.mxu1 %v5321_v5  ;;  %v353_v3 = vld [vmem:[%s8201_s1 + $0x9f8] sm:$0xff]  ;;  %v5377_v4 = vcombine.high %v341_v59, %v345_v60  ;;  %v5374_v5 = vcombine.low %v340_v52, %v344_v54 }
 0x180   :  { %v5384_v57 = vcombine.low %v349_v2, %v353_v3  ;;  %v397_v52 = vld [vmem:[%s8201_s1 + $0xb58] sm:$0xff] }
 0x181   :  { %v401_v54 = vld [vmem:[%s8201_s1 + $0xb78] sm:$0xff] }
 0x182   :  { %3578 = vmatpush1.bf16.msra.mxu0 %v5318_v10  ;;  %3742 = vmatpush1.bf16.msra.mxu1 %v5320_v11  ;;  %v357_v10 = vld [vmem:[%s8201_s1 + $0xa18] sm:$0xff]  ;;  %v5433_v60 = vcombine.high %v397_v52, %v401_v54 }
 0x183   :  { %3588 = vmatprep.subr.bf16.mxu0 %v5327_v13  ;;  %3752 = vmatprep.subr.bf16.mxu1 %v5329_v14  ;;  %v361_v11 = vld [vmem:[%s8201_s1 + $0xa38] sm:$0xff]  ;;  %v5385_v13 = vcombine.high %v349_v2, %v353_v3  ;;  %v5382_v14 = vcombine.low %v348_v39, %v352_v63 }
 0x184   :  { %v5392_v12 = vcombine.low %v357_v10, %v361_v11  ;;  %v405_v39 = vld [vmem:[%s8201_s1 + $0xb98] sm:$0xff] }
 0x185   :  { %3580 = vmatmul.mubr.bf16.vlgmr.msra.gmra.mrb[4].mxu0 %v6542_v22  ;;  %3744 = vmatmul.mubr.bf16.vlgmr.msra.gmra.mrb[4].mxu1 %v6542_v22  ;;  %v317_v22 = vld [vmem:[%s8201_s1 + $0x8d8] sm:$0xff] }
 0x186   :  { %3589 = vmatpush1.bf16.msra.mxu0 %v5326_v18  ;;  %3753 = vmatpush1.bf16.msra.mxu1 %v5328_v19  ;;  %v5353_v25 = vcombine.high %v317_v22, %v321_v33  ;;  %v5352_v46 = vcombine.low %v317_v22, %v321_v33  ;;  %v365_v18 = vld [vmem:[%s8201_s1 + $0xa58] sm:$0xff]  ;;  %v5393_v19 = vcombine.high %v357_v10, %v361_v11  ;;  %v380_v33 = vld [vmem:[%s8201_s1 + $0xad0] sm:$0xff] }
 0x187   :  { %3590 = vmatprep.subr.bf16.mxu0 %v5335_v20  ;;  %3754 = vmatprep.subr.bf16.mxu1 %v5337_v23  ;;  %v369_v20 = vld [vmem:[%s8201_s1 + $0xa78] sm:$0xff]  ;;  %v5390_v23 = vcombine.low %v356_v6, %v360_v7 }
 0x188   :  { %3620 = vmatprep.mubr.bf16.mxu0 %v6563_v31  ;;  %3784 = vmatprep.mubr.bf16.mxu1 %v6563_v31  ;;  %v329_v31 = vld [vmem:[%s8201_s1 + $0x938] sm:$0xff]  ;;  %v5401_v26 = vcombine.high %v365_v18, %v369_v20 }
 0x189   :  { %v5361_v50 = vcombine.high %v325_v41, %v329_v31  ;;  %v5360_v56 = vcombine.low %v325_v41, %v329_v31  ;;  %v5417_v31 = vcombine.high %v381_v35, %v385_v37  ;;  %v409_v63 = vld [vmem:[%s8201_s1 + $0xbb8] sm:$0xff] }
 0x18a   :  { %3591 = vmatpush1.bf16.msra.mxu0 %v5334_v15  ;;  %3755 = vmatpush1.bf16.msra.mxu1 %v5336_v28  ;;  %v376_v15 = vld [vmem:[%s8201_s1 + $0xab0] sm:$0xff]  ;;  %v373_v28 = vld [vmem:[%s8201_s1 + $0xa98] sm:$0xff]  ;;  %v5441_v3 = vcombine.high %v405_v39, %v409_v63 }
 0x18b   :  { %3592 = vmatprep.subr.bf16.mxu0 %v5343_v29  ;;  %3756 = vmatprep.subr.bf16.mxu1 %v5345_v21  ;;  %v377_v29 = vld [vmem:[%s8201_s1 + $0xab8] sm:$0xff]  ;;  %v5400_v21 = vcombine.low %v365_v18, %v369_v20  ;;  %v5407_v32 = vcombine.high %v372_v27, %v376_v15  ;;  %v428_v20 = vld [vmem:[%s8201_s1 + $0xc50] sm:$0xff] }
 0x18c   :  { %v5409_v22 = vcombine.high %v373_v28, %v377_v29  ;;  %v413_v6 = vld [vmem:[%s8201_s1 + $0xbd8] sm:$0xff] }
 0x18d   :  { %v417_v7 = vld [vmem:[%s8201_s1 + $0xbf8] sm:$0xff] }
 0x18e   :  { %3593 = vmatpush1.bf16.msra.mxu0 %v5342_v34  ;;  %3757 = vmatpush1.bf16.msra.mxu1 %v5344_v38  ;;  %v384_v34 = vld [vmem:[%s8201_s1 + $0xaf0] sm:$0xff]  ;;  %v5406_v38 = vcombine.low %v372_v27, %v376_v15  ;;  %v5449_v11 = vcombine.high %v413_v6, %v417_v7  ;;  %v5456_v27 = vcombine.low %v421_v16, %v425_v17 }
 0x18f   :  { %3594 = vmatprep.subr.bf16.mxu0 %v5351_v40  ;;  %3758 = vmatprep.subr.bf16.mxu1 %v5353_v25  ;;  %v5408_v40 = vcombine.low %v373_v28, %v377_v29  ;;  %v5415_v41 = vcombine.high %v380_v33, %v384_v34  ;;  %v388_v25 = vld [vmem:[%s8201_s1 + $0xb10] sm:$0xff] }
 0x190   :  { %v436_v29 = vld [vmem:[%s8201_s1 + $0xc90] sm:$0xff] }
 0x192   :  { %3595 = vmatpush1.bf16.msra.mxu0 %v5350_v42  ;;  %3759 = vmatpush1.bf16.msra.mxu1 %v5352_v46  ;;  %v392_v42 = vld [vmem:[%s8201_s1 + $0xb30] sm:$0xff]  ;;  %v5414_v46 = vcombine.low %v380_v33, %v384_v34 }
 0x193   :  { %3596 = vmatprep.subr.bf16.mxu0 %v5359_v47  ;;  %3760 = vmatprep.subr.bf16.mxu1 %v5361_v50  ;;  %v5416_v47 = vcombine.low %v381_v35, %v385_v37  ;;  %v5423_v48 = vcombine.high %v388_v25, %v392_v42  ;;  %v396_v50 = vld [vmem:[%s8201_s1 + $0xb50] sm:$0xff] }
 0x194   :  { %v444_v37 = vld [vmem:[%s8201_s1 + $0xcd0] sm:$0xff] }
 0x196   :  { %3597 = vmatpush1.bf16.msra.mxu0 %v5358_v51  ;;  %3761 = vmatpush1.bf16.msra.mxu1 %v5360_v56  ;;  %v400_v51 = vld [vmem:[%s8201_s1 + $0xb70] sm:$0xff]  ;;  %v5422_v56 = vcombine.low %v388_v25, %v392_v42 }
 0x197   :  { %3598 = vmatprep.subr.bf16.mxu0 %v5367_v58  ;;  %3762 = vmatprep.subr.bf16.mxu1 %v5369_v61  ;;  %v5424_v58 = vcombine.low %v389_v43, %v393_v44  ;;  %v5431_v59 = vcombine.high %v396_v50, %v400_v51  ;;  %v404_v61 = vld [vmem:[%s8201_s1 + $0xb90] sm:$0xff] }
 0x198   :  { %v452_v43 = vld [vmem:[%s8201_s1 + $0xd10] sm:$0xff] }
 0x199   :  { %v456_v44 = vld [vmem:[%s8201_s1 + $0xd30] sm:$0xff] }
 0x19a   :  { %3599 = vmatpush1.bf16.msra.mxu0 %v5366_v62  ;;  %3763 = vmatpush1.bf16.msra.mxu1 %v5368_v0  ;;  %v408_v62 = vld [vmem:[%s8201_s1 + $0xbb0] sm:$0xff]  ;;  %v5430_v0 = vcombine.low %v396_v50, %v400_v51 }
 0x19b   :  { %3600 = vmatprep.subr.bf16.mxu0 %v5375_v1  ;;  %3764 = vmatprep.subr.bf16.mxu1 %v5377_v4  ;;  %v5432_v1 = vcombine.low %v397_v52, %v401_v54  ;;  %v5439_v2 = vcombine.high %v404_v61, %v408_v62  ;;  %v412_v4 = vld [vmem:[%s8201_s1 + $0xbd0] sm:$0xff]  ;;  %v461_v54 = vld [vmem:[%s8201_s1 + $0xd58] sm:$0xff] }
 0x19c   :  { %v460_v51 = vld [vmem:[%s8201_s1 + $0xd50] sm:$0xff] }
 0x19d   :  { %v464_v52 = vld [vmem:[%s8201_s1 + $0xd70] sm:$0xff] }
 0x19e   :  { %3601 = vmatpush1.bf16.msra.mxu0 %v5374_v5  ;;  %3765 = vmatpush1.bf16.msra.mxu1 %v5376_v8  ;;  %v416_v5 = vld [vmem:[%s8201_s1 + $0xbf0] sm:$0xff]  ;;  %v5438_v8 = vcombine.low %v404_v61, %v408_v62 }
 0x19f   :  { %3602 = vmatprep.subr.bf16.mxu0 %v5383_v9  ;;  %3766 = vmatprep.subr.bf16.mxu1 %v5385_v13  ;;  %v5440_v9 = vcombine.low %v405_v39, %v409_v63  ;;  %v5447_v10 = vcombine.high %v412_v4, %v416_v5  ;;  %v420_v13 = vld [vmem:[%s8201_s1 + $0xc10] sm:$0xff]  ;;  %v469_v63 = vld [vmem:[%s8201_s1 + $0xd98] sm:$0xff] }
 0x1a0   :  { %v468_v62 = vld [vmem:[%s8201_s1 + $0xd90] sm:$0xff] }
 0x1a1   :  { %v472_v39 = vld [vmem:[%s8201_s1 + $0xdb0] sm:$0xff] }
 0x1a2   :  { %3603 = vmatpush1.bf16.msra.mxu0 %v5382_v14  ;;  %3767 = vmatpush1.bf16.msra.mxu1 %v5384_v57  ;;  %v424_v14 = vld [vmem:[%s8201_s1 + $0xc30] sm:$0xff]  ;;  %v5446_v57 = vcombine.low %v412_v4, %v416_v5 }
 0x1a3   :  { %3604 = vmatprep.subr.bf16.mxu0 %v5391_v53  ;;  %3768 = vmatprep.subr.bf16.mxu1 %v5393_v19  ;;  %v5448_v53 = vcombine.low %v413_v6, %v417_v7  ;;  %v5455_v18 = vcombine.high %v420_v13, %v424_v14  ;;  %v5457_v19 = vcombine.high %v421_v16, %v425_v17  ;;  %v476_v6 = vld [vmem:[%s8201_s1 + $0xdd0] sm:$0xff] }
 0x1a4   :  { %v480_v7 = vld [vmem:[%s8201_s1 + $0xdf0] sm:$0xff]  ;;  %v5502_v16 = vcombine.low %v468_v62, %v472_v39 }
 0x1a6   :  { %3605 = vmatpush1.bf16.msra.mxu0 %v5390_v23  ;;  %3769 = vmatpush1.bf16.msra.mxu1 %v5392_v12  ;;  %v432_v23 = vld [vmem:[%s8201_s1 + $0xc70] sm:$0xff]  ;;  %v429_v12 = vld [vmem:[%s8201_s1 + $0xc58] sm:$0xff] }
 0x1a7   :  { %3606 = vmatprep.subr.bf16.mxu0 %v5399_v24  ;;  %3770 = vmatprep.subr.bf16.mxu1 %v5401_v26  ;;  %v433_v24 = vld [vmem:[%s8201_s1 + $0xc78] sm:$0xff]  ;;  %v5454_v26 = vcombine.low %v420_v13, %v424_v14  ;;  %v5463_v15 = vcombine.high %v428_v20, %v432_v23 }
 0x1a8   :  { %v5465_v28 = vcombine.high %v429_v12, %v433_v24  ;;  %v5464_v33 = vcombine.low %v429_v12, %v433_v24  ;;  %v488_v12 = vld [vmem:[%s8201_s1 + $0xe30] sm:$0xff]  ;;  %v485_v24 = vld [vmem:[%s8201_s1 + $0xe18] sm:$0xff] }
 0x1aa   :  { %3607 = vmatpush1.bf16.msra.mxu0 %v5398_v30  ;;  %3771 = vmatpush1.bf16.msra.mxu1 %v5400_v21  ;;  %v440_v30 = vld [vmem:[%s8201_s1 + $0xcb0] sm:$0xff]  ;;  %v437_v21 = vld [vmem:[%s8201_s1 + $0xc98] sm:$0xff] }
 0x1ab   :  { %3608 = vmatprep.subr.bf16.mxu0 %v5407_v32  ;;  %3772 = vmatprep.subr.bf16.mxu1 %v5409_v22  ;;  %v441_v32 = vld [vmem:[%s8201_s1 + $0xcb8] sm:$0xff]  ;;  %v5462_v22 = vcombine.low %v428_v20, %v432_v23  ;;  %v5471_v34 = vcombine.high %v436_v29, %v440_v30  ;;  %v484_v23 = vld [vmem:[%s8201_s1 + $0xe10] sm:$0xff] }
 0x1ac   :  { %v5473_v35 = vcombine.high %v437_v21, %v441_v32 }
 0x1ae   :  { %3609 = vmatpush1.bf16.msra.mxu0 %v5406_v38  ;;  %3773 = vmatpush1.bf16.msra.mxu1 %v5408_v40  ;;  %v448_v38 = vld [vmem:[%s8201_s1 + $0xcf0] sm:$0xff]  ;;  %v449_v40 = vld [vmem:[%s8201_s1 + $0xcf8] sm:$0xff] }
 0x1af   :  { %3610 = vmatprep.subr.bf16.mxu0 %v5415_v41  ;;  %3774 = vmatprep.subr.bf16.mxu1 %v5417_v31  ;;  %v5470_v41 = vcombine.low %v436_v29, %v440_v30  ;;  %v5472_v31 = vcombine.low %v437_v21, %v441_v32  ;;  %v5479_v25 = vcombine.high %v444_v37, %v448_v38  ;;  %v492_v30 = vld [vmem:[%s8201_s1 + $0xe50] sm:$0xff]  ;;  %v493_v32 = vld [vmem:[%s8201_s1 + $0xe58] sm:$0xff] }
 0x1b0   :  { %v496_v21 = vld [vmem:[%s8201_s1 + $0xe70] sm:$0xff] }
 0x1b2   :  { %3611 = vmatpush1.bf16.msra.mxu0 %v5414_v46  ;;  %3775 = vmatpush1.bf16.msra.mxu1 %v5416_v47  ;;  %v457_v46 = vld [vmem:[%s8201_s1 + $0xd38] sm:$0xff]  ;;  %v5478_v47 = vcombine.low %v444_v37, %v448_v38  ;;  %v500_v38 = vld [vmem:[%s8201_s1 + $0xe90] sm:$0xff] }
 0x1b3   :  { %3612 = vmatprep.subr.bf16.mxu0 %v5423_v48  ;;  %3776 = vmatprep.subr.bf16.mxu1 %v5425_v49  ;;  %v5487_v49 = vcombine.high %v452_v43, %v456_v44 }
 0x1b6   :  { %3613 = vmatpush1.bf16.msra.mxu0 %v5422_v56  ;;  %3777 = vmatpush1.bf16.msra.mxu1 %v5424_v58  ;;  %v465_v56 = vld [vmem:[%s8201_s1 + $0xd78] sm:$0xff]  ;;  %v5486_v58 = vcombine.low %v452_v43, %v456_v44  ;;  %v508_v44 = vld [vmem:[%s8201_s1 + $0xed0] sm:$0xff] }
 0x1b7   :  { %3614 = vmatprep.subr.bf16.mxu0 %v5431_v59  ;;  %3778 = vmatprep.subr.bf16.mxu1 %v5433_v60  ;;  %v5495_v60 = vcombine.high %v460_v51, %v464_v52  ;;  %v5497_v61 = vcombine.high %v461_v54, %v465_v56 }
 0x1ba   :  { %3615 = vmatpush1.bf16.msra.mxu0 %v5430_v0  ;;  %3779 = vmatpush1.bf16.msra.mxu1 %v5432_v1  ;;  %v473_v0 = vld [vmem:[%s8201_s1 + $0xdb8] sm:$0xff]  ;;  %v5494_v1 = vcombine.low %v460_v51, %v464_v52  ;;  %v516_v52 = vld [vmem:[%s8201_s1 + $0xf10] sm:$0xff] }
 0x1bb   :  { %3616 = vmatprep.subr.bf16.mxu0 %v5439_v2  ;;  %3780 = vmatprep.subr.bf16.mxu1 %v5441_v3  ;;  %v5496_v2 = vcombine.low %v461_v54, %v465_v56  ;;  %v5503_v3 = vcombine.high %v468_v62, %v472_v39  ;;  %v5505_v5 = vcombine.high %v469_v63, %v473_v0  ;;  %v520_v54 = vld [vmem:[%s8201_s1 + $0xf30] sm:$0xff]  ;;  %v517_v56 = vld [vmem:[%s8201_s1 + $0xf18] sm:$0xff] }
 0x1bc   :  { %v524_v39 = vld [vmem:[%s8201_s1 + $0xf50] sm:$0xff] }
 0x1be   :  { %3617 = vmatpush1.bf16.msra.mxu0 %v5438_v8  ;;  %3781 = vmatpush1.bf16.msra.mxu1 %v5440_v9 }
 0x1bf   :  { %3618 = vmatprep.subr.bf16.mxu0 %v5447_v10  ;;  %3782 = vmatprep.subr.bf16.mxu1 %v5449_v11  ;;  %v477_v10 = vld [vmem:[%s8201_s1 + $0xdd8] sm:$0xff] }
 0x1c0   :  { %v481_v11 = vld [vmem:[%s8201_s1 + $0xdf8] sm:$0xff] }
 0x1c1   :  { %v5513_v20 = vcombine.high %v477_v10, %v481_v11 }
 0x1c2   :  { %3619 = vmatpush1.bf16.msra.mxu0 %v5446_v57  ;;  %3783 = vmatpush1.bf16.msra.mxu1 %v5448_v53  ;;  %v5504_v53 = vcombine.low %v469_v63, %v473_v0  ;;  %v528_v63 = vld [vmem:[%s8201_s1 + $0xf70] sm:$0xff]  ;;  %v525_v0 = vld [vmem:[%s8201_s1 + $0xf58] sm:$0xff] }
 0x1c3   :  { %3629 = vmatprep.subr.bf16.mxu0 %v5455_v18  ;;  %3793 = vmatprep.subr.bf16.mxu1 %v5457_v19  ;;  %v5511_v18 = vcombine.high %v476_v6, %v480_v7 }
 0x1c5   :  { %3621 = vmatmul.mubr.bf16.vlgmr.msra.gmra.mrb[4].mxu0 %v6751_v36  ;;  %3785 = vmatmul.mubr.bf16.vlgmr.msra.gmra.mrb[4].mxu1 %v6751_v36  ;;  %v445_v36 = vld [vmem:[%s8201_s1 + $0xcd8] sm:$0xff] }
 0x1c6   :  { %3630 = vmatpush1.bf16.msra.mxu0 %v5454_v26  ;;  %3794 = vmatpush1.bf16.msra.mxu1 %v5456_v27  ;;  %v5481_v42 = vcombine.high %v445_v36, %v449_v40  ;;  %v5480_v48 = vcombine.low %v445_v36, %v449_v40  ;;  %v489_v26 = vld [vmem:[%s8201_s1 + $0xe38] sm:$0xff]  ;;  %v5510_v27 = vcombine.low %v476_v6, %v480_v7  ;;  %v504_v36 = vld [vmem:[%s8201_s1 + $0xeb0] sm:$0xff] }
 0x1c7   :  { %3631 = vmatprep.subr.bf16.mxu0 %v5463_v15  ;;  %3795 = vmatprep.subr.bf16.mxu1 %v5465_v28  ;;  %v5512_v15 = vcombine.low %v477_v10, %v481_v11  ;;  %v5519_v28 = vcombine.high %v484_v23, %v488_v12  ;;  %v5521_v29 = vcombine.high %v485_v24, %v489_v26  ;;  %v501_v40 = vld [vmem:[%s8201_s1 + $0xe98] sm:$0xff]  ;;  %v532_v7 = vld [vmem:[%s8201_s1 + $0xf90] sm:$0xff] }
 0x1c8   :  { %3661 = vmatprep.mubr.bf16.mxu0 %v6772_v45  ;;  %3825 = vmatprep.mubr.bf16.mxu1 %v6772_v45  ;;  %v453_v45 = vld [vmem:[%s8201_s1 + $0xd18] sm:$0xff]  ;;  %v536_v10 = vld [vmem:[%s8201_s1 + $0xfb0] sm:$0xff] }
 0x1c9   :  { %v5489_v50 = vcombine.high %v453_v45, %v457_v46  ;;  %v5488_v59 = vcombine.low %v453_v45, %v457_v46  ;;  %v512_v45 = vld [vmem:[%s8201_s1 + $0xef0] sm:$0xff]  ;;  %v509_v46 = vld [vmem:[%s8201_s1 + $0xed8] sm:$0xff] }
 0x1ca   :  { %3632 = vmatpush1.bf16.msra.mxu0 %v5462_v22  ;;  %3796 = vmatpush1.bf16.msra.mxu1 %v5464_v33  ;;  %v497_v22 = vld [vmem:[%s8201_s1 + $0xe78] sm:$0xff]  ;;  %v5518_v33 = vcombine.low %v484_v23, %v488_v12  ;;  %v5566_v12 = vcombine.low %v532_v7, %v536_v10 }
 0x1cb   :  { %3633 = vmatprep.subr.bf16.mxu0 %v5471_v34  ;;  %3797 = vmatprep.subr.bf16.mxu1 %v5473_v35  ;;  %v5520_v34 = vcombine.low %v485_v24, %v489_v26  ;;  %v5527_v35 = vcombine.high %v492_v30, %v496_v21  ;;  %v5529_v37 = vcombine.high %v493_v32, %v497_v22  ;;  %v533_v11 = vld [vmem:[%s8201_s1 + $0xf98] sm:$0xff] }
 0x1cc   :  { %v545_v23 = vld [vmem:[%s8201_s1 + $0xff8] sm:$0xff] }
 0x1ce   :  { %3634 = vmatpush1.bf16.msra.mxu0 %v5470_v41  ;;  %3798 = vmatpush1.bf16.msra.mxu1 %v5472_v31  ;;  %v505_v41 = vld [vmem:[%s8201_s1 + $0xeb8] sm:$0xff]  ;;  %v5526_v31 = vcombine.low %v492_v30, %v496_v21  ;;  %v5903_v30 = vld [vmem:[%s8203_s3] ss:$8 sps:$4 sm:$0xff]  }
 0x1cf   :  { %3635 = vmatprep.subr.bf16.mxu0 %v5479_v25  ;;  %3799 = vmatprep.subr.bf16.mxu1 %v5481_v42  ;;  %v5528_v25 = vcombine.low %v493_v32, %v497_v22  ;;  %v5535_v42 = vcombine.high %v500_v38, %v504_v36  ;;  %v5537_v43 = vcombine.high %v501_v40, %v505_v41  ;;  %v5908_v21 = vld [vmem:[%s8203_s3 + $0x14] ss:$8 sps:$4 sm:$0xff]   ;;  %v5906_v32 = vld [vmem:[%s8203_s3 + $0x10] ss:$8 sps:$4 sm:$0xff]   ;;  %v5911_v22 = vld [vmem:[%s8203_s3 + $0x24] ss:$8 sps:$4 sm:$0xff]  }
 0x1d2   :  { %3636 = vmatpush1.bf16.msra.mxu0 %v5478_v47  ;;  %3800 = vmatpush1.bf16.msra.mxu1 %v5480_v48  ;;  %v513_v47 = vld [vmem:[%s8201_s1 + $0xef8] sm:$0xff]  ;;  %v5534_v48 = vcombine.low %v500_v38, %v504_v36 }
 0x1d3   :  { %3637 = vmatprep.subr.bf16.mxu0 %v5487_v49  ;;  %3801 = vmatprep.subr.bf16.mxu1 %v5489_v50  ;;  %v5536_v49 = vcombine.low %v501_v40, %v505_v41  ;;  %v5543_v50 = vcombine.high %v508_v44, %v512_v45  ;;  %v5545_v51 = vcombine.high %v509_v46, %v513_v47  ;;  %v5920_v38 = vld [vmem:[%s8203_s3 + $0x54] ss:$8 sps:$4 sm:$0xff]   ;;  %v5918_v36 = vld [vmem:[%s8203_s3 + $0x50] ss:$8 sps:$4 sm:$0xff]   ;;  %v5923_v40 = vld [vmem:[%s8203_s3 + $0x64] ss:$8 sps:$4 sm:$0xff]  }
 0x1d4   :  { %v5921_v41 = vld [vmem:[%s8203_s3 + $0x60] ss:$8 sps:$4 sm:$0xff]  }
 0x1d6   :  { %3638 = vmatpush1.bf16.msra.mxu0 %v5486_v58  ;;  %3802 = vmatpush1.bf16.msra.mxu1 %v5488_v59  ;;  %v521_v58 = vld [vmem:[%s8201_s1 + $0xf38] sm:$0xff]  ;;  %v5542_v59 = vcombine.low %v508_v44, %v512_v45 }
 0x1d7   :  { %3639 = vmatprep.subr.bf16.mxu0 %v5495_v60  ;;  %3803 = vmatprep.subr.bf16.mxu1 %v5497_v61  ;;  %v5544_v60 = vcombine.low %v509_v46, %v513_v47  ;;  %v5551_v61 = vcombine.high %v516_v52, %v520_v54  ;;  %v5553_v62 = vcombine.high %v517_v56, %v521_v58  ;;  %v5932_v44 = vld [vmem:[%s8203_s3 + $0x94] ss:$8 sps:$4 sm:$0xff]   ;;  %v5930_v45 = vld [vmem:[%s8203_s3 + $0x90] ss:$8 sps:$4 sm:$0xff]   ;;  %v5935_v46 = vld [vmem:[%s8203_s3 + $0xa4] ss:$8 sps:$4 sm:$0xff]  }
 0x1d8   :  { %v7620_v4 = vpop.f32.mrb[0].mxu0  ;;  %v7628_v8 = vpop.f32.mrb[0].mxu1  ;;  %v5933_v47 = vld [vmem:[%s8203_s3 + $0xa0] ss:$8 sps:$4 sm:$0xff]  }
 0x1d9   :  { %v7630_v9 = vpop.f32.mrb[1].mxu0  ;;  %v7638_v13 = vpop.f32.mrb[1].mxu1 }
 0x1da   :  { %v3339_v14 = vpop.f32.mrb[2].mxu0  ;;  %3640 = vmatpush1.bf16.msra.mxu0 %v5494_v1  ;;  %v3503_v17 = vpop.f32.mrb[2].mxu1  ;;  %3804 = vmatpush1.bf16.msra.mxu1 %v5496_v2  ;;  %v529_v1 = vld [vmem:[%s8201_s1 + $0xf78] sm:$0xff]  ;;  %v5550_v2 = vcombine.low %v516_v52, %v520_v54 }
 0x1db   :  { %v3340_v57 = vpop.f32.mrb[3].mxu0  ;;  %3641 = vmatprep.subr.bf16.mxu0 %v5503_v3  ;;  %v3504_v19 = vpop.f32.mrb[3].mxu1  ;;  %3805 = vmatprep.subr.bf16.mxu1 %v5505_v5  ;;  %v5552_v3 = vcombine.low %v517_v56, %v521_v58  ;;  %v5559_v5 = vcombine.high %v524_v39, %v528_v63  ;;  %v5561_v6 = vcombine.high %v525_v0, %v529_v1  ;;  %v537_v14 = vld [vmem:[%s8201_s1 + $0xfb8] sm:$0xff]  ;;  %v5947_v56 = vld [vmem:[%s8203_s3 + $0xe4] ss:$8 sps:$4 sm:$0xff]  }
 0x1dc   :  { %v5560_v17 = vcombine.low %v525_v0, %v529_v1  ;;  %v5567_v57 = vcombine.high %v532_v7, %v536_v10  ;;  %v544_v19 = vld [vmem:[%s8201_s1 + $0xff0] sm:$0xff]  ;;  %v5568_v24 = vcombine.low %v533_v11, %v537_v14  ;;  %v5945_v58 = vld [vmem:[%s8203_s3 + $0xe0] ss:$8 sps:$4 sm:$0xff]  }
 0x1dd   :  { %v5944_v52 = vld [vmem:[%s8203_s3 + $0xd4] ss:$8 sps:$4 sm:$0xff]   ;;  %v5942_v54 = vld [vmem:[%s8203_s3 + $0xd0] ss:$8 sps:$4 sm:$0xff]   ;;  %v6018_v0 = vld [vmem:[%s8205_s4 + $0x8] sm:$0xff]  }
 0x1de   :  { %3642 = vmatpush1.bf16.msra.mxu0 %v5502_v16  ;;  %3806 = vmatpush1.bf16.msra.mxu1 %v5504_v53  ;;  %v5558_v16 = vcombine.low %v524_v39, %v528_v63  ;;  %v5569_v53 = vcombine.high %v533_v11, %v537_v14  ;;  %v6016_v39 = vld [vmem:[%s8205_s4] sm:$0xff]   ;;  %v6017_v63 = vld [vmem:[%s8205_s4 + $0x48] sm:$0xff]   ;;  %v6019_v1 = vld [vmem:[%s8205_s4 + $0x50] sm:$0xff]  }
 0x1df   :  { %3643 = vmatprep.subr.bf16.mxu0 %v5511_v18  ;;  %3807 = vmatprep.subr.bf16.mxu1 %v5513_v20  ;;  %v540_v18 = vld [vmem:[%s8201_s1 + $0xfd0] sm:$0xff]  ;;  %v541_v20 = vld [vmem:[%s8201_s1 + $0xfd8] sm:$0xff]  ;;  %v6023_v10 = vld [vmem:[%s8205_s4 + $0x60] sm:$0xff]  }
 0x1e0   :  { %v5575_v26 = vcombine.high %v540_v18, %v544_v19  ;;  %v546_v11 = vld [vmem:[%s8206_s7] ss:$8 sm:$0xf] }
 0x1e1   :  { %v547_v14 = vld [vmem:[%s8206_s7] ss:$8 sm:$0xf0] }
 0x1e2   :  { %3644 = vmatpush1.bf16.msra.mxu0 %v5510_v27  ;;  %3808 = vmatpush1.bf16.msra.mxu1 %v5512_v15  ;;  %v5577_v27 = vcombine.high %v541_v20, %v545_v23  ;;  %v5574_v15 = vcombine.low %v540_v18, %v544_v19  ;;  %v7880_v18 = vor.u32 %v547_v14, %v546_v11  ;;  %v5995_v11 = vld [vmem:[%s8203_s3 + $0x1e4] ss:$8 sps:$4 sm:$0xff]  }
 0x1e3   :  { %3645 = vmatprep.subr.bf16.mxu0 %v5519_v28  ;;  %3809 = vmatprep.subr.bf16.mxu1 %v5521_v29  ;;  %v5576_v28 = vcombine.low %v541_v20, %v545_v23  ;;  %v5905_v29 = vld [vmem:[%s8203_s3 + $0x4] ss:$8 sps:$4 sm:$0xff]  }
 0x1e4   :  { %v6026_v23 = vld [vmem:[%s8205_s4 + $0x28] sm:$0xff]  }
 0x1e6   :  { %3646 = vmatpush1.bf16.msra.mxu0 %v5518_v33  ;;  %3810 = vmatpush1.bf16.msra.mxu1 %v5520_v34  ;;  %v5909_v33 = vld [vmem:[%s8203_s3 + $0x20] ss:$8 sps:$4 sm:$0xff]   ;;  %v5912_v34 = vld [vmem:[%s8203_s3 + $0x30] ss:$8 sps:$4 sm:$0xff]  }
 0x1e7   :  { %3647 = vmatprep.subr.bf16.mxu0 %v5527_v35  ;;  %3811 = vmatprep.subr.bf16.mxu1 %v5529_v37  ;;  %v5917_v35 = vld [vmem:[%s8203_s3 + $0x44] ss:$8 sps:$4 sm:$0xff]   ;;  %v5915_v37 = vld [vmem:[%s8203_s3 + $0x40] ss:$8 sps:$4 sm:$0xff]  }
 0x1ea   :  { %3648 = vmatpush1.bf16.msra.mxu0 %v5526_v31  ;;  %3812 = vmatpush1.bf16.msra.mxu1 %v5528_v25  ;;  %v5926_v31 = vld [vmem:[%s8203_s3 + $0x74] ss:$8 sps:$4 sm:$0xff]   ;;  %v5924_v25 = vld [vmem:[%s8203_s3 + $0x70] ss:$8 sps:$4 sm:$0xff]  }
 0x1eb   :  { %3649 = vmatprep.subr.bf16.mxu0 %v5535_v42  ;;  %3813 = vmatprep.subr.bf16.mxu1 %v5537_v43  ;;  %v5929_v42 = vld [vmem:[%s8203_s3 + $0x84] ss:$8 sps:$4 sm:$0xff]   ;;  %v5927_v43 = vld [vmem:[%s8203_s3 + $0x80] ss:$8 sps:$4 sm:$0xff]  }
 0x1ee   :  { %3650 = vmatpush1.bf16.msra.mxu0 %v5534_v48  ;;  %3814 = vmatpush1.bf16.msra.mxu1 %v5536_v49  ;;  %v5938_v48 = vld [vmem:[%s8203_s3 + $0xb4] ss:$8 sps:$4 sm:$0xff]   ;;  %v5936_v49 = vld [vmem:[%s8203_s3 + $0xb0] ss:$8 sps:$4 sm:$0xff]  }
 0x1ef   :  { %3651 = vmatprep.subr.bf16.mxu0 %v5543_v50  ;;  %3815 = vmatprep.subr.bf16.mxu1 %v5545_v51  ;;  %v5941_v50 = vld [vmem:[%s8203_s3 + $0xc4] ss:$8 sps:$4 sm:$0xff]   ;;  %v5939_v51 = vld [vmem:[%s8203_s3 + $0xc0] ss:$8 sps:$4 sm:$0xff]  }
 0x1f2   :  { %3652 = vmatpush1.bf16.msra.mxu0 %v5542_v59  ;;  %3816 = vmatpush1.bf16.msra.mxu1 %v5544_v60  ;;  %v5950_v59 = vld [vmem:[%s8203_s3 + $0xf4] ss:$8 sps:$4 sm:$0xff]   ;;  %v5948_v60 = vld [vmem:[%s8203_s3 + $0xf0] ss:$8 sps:$4 sm:$0xff]  }
 0x1f3   :  { %3653 = vmatprep.subr.bf16.mxu0 %v5551_v61  ;;  %3817 = vmatprep.subr.bf16.mxu1 %v5553_v62  ;;  %v5953_v61 = vld [vmem:[%s8203_s3 + $0x104] ss:$8 sps:$4 sm:$0xff]  }
 0x1f4   :  { %v6015_v62 = vld [vmem:[%s8205_s4 + $0x40] sm:$0xff]  }
 0x1f6   :  { %3654 = vmatpush1.bf16.msra.mxu0 %v5550_v2  ;;  %3818 = vmatpush1.bf16.msra.mxu1 %v5552_v3  ;;  %v550_v2 = vlaneseq  ;;  %v6020_v3 = vld [vmem:[%s8205_s4 + $0x10] sm:$0xff]  }
 0x1f7   :  { %3655 = vmatprep.subr.bf16.mxu0 %v5559_v5  ;;  %3819 = vmatprep.subr.bf16.mxu1 %v5561_v6  ;;  %v6021_v5 = vld [vmem:[%s8205_s4 + $0x58] sm:$0xff]  }
 0x1f8   :  { %v6022_v6 = vld [vmem:[%s8205_s4 + $0x18] sm:$0xff]   ;;  %v7861_v7 = vshrl.u32 %v550_v2, 7 }
 0x1fa   :  { %3656 = vmatpush1.bf16.msra.mxu0 %v5558_v16  ;;  %3820 = vmatpush1.bf16.msra.mxu1 %v5560_v17  ;;  %v568_v16 = vsub.s32 4, %v7861_v7  ;;  %v6024_v17 = vld [vmem:[%s8205_s4 + $0x20] sm:$0xff]   ;;  %v580_v19 = vsub.s32 7, %v7861_v7  ;;  %v576_v2 = vsub.s32 6, %v7861_v7 }
 0x1fb   :  { %3657 = vmatprep.subr.bf16.mxu0 %v5567_v57  ;;  %3821 = vmatprep.subr.bf16.mxu1 %v5569_v53  ;;  %v572_v57 = vsub.s32 5, %v7861_v7  ;;  %v6025_v53 = vld [vmem:[%s8205_s4 + $0x68] sm:$0xff]  }
 0x1fc   :  { %v569_v20 = vrot.slane %v7880_v18, %v568_v16  ;;  %v5993_v16 = vld [vmem:[%s8203_s3 + $0x1e0] ss:$8 sps:$4 sm:$0xff]  }
 0x1fe   :  { %3658 = vmatpush1.bf16.msra.mxu0 %v5566_v12  ;;  %3822 = vmatpush1.bf16.msra.mxu1 %v5568_v24  ;;  %v573_v12 = vrot.slane %v7880_v18, %v572_v57  ;;  %v581_v24 = vrot.slane %v7880_v18, %v580_v19  ;;  %v5998_v57 = vld [vmem:[%s8203_s3 + $0x1f4] ss:$8 sps:$4 sm:$0xff]   ;;  %v5996_v19 = vld [vmem:[%s8203_s3 + $0x1f0] ss:$8 sps:$4 sm:$0xff]  }
 0x1ff   :  { %3659 = vmatprep.subr.bf16.mxu0 %v5575_v26  ;;  %3823 = vmatprep.subr.bf16.mxu1 %v5577_v27 }
 0x202   :  { %3660 = vmatpush1.bf16.msra.mxu0 %v5574_v15  ;;  %3824 = vmatpush1.bf16.msra.mxu1 %v5576_v28 }
 0x203   :  { %4247 = vmatprep.subr.bf16.mxu0 %v5905_v29  ;;  %5707 = vmatprep.subr.bf16.mxu1 %v6015_v62  ;;  %v5981_v62 = vld [vmem:[%s8203_s3 + $0x1a0] ss:$8 sps:$4 sm:$0xff]  }
 0x205   :  { %3662 = vmatmul.mubr.bf16.vlgmr.msra.gmra.mrb[4].mxu0 %v6960_v55  ;;  %3826 = vmatmul.mubr.bf16.vlgmr.msra.gmra.mrb[4].mxu1 %v6960_v55  ;;  %v5914_v55 = vld [vmem:[%s8203_s3 + $0x34] ss:$8 sps:$4 sm:$0xff]  }
 0x206   :  { %4248 = vmatpush1.bf16.msra.mxu0 %v5903_v30  ;;  %5708 = vmatpush3.bf16.msra.mxu1 %v6016_v39  ;;  %v5986_v39 = vld [vmem:[%s8203_s3 + $0x1b4] ss:$8 sps:$4 sm:$0xff]  }
 0x207   :  { %4249 = vmatprep.subr.bf16.mxu0 %v5908_v21  ;;  %5709 = vmatprep.subr.bf16.mxu1 %v6017_v63  ;;  %v5984_v63 = vld [vmem:[%s8203_s3 + $0x1b0] ss:$8 sps:$4 sm:$0xff]  }
 0x20a   :  { %4250 = vmatpush1.bf16.msra.mxu0 %v5906_v32  ;;  %5710 = vmatpush3.bf16.msra.mxu1 %v6018_v0  ;;  %v5989_v0 = vld [vmem:[%s8203_s3 + $0x1c4] ss:$8 sps:$4 sm:$0xff]  }
 0x20b   :  { %4251 = vmatprep.subr.bf16.mxu0 %v5911_v22  ;;  %5711 = vmatprep.subr.bf16.mxu1 %v6019_v1  ;;  %v5987_v1 = vld [vmem:[%s8203_s3 + $0x1c0] ss:$8 sps:$4 sm:$0xff]  }
 0x20e   :  { %4252 = vmatpush1.bf16.msra.mxu0 %v5909_v33  ;;  %5712 = vmatpush3.bf16.msra.mxu1 %v6020_v3  ;;  %v5992_v3 = vld [vmem:[%s8203_s3 + $0x1d4] ss:$8 sps:$4 sm:$0xff]  }
 0x20f   :  { %4253 = vmatprep.subr.bf16.mxu0 %v5914_v55  ;;  %5713 = vmatprep.subr.bf16.mxu1 %v6021_v5  ;;  %v564_v5 = vsub.s32 3, %v7861_v7 }
 0x211   :  { %v565_v14 = vrot.slane %v7880_v18, %v564_v5  ;;  %v6036_v5 = vld [vmem:[%s8207_s5 + $0x28] sm:$0xff]  }
 0x212   :  { %4254 = vmatpush1.bf16.msra.mxu0 %v5912_v34  ;;  %5714 = vmatpush3.bf16.msra.mxu1 %v6022_v6  ;;  %v5990_v6 = vld [vmem:[%s8203_s3 + $0x1d0] ss:$8 sps:$4 sm:$0xff]  }
 0x213   :  { %4255 = vmatprep.subr.bf16.mxu0 %v5917_v35  ;;  %5715 = vmatprep.subr.bf16.mxu1 %v6023_v10  ;;  %v577_v10 = vrot.slane %v7880_v18, %v576_v2  ;;  %v6034_v2 = vld [vmem:[%s8207_s5 + $0x18] sm:$0xff]  }
 0x216   :  { %4256 = vmatpush1.bf16.msra.mxu0 %v5915_v37  ;;  %5716 = vmatpush3.bf16.msra.mxu1 %v6024_v17 }
 0x217   :  { %4257 = vmatprep.subr.bf16.mxu0 %v5920_v38  ;;  %5717 = vmatprep.subr.bf16.mxu1 %v6025_v53  ;;  %v5834_v53 = vadd.f32 %v7638_v13, %v565_v14  ;;  %v6001_v13 = vld [vmem:[%s8204_s2 + $0xc8] sm:$0xff]  }
 0x21a   :  { %4258 = vmatpush1.bf16.msra.mxu0 %v5918_v36  ;;  %5718 = vmatpush3.bf16.msra.mxu1 %v6026_v23  ;;  %v5951_v36 = vld [vmem:[%s8203_s3 + $0x100] ss:$8 sps:$4 sm:$0xff]  }
 0x21b   :  { %4259 = vmatprep.subr.bf16.mxu0 %v5923_v40  ;;  %v5999_v23 = vld [vmem:[%s8204_s2 + $0xc0] sm:$0xff]  }
 0x21e   :  { %4260 = vmatpush1.bf16.msra.mxu0 %v5921_v41  ;;  %v5956_v41 = vld [vmem:[%s8203_s3 + $0x114] ss:$8 sps:$4 sm:$0xff]  }
 0x21f   :  { %4261 = vmatprep.subr.bf16.mxu0 %v5926_v31 }
 0x222   :  { %4262 = vmatpush1.bf16.msra.mxu0 %v5924_v25  ;;  %v5954_v25 = vld [vmem:[%s8203_s3 + $0x110] ss:$8 sps:$4 sm:$0xff]  }
 0x223   :  { %4263 = vmatprep.subr.bf16.mxu0 %v5929_v42  ;;  %v5959_v42 = vld [vmem:[%s8203_s3 + $0x124] ss:$8 sps:$4 sm:$0xff]  }
 0x226   :  { %4264 = vmatpush1.bf16.msra.mxu0 %v5927_v43  ;;  %v5957_v43 = vld [vmem:[%s8203_s3 + $0x120] ss:$8 sps:$4 sm:$0xff]  }
 0x227   :  { %4265 = vmatprep.subr.bf16.mxu0 %v5932_v44  ;;  %v5962_v44 = vld [vmem:[%s8203_s3 + $0x134] ss:$8 sps:$4 sm:$0xff]  }
 0x22a   :  { %4266 = vmatpush1.bf16.msra.mxu0 %v5930_v45  ;;  %v5960_v45 = vld [vmem:[%s8203_s3 + $0x130] ss:$8 sps:$4 sm:$0xff]  }
 0x22b   :  { %4267 = vmatprep.subr.bf16.mxu0 %v5935_v46  ;;  %v5965_v46 = vld [vmem:[%s8203_s3 + $0x144] ss:$8 sps:$4 sm:$0xff]  }
 0x22e   :  { %4268 = vmatpush1.bf16.msra.mxu0 %v5933_v47  ;;  %v5963_v47 = vld [vmem:[%s8203_s3 + $0x140] ss:$8 sps:$4 sm:$0xff]  }
 0x22f   :  { %4269 = vmatprep.subr.bf16.mxu0 %v5938_v48  ;;  %v5968_v48 = vld [vmem:[%s8203_s3 + $0x154] ss:$8 sps:$4 sm:$0xff]  }
 0x232   :  { %4270 = vmatpush1.bf16.msra.mxu0 %v5936_v49  ;;  %v5966_v49 = vld [vmem:[%s8203_s3 + $0x150] ss:$8 sps:$4 sm:$0xff]  }
 0x233   :  { %4271 = vmatprep.subr.bf16.mxu0 %v5941_v50  ;;  %v5971_v50 = vld [vmem:[%s8203_s3 + $0x164] ss:$8 sps:$4 sm:$0xff]  }
 0x236   :  { %4272 = vmatpush1.bf16.msra.mxu0 %v5939_v51  ;;  %v5969_v51 = vld [vmem:[%s8203_s3 + $0x160] ss:$8 sps:$4 sm:$0xff]  }
 0x237   :  { %4273 = vmatprep.subr.bf16.mxu0 %v5944_v52  ;;  %v5974_v52 = vld [vmem:[%s8203_s3 + $0x174] ss:$8 sps:$4 sm:$0xff]  }
 0x23a   :  { %4274 = vmatpush1.bf16.msra.mxu0 %v5942_v54  ;;  %v5972_v54 = vld [vmem:[%s8203_s3 + $0x170] ss:$8 sps:$4 sm:$0xff]  }
 0x23b   :  { %4275 = vmatprep.subr.bf16.mxu0 %v5947_v56  ;;  %v5977_v56 = vld [vmem:[%s8203_s3 + $0x184] ss:$8 sps:$4 sm:$0xff]  }
 0x23e   :  { %4276 = vmatpush1.bf16.msra.mxu0 %v5945_v58  ;;  %v5975_v58 = vld [vmem:[%s8203_s3 + $0x180] ss:$8 sps:$4 sm:$0xff]  }
 0x23f   :  { %4277 = vmatprep.subr.bf16.mxu0 %v5950_v59  ;;  %v5980_v59 = vld [vmem:[%s8203_s3 + $0x194] ss:$8 sps:$4 sm:$0xff]  }
 0x242   :  { %4278 = vmatpush1.bf16.msra.mxu0 %v5948_v60  ;;  %v5978_v60 = vld [vmem:[%s8203_s3 + $0x190] ss:$8 sps:$4 sm:$0xff]  }
 0x243   :  { %4288 = vmatprep.subr.bf16.mxu0 %v5953_v61  ;;  %v5983_v61 = vld [vmem:[%s8203_s3 + $0x1a4] ss:$8 sps:$4 sm:$0xff]  }
 0x2d8   :  { %v3663_v26 = vpop.f32.mrb[4].mxu0  ;;  %v7889_v15 = vpop.f32.mrb[4].mxu1 }
 0x2d9   :  { %v5835_v27 = vadd.f32 %v3663_v26, %v569_v20  ;;  %v3665_v28 = vpop.f32.mrb[5].mxu0  ;;  %v3829_v30 = vpop.f32.mrb[5].mxu1  ;;  %v5837_v17 = vadd.f32 %v7889_v15, %v577_v10  ;;  %v6002_v15 = vld [vmem:[%s8204_s2 + $0x88] sm:$0xff]  }
 0x2da   :  { %v5836_v29 = vadd.f32 %v3665_v28, %v573_v12  ;;  %v3667_v21 = vpop.f32.mrb[6].mxu0  ;;  %v5838_v22 = vadd.f32 %v3829_v30, %v581_v24  ;;  %v3831_v33 = vpop.f32.mrb[6].mxu1  ;;  %v3837_v12 = vmax.f32 %v5834_v53, 0.0  ;;  %v6000_v24 = vld [vmem:[%s8204_s2 + $0x80] sm:$0xff]   ;;  %v6003_v28 = vld [vmem:[%s8204_s2 + $0xd0] sm:$0xff]   ;;  %v6005_v30 = vld [vmem:[%s8204_s2 + $0xd8] sm:$0xff]  }
 0x2db   :  { %v3838_v32 = vmax.f32 %v5835_v27, 0.0  ;;  %v3668_v55 = vpop.f32.mrb[7].mxu0  ;;  %v3832_v35 = vpop.f32.mrb[7].mxu1  ;;  %v3840_v20 = vmax.f32 %v5837_v17, 0.0  ;;  %v6006_v21 = vld [vmem:[%s8204_s2 + $0x98] sm:$0xff]   ;;  %v560_v33 = vsub.s32 2, %v7861_v7 }
 0x2dc   :  { %v3839_v34 = vmax.f32 %v5836_v29, 0.0  ;;  %v3841_v37 = vmax.f32 %v5838_v22, 0.0  ;;  %v3845_v27 = vpack.c.bf16 %v3837_v12, %v3837_v12  ;;  %v6004_v29 = vld [vmem:[%s8204_s2 + $0x90] sm:$0xff]   ;;  %v6008_v22 = vld [vmem:[%s8204_s2 + $0xa0] sm:$0xff]   ;;  %v6009_v55 = vld [vmem:[%s8204_s2 + $0xe8] sm:$0xff]  }
 0x2dd   :  { %v3846_v40 = vpack.c.bf16 %v3838_v32, %v3838_v32  ;;  %v3848_v26 = vpack.c.bf16 %v3840_v20, %v3840_v20  ;;  %v6007_v32 = vld [vmem:[%s8204_s2 + $0xe0] sm:$0xff]   ;;  %v561_v35 = vrot.slane %v7880_v18, %v560_v33  ;;  %v6037_v17 = vld [vmem:[%s8207_s5 + $0x30] sm:$0xff]   ;;  %v6046_v33 = vld [vmem:[%s8208_s6 + $0x38] sm:$0xff]  }
 0x2de   :  { %v3847_v38 = vpack.c.bf16 %v3839_v34, %v3839_v34  ;;  %v3849_v31 = vpack.c.bf16 %v3841_v37, %v3841_v37  ;;  %v6010_v34 = vld [vmem:[%s8204_s2 + $0xa8] sm:$0xff]   ;;  %v6011_v37 = vld [vmem:[%s8204_s2 + $0xf0] sm:$0xff]  }
 0x2e0   :  { %4279 = vmatprep.mubr.bf16.mxu0 %v3847_v38  ;;  %v6012_v38 = vld [vmem:[%s8204_s2 + $0xb0] sm:$0xff]  }
 0x2e1   :  { %4280 = vmatmul.mubr.bf16.vlgmr.msra.gmra.mrb[8].mxu0 %v3846_v40  ;;  %v6013_v40 = vld [vmem:[%s8204_s2 + $0xf8] sm:$0xff]  }
 0x2e2   :  { %4289 = vmatpush1.bf16.msra.mxu0 %v5951_v36  ;;  %4320 = vmatprep.mubr.bf16.mxu0 %v3849_v31  ;;  %v5833_v36 = vadd.f32 %v7628_v8, %v561_v35  ;;  %v6028_v8 = vld [vmem:[%s8205_s4 + $0x30] sm:$0xff]  }
 0x2e3   :  { %4290 = vmatprep.subr.bf16.mxu0 %v5956_v41  ;;  %v6014_v41 = vld [vmem:[%s8204_s2 + $0xb8] sm:$0xff]  }
 0x2e4   :  { %v3836_v31 = vmax.f32 %v5833_v36, 0.0 }
 0x2e6   :  { %4291 = vmatpush1.bf16.msra.mxu0 %v5954_v25  ;;  %v3844_v25 = vpack.c.bf16 %v3836_v31, %v3836_v31 }
 0x2e7   :  { %4292 = vmatprep.subr.bf16.mxu0 %v5959_v42  ;;  %v6027_v42 = vld [vmem:[%s8205_s4 + $0x70] sm:$0xff]  }
 0x2e8   :  { %5719 = vmatprep.subr.bf16.mxu1 %v6027_v42 }
 0x2e9   :  { %5720 = vmatpush3.bf16.msra.mxu1 %v6028_v8  ;;  %v6048_v8 = vld [vmem:[%s8204_s2] sm:$0xff]  }
 0x2ea   :  { %4293 = vmatpush1.bf16.msra.mxu0 %v5957_v43  ;;  %v6029_v43 = vld [vmem:[%s8205_s4 + $0x78] sm:$0xff]  }
 0x2eb   :  { %4294 = vmatprep.subr.bf16.mxu0 %v5962_v44  ;;  %v6030_v44 = vld [vmem:[%s8205_s4 + $0x38] sm:$0xff]   ;;  %5721 = vmatprep.subr.bf16.mxu1 %v6029_v43 }
 0x2ed   :  { %5722 = vmatpush3.bf16.msra.mxu1 %v6030_v44 }
 0x2ee   :  { %4295 = vmatpush1.bf16.msra.mxu0 %v5960_v45  ;;  %v6063_v45 = vmov 0.0  }
 0x2ef   :  { %4296 = vmatprep.subr.bf16.mxu0 %v5965_v46  ;;  %5791 = vmatprep.subr.bf16.mxu1 %v6063_v45  ;;  %v5578_v46 = vld [vmem:[%s8206_s7 + $0x2] ss:$8 sm:$0x3] }
 0x2f2   :  { %4297 = vmatpush1.bf16.msra.mxu0 %v5963_v47  ;;  %v552_v47 = vsub.s32 0, %v7861_v7 }
 0x2f3   :  { %4298 = vmatprep.subr.bf16.mxu0 %v5968_v48  ;;  %v556_v48 = vsub.s32 1, %v7861_v7  ;;  %v6062_v7 = vld [vmem:[%s8204_s2 + $0x38] sm:$0xff]  }
 0x2f6   :  { %4299 = vmatpush1.bf16.msra.mxu0 %v5966_v49  ;;  %v3920_v49 = vrot.slane %v5578_v46, %v552_v47 }
 0x2f7   :  { %4300 = vmatprep.subr.bf16.mxu0 %v5971_v50  ;;  %v3924_v50 = vrot.slane %v5578_v46, %v556_v48  ;;  %v6051_v46 = vld [vmem:[%s8204_s2 + $0x50] sm:$0xff]  }
 0x2fa   :  { %4301 = vmatpush1.bf16.msra.mxu0 %v5969_v51 }
 0x2fb   :  { %4302 = vmatprep.subr.bf16.mxu0 %v5974_v52 }
 0x2fe   :  { %4303 = vmatpush1.bf16.msra.mxu0 %v5972_v54 }
 0x2ff   :  { %4304 = vmatprep.subr.bf16.mxu0 %v5977_v56 }
 0x302   :  { %4305 = vmatpush1.bf16.msra.mxu0 %v5975_v58 }
 0x303   :  { %4306 = vmatprep.subr.bf16.mxu0 %v5980_v59 }
 0x306   :  { %4307 = vmatpush1.bf16.msra.mxu0 %v5978_v60 }
 0x307   :  { %4308 = vmatprep.subr.bf16.mxu0 %v5983_v61 }
 0x30a   :  { %4309 = vmatpush1.bf16.msra.mxu0 %v5981_v62 }
 0x30b   :  { %4310 = vmatprep.subr.bf16.mxu0 %v5986_v39  ;;  %v6031_v39 = vld [vmem:[%s8207_s5] sm:$0xff]  }
 0x30e   :  { %4311 = vmatpush1.bf16.msra.mxu0 %v5984_v63 }
 0x30f   :  { %4312 = vmatprep.subr.bf16.mxu0 %v5989_v0  ;;  %v6032_v0 = vld [vmem:[%s8207_s5 + $0x8] sm:$0xff]  }
 0x312   :  { %4313 = vmatpush1.bf16.msra.mxu0 %v5987_v1  ;;  %v6033_v1 = vld [vmem:[%s8207_s5 + $0x10] sm:$0xff]  }
 0x313   :  { %4314 = vmatprep.subr.bf16.mxu0 %v5992_v3  ;;  %v6035_v3 = vld [vmem:[%s8207_s5 + $0x20] sm:$0xff]  }
 0x316   :  { %4315 = vmatpush1.bf16.msra.mxu0 %v5990_v6 }
 0x317   :  { %4316 = vmatprep.subr.bf16.mxu0 %v5995_v11 }
 0x31a   :  { %4317 = vmatpush1.bf16.msra.mxu0 %v5993_v16 }
 0x31b   :  { %4318 = vmatprep.subr.bf16.mxu0 %v5998_v57  ;;  %v6038_v57 = vld [vmem:[%s8207_s5 + $0x38] sm:$0xff]  }
 0x31e   :  { %4319 = vmatpush1.bf16.msra.mxu0 %v5996_v19  ;;  %v4365_v19 = vld [vmem:[%s8206_s7 + $0x3] ss:$0 sm:$0xff] }
 0x31f   :  { %5769 = vmatprep.subr.bf16.mxu0 %v5999_v23 }
 0x321   :  { %4321 = vmatmul.mubr.bf16.vlgmr.msra.gmra.mrb[8].mxu0 %v3848_v26 }
 0x322   :  { %5770 = vmatpush3.bf16.msra.mxu0 %v6000_v24  ;;  %5043 = vmatprep.mubr.bf16.mxu0 %v3845_v27  ;;  %v6039_v27 = vld [vmem:[%s8208_s6] sm:$0xff]  }
 0x323   :  { %5771 = vmatprep.subr.bf16.mxu0 %v6001_v13 }
 0x326   :  { %5772 = vmatpush3.bf16.msra.mxu0 %v6002_v15 }
 0x327   :  { %5773 = vmatprep.subr.bf16.mxu0 %v6003_v28  ;;  %v6040_v28 = vld [vmem:[%s8208_s6 + $0x8] sm:$0xff]  }
 0x32a   :  { %5774 = vmatpush3.bf16.msra.mxu0 %v6004_v29  ;;  %v6041_v29 = vld [vmem:[%s8208_s6 + $0x10] sm:$0xff]  }
 0x32b   :  { %5775 = vmatprep.subr.bf16.mxu0 %v6005_v30  ;;  %v6042_v30 = vld [vmem:[%s8208_s6 + $0x18] sm:$0xff]  }
 0x32e   :  { %5776 = vmatpush3.bf16.msra.mxu0 %v6006_v21  ;;  %v6043_v21 = vld [vmem:[%s8208_s6 + $0x20] sm:$0xff]  }
 0x32f   :  { %5777 = vmatprep.subr.bf16.mxu0 %v6007_v32  ;;  %v6044_v32 = vld [vmem:[%s8208_s6 + $0x28] sm:$0xff]  }
 0x332   :  { %5778 = vmatpush3.bf16.msra.mxu0 %v6008_v22  ;;  %v6045_v22 = vld [vmem:[%s8208_s6 + $0x30] sm:$0xff]  }
 0x333   :  { %5779 = vmatprep.subr.bf16.mxu0 %v6009_v55  ;;  %v6047_v55 = vld [vmem:[%s8204_s2 + $0x40] sm:$0xff]  }
 0x336   :  { %5780 = vmatpush3.bf16.msra.mxu0 %v6010_v34  ;;  %v557_v34 = vrot.slane %v7880_v18, %v556_v48  ;;  %v6052_v48 = vld [vmem:[%s8204_s2 + $0x10] sm:$0xff]  }
 0x337   :  { %5781 = vmatprep.subr.bf16.mxu0 %v6011_v37  ;;  %v4520_v37 = vld [vmem:[%s8206_s7 + $0x4] ss:$0 sm:$0xff] }
 0x338   :  { %v5832_v35 = vadd.f32 %v7630_v9, %v557_v34  ;;  %v6049_v9 = vld [vmem:[%s8204_s2 + $0x48] sm:$0xff]  }
 0x33a   :  { %5782 = vmatpush3.bf16.msra.mxu0 %v6012_v38 }
 0x33b   :  { %5783 = vmatprep.subr.bf16.mxu0 %v6013_v40 }
 0x33e   :  { %5784 = vmatpush3.bf16.msra.mxu0 %v6014_v41  ;;  %v3835_v41 = vmax.f32 %v5832_v35, 0.0 }
 0x340   :  { %v3843_v44 = vpack.c.bf16 %v3835_v41, %v3835_v41 }
 0x341   :  { %5044 = vmatmul.mubr.bf16.vlgmr.msra.gmra.mrb[12].mxu0 %v3844_v25 }
 0x3f4   :  { %v4322_v51 = vpop.f32.mrb[8].mxu0 }
 0x3f5   :  { %v5839_v52 = vadd.f32 %v4322_v51, %v3920_v49  ;;  %v4324_v54 = vpop.f32.mrb[9].mxu0  ;;  %v6053_v49 = vld [vmem:[%s8204_s2 + $0x58] sm:$0xff]   ;;  %v6055_v51 = vld [vmem:[%s8204_s2 + $0x60] sm:$0xff]  }
 0x3f6   :  { %v5840_v56 = vadd.f32 %v4324_v54, %v3924_v50  ;;  %v4326_v58 = vpop.f32.mrb[10].mxu0  ;;  %v6054_v50 = vld [vmem:[%s8204_s2 + $0x18] sm:$0xff]   ;;  %v6057_v54 = vld [vmem:[%s8204_s2 + $0x68] sm:$0xff]  }
 0x3f7   :  { %v4329_v59 = vmax.f32 %v5839_v52, 0.0  ;;  %v4327_v60 = vpop.f32.mrb[11].mxu0  ;;  %v6056_v52 = vld [vmem:[%s8204_s2 + $0x20] sm:$0xff]   ;;  %v553_v58 = vrot.slane %v7880_v18, %v552_v47 }
 0x3f8   :  { %v4330_v61 = vmax.f32 %v5840_v56, 0.0  ;;  %v6058_v56 = vld [vmem:[%s8204_s2 + $0x28] sm:$0xff]   ;;  %v6060_v60 = vld [vmem:[%s8204_s2 + $0x30] sm:$0xff]  }
 0x3f9   :  { %v4331_v63 = vpack.c.bf16 %v4329_v59, %v4329_v59  ;;  %v6059_v59 = vld [vmem:[%s8204_s2 + $0x70] sm:$0xff]  }
 0x3fa   :  { %v4332_v62 = vpack.c.bf16 %v4330_v61, %v4330_v61  ;;  %v5831_v61 = vadd.f32 %v7620_v4, %v553_v58 }
 0x3fc   :  { %4494 = vmatprep.mubr.bf16.mxu1 %v4332_v62  ;;  %v6061_v62 = vld [vmem:[%s8204_s2 + $0x78] sm:$0xff]   ;;  %v3834_v18 = vmax.f32 %v5831_v61, 0.0 }
 0x3fd   :  { %4495 = vmatmul.mubr.bf16.vlgmr.msra.gmra.mrb[8].mxu1 %v4331_v63 }
 0x3fe   :  { %5792 = vmatpush3.bf16.msra.mxu1 %v6031_v39  ;;  %5807 = vmatprep.mubr.msk.bf16.mxu1 %vm6064_vm0, %v6063_v45  ;;  %v3842_v47 = vpack.c.bf16 %v3834_v18, %v3834_v18 }
 0x3ff   :  { %5793 = vmatprep.subr.bf16.mxu1 %v6063_v45 }
 0x402   :  { %5794 = vmatpush3.bf16.msra.mxu1 %v6032_v0 }
 0x403   :  { %5795 = vmatprep.subr.bf16.mxu1 %v6063_v45 }
 0x406   :  { %5796 = vmatpush3.bf16.msra.mxu1 %v6033_v1 }
 0x407   :  { %5797 = vmatprep.subr.bf16.mxu1 %v6063_v45 }
 0x40a   :  { %5798 = vmatpush3.bf16.msra.mxu1 %v6034_v2 }
 0x40b   :  { %5799 = vmatprep.subr.bf16.mxu1 %v6063_v45 }
 0x40e   :  { %5800 = vmatpush3.bf16.msra.mxu1 %v6035_v3 }
 0x40f   :  { %5801 = vmatprep.subr.bf16.mxu1 %v6063_v45 }
 0x412   :  { %5802 = vmatpush3.bf16.msra.mxu1 %v6036_v5 }
 0x413   :  { %5803 = vmatprep.subr.bf16.mxu1 %v6063_v45 }
 0x414   :  { %v5785_v6 = vpop.f32.mrb[12].mxu0 }
 0x415   :  { %v5786_v10 = vpop.f32.mrb[13].mxu0 }
 0x416   :  { %v8087_v11 = vadd.f32 %v5786_v10, %v5785_v6  ;;  %v5788_v14 = vpop.f32.mrb[14].mxu0  ;;  %5804 = vmatpush3.bf16.msra.mxu1 %v6037_v17 }
 0x417   :  { %v5789_v16 = vpop.f32.mrb[15].mxu0  ;;  %5805 = vmatprep.subr.bf16.mxu1 %v6063_v45  ;;  %v5051_v14 = vld [vmem:[%s8206_s7 + $0x1] ss:$0 sm:$0xff] }
 0x41a   :  { %5806 = vmatpush3.bf16.msra.mxu1 %v6038_v57 }
 0x41b   :  { %5811 = vmatprep.subr.bf16.mxu1 %v6063_v45 }
 0x4d0   :  { %v5723_v53 = vpop.f32.mrb[8].mxu1 }
 0x4d1   :  { %v5724_v20 = vpop.f32.mrb[9].mxu1 }
 0x4d2   :  { %v5725_v23 = vadd.f32 %v5724_v20, %v5723_v53  ;;  %v5726_v12 = vpop.f32.mrb[10].mxu1 }
 0x4d3   :  { %v5727_v24 = vpop.f32.mrb[11].mxu1 }
 0x4d4   :  { %v4497_v26 = vadd.f32 %v5725_v23, %v4365_v19 }
 0x4d6   :  { %v4502_v13 = vmax.f32 %v4497_v26, 0.0 }
 0x4d8   :  { %v4503_v15 = vpack.c.bf16 %v4502_v13, %v4502_v13 }
 0x4da   :  { %5808 = vmatmul.mubr.bf16.vlgmr.msra.gmra.mrb[12].mxu1 %v4503_v15 }
 0x4db   :  { %5812 = vmatpush3.bf16.msra.mxu1 %v6039_v27  ;;  %5827 = vmatprep.mubr.msk.bf16.mxu1 %vm6064_vm0, %v6063_v45 }
 0x4dc   :  { %5813 = vmatprep.subr.bf16.mxu1 %v6063_v45 }
 0x4df   :  { %5814 = vmatpush3.bf16.msra.mxu1 %v6040_v28 }
 0x4e0   :  { %5815 = vmatprep.subr.bf16.mxu1 %v6063_v45 }
 0x4e3   :  { %5816 = vmatpush3.bf16.msra.mxu1 %v6041_v29 }
 0x4e4   :  { %5817 = vmatprep.subr.bf16.mxu1 %v6063_v45 }
 0x4e7   :  { %5818 = vmatpush3.bf16.msra.mxu1 %v6042_v30 }
 0x4e8   :  { %5819 = vmatprep.subr.bf16.mxu1 %v6063_v45 }
 0x4eb   :  { %5820 = vmatpush3.bf16.msra.mxu1 %v6043_v21 }
 0x4ec   :  { %5821 = vmatprep.subr.bf16.mxu1 %v6063_v45 }
 0x4ef   :  { %5822 = vmatpush3.bf16.msra.mxu1 %v6044_v32 }
 0x4f0   :  { %5823 = vmatprep.subr.bf16.mxu1 %v6063_v45 }
 0x4f3   :  { %5824 = vmatpush3.bf16.msra.mxu1 %v6045_v22 }
 0x4f4   :  { %5825 = vmatprep.subr.bf16.mxu1 %v6063_v45  ;;  %v6050_v45 = vld [vmem:[%s8204_s2 + $0x8] sm:$0xff]  }
 0x4f7   :  { %5826 = vmatpush3.bf16.msra.mxu1 %v6046_v33 }
 0x4f8   :  { %5747 = vmatprep.subr.bf16.mxu1 %v6047_v55 }
 0x5ad   :  { %v4603_v38 = vpop.f32.mrb[12].mxu1 }
 0x5ae   :  { %v4604_v36 = vadd.f32 %v4603_v38, %v4520_v37  ;;  %v5809_v40 = vpop.f32.mrb[13].mxu1 }
 0x5af   :  { %v4606_v31 = vpop.f32.mrb[14].mxu1 }
 0x5b0   :  { %v4609_v25 = vmax.f32 %v4604_v36, 0.0  ;;  %v5810_v42 = vpop.f32.mrb[15].mxu1 }
 0x5b2   :  { %v4610_v43 = vpack.c.bf16 %v4609_v25, %v4609_v25 }
 0x5b4   :  { %5828 = vmatmul.mubr.bf16.vlgmr.msra.gmra.mrb[16].mxu1 %v4610_v43 }
 0x5b5   :  { %5748 = vmatpush3.bf16.msra.mxu1 %v6048_v8  ;;  %5003 = vmatprep.mubr.bf16.mxu1 %v3843_v44 }
 0x5b6   :  { %5749 = vmatprep.subr.bf16.mxu1 %v6049_v9 }
 0x5b9   :  { %5750 = vmatpush3.bf16.msra.mxu1 %v6050_v45 }
 0x5ba   :  { %5751 = vmatprep.subr.bf16.mxu1 %v6051_v46 }
 0x5bd   :  { %5752 = vmatpush3.bf16.msra.mxu1 %v6052_v48 }
 0x5be   :  { %5753 = vmatprep.subr.bf16.mxu1 %v6053_v49 }
 0x5c1   :  { %5754 = vmatpush3.bf16.msra.mxu1 %v6054_v50 }
 0x5c2   :  { %5755 = vmatprep.subr.bf16.mxu1 %v6055_v51 }
 0x5c5   :  { %5756 = vmatpush3.bf16.msra.mxu1 %v6056_v52 }
 0x5c6   :  { %5757 = vmatprep.subr.bf16.mxu1 %v6057_v54 }
 0x5c9   :  { %5758 = vmatpush3.bf16.msra.mxu1 %v6058_v56 }
 0x5ca   :  { %5759 = vmatprep.subr.bf16.mxu1 %v6059_v59 }
 0x5cd   :  { %5760 = vmatpush3.bf16.msra.mxu1 %v6060_v60 }
 0x5ce   :  { %5761 = vmatprep.subr.bf16.mxu1 %v6061_v62 }
 0x5d1   :  { %5762 = vmatpush3.bf16.msra.mxu1 %v6062_v7 }
 0x5d4   :  { %5004 = vmatmul.mubr.bf16.vlgmr.msra.gmra.mrb[20].mxu1 %v3842_v47 }
 0x687   :  { %v4773_v39 = vpop.f32.mrb[16].mxu1 }
 0x688   :  { %v5829_v63 = vpop.f32.mrb[17].mxu1 }
 0x689   :  { %v4776_v0 = vpop.f32.mrb[18].mxu1 }
 0x68a   :  { %v5830_v1 = vpop.f32.mrb[19].mxu1 }
 0x6a7   :  { %v5763_v4 = vpop.f32.mrb[20].mxu1 }
 0x6a8   :  { %v5764_v2 = vpop.f32.mrb[21].mxu1 }
 0x6a9   :  { %v5765_v3 = vadd.f32 %v5764_v2, %v5763_v4  ;;  %v5766_v5 = vpop.f32.mrb[22].mxu1 }
 0x6aa   :  { %v5767_v6 = vpop.f32.mrb[23].mxu1 }
 0x6ab   :  { %v5006_v10 = vadd.f32 %v5765_v3, %v4773_v39 }
 0x6ad   :  { %v5046_v16 = vadd.f32 %v8087_v11, %v5006_v10 }
 0x6af   :  { %v5052_v17 = vadd.f32 %v5051_v14, %v5046_v16 }
 0x6b1   :  { %5053 = vst [vmem:[%s8209_s8] sm:$0xff] %v5052_v17 }

</bundles_post_ra>
